<compile_context>
chip_gen: v6e
topology: v6e:2x2x1
jax: 0.10.0
libtpu: 0.0.40
codegen_flags: <defaults>
</compile_context>

<pallas_src>
import functools

import jax
import jax.numpy as jnp
from jax import lax
from jax.experimental import pallas as pl
from jax.experimental.pallas import tpu as pltpu


def icnn_grad_kernel(x_ref, wfwd_ref, wbwd_ref, wzf_ref, wzb_ref,
                     wz_last_ref, wq_last_ref, wl_last_ref, out_ref,
                     *, n_layers, hidden, slope, sc):
    """Computes (1-sc) * d(scalar(x))/dx + sc * x for one batch tile."""
    L, H = n_layers, hidden
    LH = L * H

    x = x_ref[...].astype(jnp.float32)                       # (BM, D)
    bm = x.shape[0]

    def mat(a, w):
        # a: (BM, K) f32, w: (K, N) pre-oriented (never transposed) -> f32 acc.
        return lax.dot_general(a.astype(w.dtype), w, (((1,), (0,)), ((), ())),
                               preferred_element_type=jnp.float32)

    # ----- ONE stacked matmul for every x-only projection; bias folded in ----
    x1 = jnp.concatenate([x, jnp.ones((bm, 1), jnp.float32)], axis=1)  # (BM, D+1)
    xw = mat(x1, wfwd_ref[...])                               # (BM, 2LH) lane-aligned
    u_all = xw[:, :LH]                                        # u_k = x Wq_k^T
    # Hoisted off the serial chain: s_base_k = u_k^2 + (x Wl_k^T + b_k)
    s_base = u_all * u_all + xw[:, LH:]

    # ----- scalar head (1-wide) handled analytically, off the MXU path -------
    wq_last = wq_last_ref[...].astype(jnp.float32)            # (1, D)
    wl_last = wl_last_ref[...].astype(jnp.float32)            # (1, D)
    u_last = jnp.sum(x * wq_last, axis=1, keepdims=True)      # (BM, 1), XLU reduce

    # ----- forward serial Wz chain: only the L-1 matmuls remain serial -------
    gs = []
    z = None
    for k in range(L):
        s = s_base[:, k * H:(k + 1) * H]
        if k > 0:
            s = s + mat(z, wzf_ref[k - 1])                    # z @ Wz_{k-1}^T (pre-T)
        g = jnp.where(s > 0, 1.0, slope)                      # leaky_relu'(s)
        z = g * s                                             # == leaky_relu(s)
        gs.append(g)

    # ----- backward: serial dz chain, then ONE stacked dx matmul -------------
    dz = jnp.broadcast_to(wz_last_ref[...].astype(jnp.float32), (bm, H))
    ds = [None] * L
    for k in range(L - 1, -1, -1):
        d = dz * gs[k]
        ds[k] = d
        if k > 0:
            dz = mat(d, wzb_ref[k - 1])                       # ds_k @ Wz_{k-1}

    ds_all = jnp.concatenate(ds, axis=1)                      # (BM, LH)
    # Columns of G line up with the rows of W_bwd = [Wq rows | Wl rows]:
    G = jnp.concatenate([2.0 * u_all * ds_all, ds_all], axis=1)   # (BM, 2LH)
    dx = mat(G, wbwd_ref[...])                                # (BM, D)

    # analytic scalar-head gradient: d/dx[(x.q)^2 + x.wl] = 2 (x.q) q + wl
    dx = dx + 2.0 * u_last * wq_last + wl_last

    out_ref[...] = ((1.0 - sc) * dx + sc * x).astype(out_ref.dtype)


def _pick_bm(batch):
    """Generation-aware batch tile: one grid step per TensorCore, capped at 512."""
    try:
        kind = jax.devices()[0].device_kind.lower()
    except Exception:
        kind = ""
    n_tc = 2 if "v7" in kind else 1            # v7x: two TensorCores share the grid
    bm = batch
    if n_tc > 1 and batch % (8 * n_tc) == 0:
        bm = batch // n_tc                     # keep both TensorCores busy
    # Cap the tile; the working set is tiny so bigger only costs vreg pressure.
    while bm > 512 and batch % (bm // 2) == 0 and (bm // 2) % 8 == 0:
        bm //= 2
    return bm


def icnn_forward(x, Wq, Wl, bl, Wz, wq_last, wl_last, wz_last, *,
                 n_layers, slope=0.2, strong_convexity=0.5, bm=None,
                 matmul_dtype=jnp.bfloat16):
    B, in_dim = x.shape
    L, H = n_layers, Wq.shape[1]
    assert L >= 2, "kernel assumes at least one hidden->hidden Wz layer"
    if bm is None:
        bm = _pick_bm(B)
    bm = min(bm, B)
    assert B % bm == 0, "batch must be divisible by the batch tile"
    LH = L * H

    # Stack every x-only projection; fold the per-layer bias in as an extra row
    # driven by a ones column appended to x.  Forward and backward each get a
    # pre-oriented copy so no dot has a transposed RHS.
    Wq_flat = Wq.reshape(LH, in_dim)
    Wl_flat = Wl.reshape(LH, in_dim)
    W_stack = jnp.concatenate([Wq_flat, Wl_flat], axis=0)                 # (2LH, D)
    bias_row = jnp.concatenate(
        [jnp.zeros((1, LH), jnp.float32), bl.reshape(1, LH)], axis=1)     # (1, 2LH)
    W_fwd_T = jnp.concatenate([W_stack.T, bias_row], axis=0).astype(matmul_dtype)  # (D+1, 2LH)
    W_bwd = W_stack.astype(matmul_dtype)                                  # (2LH, D)
    Wz_fwd = jnp.transpose(Wz, (0, 2, 1)).astype(matmul_dtype)            # Wz_k^T (fwd chain)
    Wz_bwd = Wz.astype(matmul_dtype)                                      # Wz_k   (bwd chain)

    # Advisory cost estimate so XLA schedules around this tiny kernel.
    flops = (2 * B * (in_dim + 1) * 2 * LH          # stacked forward x-projection
             + 4 * B * (L - 1) * H * H              # forward + backward Wz chains
             + 2 * B * 2 * LH * in_dim)             # stacked backward dx contraction
    wbytes = jnp.dtype(matmul_dtype).itemsize
    xbytes = jnp.dtype(x.dtype).itemsize
    bytes_accessed = int(
        2 * B * in_dim * xbytes
        + (W_fwd_T.size + W_bwd.size + Wz_fwd.size + Wz_bwd.size) * wbytes
        + (wz_last.size + wq_last.size + wl_last.size) * 4)
    cost = pl.CostEstimate(flops=int(flops), transcendentals=0,
                           bytes_accessed=bytes_accessed)

    kernel = functools.partial(icnn_grad_kernel, n_layers=L, hidden=H,
                               slope=slope, sc=strong_convexity)
    return pl.pallas_call(
        kernel,
        out_shape=jax.ShapeDtypeStruct((B, in_dim), x.dtype),
        grid_spec=pltpu.PrefetchScalarGridSpec(
            num_scalar_prefetch=0,
            grid=(B // bm,),
            in_specs=[
                pl.BlockSpec((bm, in_dim), lambda i: (i, 0)),     # x tile
                pl.BlockSpec(W_fwd_T.shape, lambda i: (0, 0)),    # stacked fwd weights (+bias row)
                pl.BlockSpec(W_bwd.shape, lambda i: (0, 0)),      # stacked bwd weights
                pl.BlockSpec(Wz_fwd.shape, lambda i: (0, 0, 0)),  # (L-1,H,H) Wz^T
                pl.BlockSpec(Wz_bwd.shape, lambda i: (0, 0, 0)),  # (L-1,H,H) Wz
                pl.BlockSpec(wz_last.shape, lambda i: (0, 0)),    # (1,H)
                pl.BlockSpec(wq_last.shape, lambda i: (0, 0)),    # (1,D)
                pl.BlockSpec(wl_last.shape, lambda i: (0, 0)),    # (1,D)
            ],
            out_specs=pl.BlockSpec((bm, in_dim), lambda i: (i, 0)),
        ),
        compiler_params=pltpu.CompilerParams(
            dimension_semantics=("parallel",),        # batch tiles shard across TCs (v7x)
            vmem_limit_bytes=32 * 1024 * 1024),       # ample; working set is a few MB
        cost_estimate=cost,
    )(x, W_fwd_T, W_bwd, Wz_fwd, Wz_bwd, wz_last, wq_last, wl_last)


# ------------------------- pure-JAX reference (for validation) ---------------
def _scalar_ref(x, Wq, Wl, bl, Wz, wq_last, wl_last, wz_last, n_layers, slope):
    def lrelu(s):
        return jnp.where(s > 0, s, slope * s)
    z = lrelu((x @ Wq[0].T) ** 2 + x @ Wl[0].T + bl[0, 0])
    for k in range(1, n_layers):
        z = lrelu(z @ Wz[k - 1].T + (x @ Wq[k].T) ** 2 + x @ Wl[k].T + bl[k, 0])
    return z @ wz_last.T + (x @ wq_last.T) ** 2 + x @ wl_last.T   # (B, 1)


def _forward_ref(x, params, n_layers, slope, sc):
    grad = jax.grad(lambda xx: _scalar_ref(xx, *params, n_layers, slope).sum())(x)
    return (1.0 - sc) * grad + sc * x


if __name__ == "__main__":
    # ICNN(in_dim=10, hidden=64) with 4 effective hidden layers.
    in_dim, hidden, n_layers = 10, 64, 4
    batch = 256
    slope, sc = 0.2, 0.5

    key = jax.random.PRNGKey(0)
    k = jax.random.split(key, 8)

    # Deterministic synthetic parameters (wz weights positive, mimicking
    # ICNN.initialize_weights: exp(N(-4, 0.1))).
    Wq = (jax.random.normal(k[0], (n_layers, hidden, in_dim)) * 0.3).astype(jnp.float32)
    Wl = (jax.random.normal(k[1], (n_layers, hidden, in_dim)) * 0.3).astype(jnp.float32)
    bl = (jax.random.normal(k[2], (n_layers, 1, hidden)) * 0.1).astype(jnp.float32)
    Wz = jnp.exp(jax.random.normal(k[3], (n_layers - 1, hidden, hidden)) * 0.1 - 4.0).astype(jnp.float32)
    wq_last = (jax.random.normal(k[4], (1, in_dim)) * 0.3).astype(jnp.float32)
    wl_last = (jax.random.normal(k[5], (1, in_dim)) * 0.3).astype(jnp.float32)
    wz_last = jnp.exp(jax.random.normal(k[6], (1, hidden)) * 0.1 - 4.0).astype(jnp.float32)
    x = jax.random.normal(k[7], (batch, in_dim), dtype=jnp.float32)

    params = (Wq, Wl, bl, Wz, wq_last, wl_last, wz_last)
    ref = jax.block_until_ready(_forward_ref(x, params, n_layers, slope, sc))

    # Strict check: f32 MXU path against jax.grad of the reference.
    out_f32 = jax.block_until_ready(
        icnn_forward(x, *params, n_layers=n_layers, slope=slope,
                     strong_convexity=sc, matmul_dtype=jnp.float32))
    assert out_f32.shape == (batch, in_dim)
    if not jnp.allclose(out_f32, ref, atol=2e-4, rtol=2e-4):
        err = float(jnp.max(jnp.abs(out_f32 - ref)))
        raise AssertionError(f"f32 Pallas ICNN mismatch vs jax.grad (max abs err {err})")

    # Production default: bf16 MXU inputs (f32 accumulation); loose tolerance
    # because the quadratic term squares a bf16-rounded product.
    out = jax.block_until_ready(
        icnn_forward(x, *params, n_layers=n_layers, slope=slope,
                     strong_convexity=sc))
    if not jnp.allclose(out, ref, atol=5e-2, rtol=5e-2):
        err = float(jnp.max(jnp.abs(out - ref)))
        raise AssertionError(f"bf16-MXU Pallas ICNN mismatch (max abs err {err})")

    print("KERNEL_OK")
</pallas_src>

<mosaic_0001>
module attributes {stable_mosaic.version = 11 : i64} {
  func.func @icnn_grad_kernel(%arg0: i32, %arg1: memref<256x10xf32, #tpu.memory_space<vmem>>, %arg2: memref<11x512xf32, #tpu.memory_space<vmem>>, %arg3: memref<512x10xf32, #tpu.memory_space<vmem>>, %arg4: memref<3x64x64xf32, #tpu.memory_space<vmem>>, %arg5: memref<3x64x64xf32, #tpu.memory_space<vmem>>, %arg6: memref<1x64xf32, #tpu.memory_space<vmem>>, %arg7: memref<1x10xf32, #tpu.memory_space<vmem>>, %arg8: memref<1x10xf32, #tpu.memory_space<vmem>>, %arg9: memref<256x10xf32, #tpu.memory_space<vmem>>) attributes {dimension_semantics = [#tpu.dimension_semantics<parallel>], iteration_bounds = array<i64: 1>, scalar_prefetch = 0 : i64, scratch_operands = 0 : i64, tpu.core_type = #tpu.core_type<tc>, window_params = [{transform_indices = @transform_0, window_bounds = array<i64: 256, 10>}, {pipeline_mode = #tpu.pipeline_mode<synchronous>, transform_indices = @transform_1, window_bounds = array<i64: 11, 512>}, {pipeline_mode = #tpu.pipeline_mode<synchronous>, transform_indices = @transform_2, window_bounds = array<i64: 512, 10>}, {pipeline_mode = #tpu.pipeline_mode<synchronous>, transform_indices = @transform_3, window_bounds = array<i64: 3, 64, 64>}, {pipeline_mode = #tpu.pipeline_mode<synchronous>, transform_indices = @transform_4, window_bounds = array<i64: 3, 64, 64>}, {pipeline_mode = #tpu.pipeline_mode<synchronous>, transform_indices = @transform_5, window_bounds = array<i64: 1, 64>}, {pipeline_mode = #tpu.pipeline_mode<synchronous>, transform_indices = @transform_6, window_bounds = array<i64: 1, 10>}, {pipeline_mode = #tpu.pipeline_mode<synchronous>, transform_indices = @transform_7, window_bounds = array<i64: 1, 10>}, {transform_indices = @transform_8, window_bounds = array<i64: 256, 10>}]} {
    %c0 = arith.constant 0 : index
    %c0_0 = arith.constant 0 : index
    %0 = vector.load %arg1[%c0, %c0_0] : memref<256x10xf32, #tpu.memory_space<vmem>>, vector<256x10xf32>
    %cst = arith.constant 1.000000e+00 : f32
    %1 = vector.broadcast %cst : f32 to vector<256x1xf32>
    %2 = tpu.concatenate %0, %1 in 1 : vector<256x10xf32>, vector<256x1xf32> -> vector<256x11xf32>
    %c0_1 = arith.constant 0 : index
    %c0_2 = arith.constant 0 : index
    %3 = vector.load %arg2[%c0_1, %c0_2] : memref<11x512xf32, #tpu.memory_space<vmem>>, vector<11x512xf32>
    %cst_3 = arith.constant dense<0.000000e+00> : vector<256x512xf32>
    %4 = tpu.matmul %2, %3, %cst_3 {dimension_numbers = #tpu.dot_dimension_numbers<[1], [0], [0], [1], [0, 0, 1, 1], [], []>} : vector<256x11xf32>, vector<11x512xf32>, vector<256x512xf32> -> vector<256x512xf32>
    %5 = vector.extract_strided_slice %4 {offsets = [0, 0], sizes = [256, 256], strides = [1, 1]} : vector<256x512xf32> to vector<256x256xf32>
    %6 = arith.mulf %5, %5 : vector<256x256xf32>
    %7 = vector.extract_strided_slice %4 {offsets = [0, 256], sizes = [256, 256], strides = [1, 1]} : vector<256x512xf32> to vector<256x256xf32>
    %8 = arith.addf %6, %7 : vector<256x256xf32>
    %c0_4 = arith.constant 0 : index
    %c0_5 = arith.constant 0 : index
    %9 = vector.load %arg7[%c0_4, %c0_5] : memref<1x10xf32, #tpu.memory_space<vmem>>, vector<1x10xf32>
    %c0_6 = arith.constant 0 : index
    %c0_7 = arith.constant 0 : index
    %10 = vector.load %arg8[%c0_6, %c0_7] : memref<1x10xf32, #tpu.memory_space<vmem>>, vector<1x10xf32>
    %11 = vector.broadcast %9 : vector<1x10xf32> to vector<256x10xf32>
    %12 = arith.mulf %0, %11 : vector<256x10xf32>
    %cst_8 = arith.constant dense<0.000000e+00> : vector<256xf32>
    %13 = vector.multi_reduction <add>, %12, %cst_8 [1] : vector<256x10xf32> to vector<256xf32>
    %14 = vector.shape_cast %13 : vector<256xf32> to vector<256x1xf32>
    %15 = vector.extract_strided_slice %8 {offsets = [0, 0], sizes = [256, 64], strides = [1, 1]} : vector<256x256xf32> to vector<256x64xf32>
    %cst_9 = arith.constant 0.000000e+00 : f32
    %16 = vector.broadcast %cst_9 : f32 to vector<256x64xf32>
    %17 = arith.cmpf ogt, %15, %16 : vector<256x64xf32>
    %cst_10 = arith.constant 1.000000e+00 : f32
    %cst_11 = arith.constant 2.000000e-01 : f32
    %18 = vector.broadcast %cst_10 : f32 to vector<256x64xf32>
    %19 = vector.broadcast %cst_11 : f32 to vector<256x64xf32>
    %20 = arith.select %17, %18, %19 : vector<256x64xi1>, vector<256x64xf32>
    %21 = arith.mulf %20, %15 : vector<256x64xf32>
    %22 = vector.extract_strided_slice %8 {offsets = [0, 64], sizes = [256, 64], strides = [1, 1]} : vector<256x256xf32> to vector<256x64xf32>
    %c0_12 = arith.constant 0 : index
    %c0_13 = arith.constant 0 : index
    %c0_14 = arith.constant 0 : index
    %23 = vector.load %arg4[%c0_12, %c0_13, %c0_14] : memref<3x64x64xf32, #tpu.memory_space<vmem>>, vector<1x64x64xf32>
    %24 = vector.shape_cast %23 : vector<1x64x64xf32> to vector<64x64xf32>
    %cst_15 = arith.constant dense<0.000000e+00> : vector<256x64xf32>
    %25 = tpu.matmul %21, %24, %cst_15 {dimension_numbers = #tpu.dot_dimension_numbers<[1], [0], [0], [1], [0, 0, 1, 1], [], []>} : vector<256x64xf32>, vector<64x64xf32>, vector<256x64xf32> -> vector<256x64xf32>
    %26 = arith.addf %22, %25 : vector<256x64xf32>
    %cst_16 = arith.constant 0.000000e+00 : f32
    %27 = vector.broadcast %cst_16 : f32 to vector<256x64xf32>
    %28 = arith.cmpf ogt, %26, %27 : vector<256x64xf32>
    %cst_17 = arith.constant 1.000000e+00 : f32
    %cst_18 = arith.constant 2.000000e-01 : f32
    %29 = vector.broadcast %cst_17 : f32 to vector<256x64xf32>
    %30 = vector.broadcast %cst_18 : f32 to vector<256x64xf32>
    %31 = arith.select %28, %29, %30 : vector<256x64xi1>, vector<256x64xf32>
    %32 = arith.mulf %31, %26 : vector<256x64xf32>
    %33 = vector.extract_strided_slice %8 {offsets = [0, 128], sizes = [256, 64], strides = [1, 1]} : vector<256x256xf32> to vector<256x64xf32>
    %c1 = arith.constant 1 : index
    %c0_19 = arith.constant 0 : index
    %c0_20 = arith.constant 0 : index
    %34 = vector.load %arg4[%c1, %c0_19, %c0_20] : memref<3x64x64xf32, #tpu.memory_space<vmem>>, vector<1x64x64xf32>
    %35 = vector.shape_cast %34 : vector<1x64x64xf32> to vector<64x64xf32>
    %cst_21 = arith.constant dense<0.000000e+00> : vector<256x64xf32>
    %36 = tpu.matmul %32, %35, %cst_21 {dimension_numbers = #tpu.dot_dimension_numbers<[1], [0], [0], [1], [0, 0, 1, 1], [], []>} : vector<256x64xf32>, vector<64x64xf32>, vector<256x64xf32> -> vector<256x64xf32>
    %37 = arith.addf %33, %36 : vector<256x64xf32>
    %cst_22 = arith.constant 0.000000e+00 : f32
    %38 = vector.broadcast %cst_22 : f32 to vector<256x64xf32>
    %39 = arith.cmpf ogt, %37, %38 : vector<256x64xf32>
    %cst_23 = arith.constant 1.000000e+00 : f32
    %cst_24 = arith.constant 2.000000e-01 : f32
    %40 = vector.broadcast %cst_23 : f32 to vector<256x64xf32>
    %41 = vector.broadcast %cst_24 : f32 to vector<256x64xf32>
    %42 = arith.select %39, %40, %41 : vector<256x64xi1>, vector<256x64xf32>
    %43 = arith.mulf %42, %37 : vector<256x64xf32>
    %44 = vector.extract_strided_slice %8 {offsets = [0, 192], sizes = [256, 64], strides = [1, 1]} : vector<256x256xf32> to vector<256x64xf32>
    %c2 = arith.constant 2 : index
    %c0_25 = arith.constant 0 : index
    %c0_26 = arith.constant 0 : index
    %45 = vector.load %arg4[%c2, %c0_25, %c0_26] : memref<3x64x64xf32, #tpu.memory_space<vmem>>, vector<1x64x64xf32>
    %46 = vector.shape_cast %45 : vector<1x64x64xf32> to vector<64x64xf32>
    %cst_27 = arith.constant dense<0.000000e+00> : vector<256x64xf32>
    %47 = tpu.matmul %43, %46, %cst_27 {dimension_numbers = #tpu.dot_dimension_numbers<[1], [0], [0], [1], [0, 0, 1, 1], [], []>} : vector<256x64xf32>, vector<64x64xf32>, vector<256x64xf32> -> vector<256x64xf32>
    %48 = arith.addf %44, %47 : vector<256x64xf32>
    %cst_28 = arith.constant 0.000000e+00 : f32
    %49 = vector.broadcast %cst_28 : f32 to vector<256x64xf32>
    %50 = arith.cmpf ogt, %48, %49 : vector<256x64xf32>
    %cst_29 = arith.constant 1.000000e+00 : f32
    %cst_30 = arith.constant 2.000000e-01 : f32
    %51 = vector.broadcast %cst_29 : f32 to vector<256x64xf32>
    %52 = vector.broadcast %cst_30 : f32 to vector<256x64xf32>
    %53 = arith.select %50, %51, %52 : vector<256x64xi1>, vector<256x64xf32>
    %c0_31 = arith.constant 0 : index
    %c0_32 = arith.constant 0 : index
    %54 = vector.load %arg6[%c0_31, %c0_32] : memref<1x64xf32, #tpu.memory_space<vmem>>, vector<1x64xf32>
    %55 = vector.shape_cast %54 : vector<1x64xf32> to vector<1x64xf32>
    %56 = vector.broadcast %55 : vector<1x64xf32> to vector<256x64xf32>
    %57 = arith.mulf %56, %53 : vector<256x64xf32>
    %c2_33 = arith.constant 2 : index
    %c0_34 = arith.constant 0 : index
    %c0_35 = arith.constant 0 : index
    %58 = vector.load %arg5[%c2_33, %c0_34, %c0_35] : memref<3x64x64xf32, #tpu.memory_space<vmem>>, vector<1x64x64xf32>
    %59 = vector.shape_cast %58 : vector<1x64x64xf32> to vector<64x64xf32>
    %cst_36 = arith.constant dense<0.000000e+00> : vector<256x64xf32>
    %60 = tpu.matmul %57, %59, %cst_36 {dimension_numbers = #tpu.dot_dimension_numbers<[1], [0], [0], [1], [0, 0, 1, 1], [], []>} : vector<256x64xf32>, vector<64x64xf32>, vector<256x64xf32> -> vector<256x64xf32>
    %61 = arith.mulf %60, %42 : vector<256x64xf32>
    %c1_37 = arith.constant 1 : index
    %c0_38 = arith.constant 0 : index
    %c0_39 = arith.constant 0 : index
    %62 = vector.load %arg5[%c1_37, %c0_38, %c0_39] : memref<3x64x64xf32, #tpu.memory_space<vmem>>, vector<1x64x64xf32>
    %63 = vector.shape_cast %62 : vector<1x64x64xf32> to vector<64x64xf32>
    %cst_40 = arith.constant dense<0.000000e+00> : vector<256x64xf32>
    %64 = tpu.matmul %61, %63, %cst_40 {dimension_numbers = #tpu.dot_dimension_numbers<[1], [0], [0], [1], [0, 0, 1, 1], [], []>} : vector<256x64xf32>, vector<64x64xf32>, vector<256x64xf32> -> vector<256x64xf32>
    %65 = arith.mulf %64, %31 : vector<256x64xf32>
    %c0_41 = arith.constant 0 : index
    %c0_42 = arith.constant 0 : index
    %c0_43 = arith.constant 0 : index
    %66 = vector.load %arg5[%c0_41, %c0_42, %c0_43] : memref<3x64x64xf32, #tpu.memory_space<vmem>>, vector<1x64x64xf32>
    %67 = vector.shape_cast %66 : vector<1x64x64xf32> to vector<64x64xf32>
    %cst_44 = arith.constant dense<0.000000e+00> : vector<256x64xf32>
    %68 = tpu.matmul %65, %67, %cst_44 {dimension_numbers = #tpu.dot_dimension_numbers<[1], [0], [0], [1], [0, 0, 1, 1], [], []>} : vector<256x64xf32>, vector<64x64xf32>, vector<256x64xf32> -> vector<256x64xf32>
    %69 = arith.mulf %68, %20 : vector<256x64xf32>
    %70 = tpu.concatenate %69, %65, %61, %57 in 1 : vector<256x64xf32>, vector<256x64xf32>, vector<256x64xf32>, vector<256x64xf32> -> vector<256x256xf32>
    %cst_45 = arith.constant 2.000000e+00 : f32
    %71 = vector.broadcast %cst_45 : f32 to vector<256x256xf32>
    %72 = arith.mulf %71, %5 : vector<256x256xf32>
    %73 = arith.mulf %72, %70 : vector<256x256xf32>
    %74 = tpu.concatenate %73, %70 in 1 : vector<256x256xf32>, vector<256x256xf32> -> vector<256x512xf32>
    %c0_46 = arith.constant 0 : index
    %c0_47 = arith.constant 0 : index
    %75 = vector.load %arg3[%c0_46, %c0_47] : memref<512x10xf32, #tpu.memory_space<vmem>>, vector<512x10xf32>
    %cst_48 = arith.constant dense<0.000000e+00> : vector<256x10xf32>
    %76 = tpu.matmul %74, %75, %cst_48 {dimension_numbers = #tpu.dot_dimension_numbers<[1], [0], [0], [1], [0, 0, 1, 1], [], []>} : vector<256x512xf32>, vector<512x10xf32>, vector<256x10xf32> -> vector<256x10xf32>
    %cst_49 = arith.constant 2.000000e+00 : f32
    %77 = vector.broadcast %cst_49 : f32 to vector<256x1xf32>
    %78 = arith.mulf %77, %14 : vector<256x1xf32>
    %79 = vector.broadcast %78 : vector<256x1xf32> to vector<256x10xf32>
    %80 = vector.broadcast %9 : vector<1x10xf32> to vector<256x10xf32>
    %81 = arith.mulf %79, %80 : vector<256x10xf32>
    %82 = arith.addf %76, %81 : vector<256x10xf32>
    %83 = vector.broadcast %10 : vector<1x10xf32> to vector<256x10xf32>
    %84 = arith.addf %82, %83 : vector<256x10xf32>
    %cst_50 = arith.constant 5.000000e-01 : f32
    %85 = vector.broadcast %cst_50 : f32 to vector<256x10xf32>
    %86 = arith.mulf %85, %84 : vector<256x10xf32>
    %cst_51 = arith.constant 5.000000e-01 : f32
    %87 = vector.broadcast %cst_51 : f32 to vector<256x10xf32>
    %88 = arith.mulf %87, %0 : vector<256x10xf32>
    %89 = arith.addf %86, %88 : vector<256x10xf32>
    %c0_52 = arith.constant 0 : index
    %c0_53 = arith.constant 0 : index
    %90 = vector.load %arg9[%c0_52, %c0_53] : memref<256x10xf32, #tpu.memory_space<vmem>>, vector<256x10xf32>
    tpu.vector_store %arg9[%c0_52, %c0_53], %89 {strides = array<i32>} : memref<256x10xf32, #tpu.memory_space<vmem>>, vector<256x10xf32>,
    return
  }
  func.func @transform_0(%arg0: i32) -> (i32, i32) {
    %c0_i32 = arith.constant 0 : i32
    %c0_i32_0 = arith.constant 0 : i32
    return %arg0, %c0_i32 : i32, i32
  }
  func.func @transform_1(%arg0: i32) -> (i32, i32) {
    %c0_i32 = arith.constant 0 : i32
    %c0_i32_0 = arith.constant 0 : i32
    %c0_i32_1 = arith.constant 0 : i32
    return %c0_i32, %c0_i32_0 : i32, i32
  }
  func.func @transform_2(%arg0: i32) -> (i32, i32) {
    %c0_i32 = arith.constant 0 : i32
    %c0_i32_0 = arith.constant 0 : i32
    %c0_i32_1 = arith.constant 0 : i32
    return %c0_i32, %c0_i32_0 : i32, i32
  }
  func.func @transform_3(%arg0: i32) -> (i32, i32, i32) {
    %c0_i32 = arith.constant 0 : i32
    %c0_i32_0 = arith.constant 0 : i32
    %c0_i32_1 = arith.constant 0 : i32
    %c0_i32_2 = arith.constant 0 : i32
    return %c0_i32, %c0_i32_0, %c0_i32_1 : i32, i32, i32
  }
  func.func @transform_4(%arg0: i32) -> (i32, i32, i32) {
    %c0_i32 = arith.constant 0 : i32
    %c0_i32_0 = arith.constant 0 : i32
    %c0_i32_1 = arith.constant 0 : i32
    %c0_i32_2 = arith.constant 0 : i32
    return %c0_i32, %c0_i32_0, %c0_i32_1 : i32, i32, i32
  }
  func.func @transform_5(%arg0: i32) -> (i32, i32) {
    %c0_i32 = arith.constant 0 : i32
    %c0_i32_0 = arith.constant 0 : i32
    %c0_i32_1 = arith.constant 0 : i32
    return %c0_i32, %c0_i32_0 : i32, i32
  }
  func.func @transform_6(%arg0: i32) -> (i32, i32) {
    %c0_i32 = arith.constant 0 : i32
    %c0_i32_0 = arith.constant 0 : i32
    %c0_i32_1 = arith.constant 0 : i32
    return %c0_i32, %c0_i32_0 : i32, i32
  }
  func.func @transform_7(%arg0: i32) -> (i32, i32) {
    %c0_i32 = arith.constant 0 : i32
    %c0_i32_0 = arith.constant 0 : i32
    %c0_i32_1 = arith.constant 0 : i32
    return %c0_i32, %c0_i32_0 : i32, i32
  }
  func.func @transform_8(%arg0: i32) -> (i32, i32) {
    %c0_i32 = arith.constant 0 : i32
    %c0_i32_0 = arith.constant 0 : i32
    return %arg0, %c0_i32 : i32, i32
  }
}

</mosaic_0001>

<bundles_post_ra>
// kernel: tpu_custom_call.1
= control target key start
LH: loop header
LB: loop body
LE: loop exit
PB: predicated region body
PF: predicated region fallthrough
CT: control target
= control target key end

     0   :  { %vm199_vm0 = vcmask 1042432   ;;  %vm61_vm1 = vcmask 80896   ;;  %v9524_v3 = vmov 0.0   ;;  %vm102_vm2 = vcmask 89088   ;;  %s6247_s11 = smov 64   ;;  %s9515_s1 = inlined_call_operand.vmem [shape: f32[11,512], index: 1, kind: input, shape index: {}]   ;;  %s9516_s0 = inlined_call_operand.vmem [shape: f32[256,10], index: 0, kind: input, shape index: {}]   ;;  %s9517_s3 = inlined_call_operand.vmem [shape: f32[3,64,64], index: 3, kind: input, shape index: {}]   ;;  %s9518_s4 = inlined_call_operand.vmem [shape: f32[3,64,64], index: 4, kind: input, shape index: {}]   ;;  %s9519_s5 = inlined_call_operand.vmem [shape: f32[1,64], index: 5, kind: input, shape index: {}]   ;;  %s9520_s2 = inlined_call_operand.vmem [shape: f32[512,10], index: 2, kind: input, shape index: {}]   ;;  %s9521_s6 = inlined_call_operand.vmem [shape: f32[1,10], index: 6, kind: input, shape index: {}]   ;;  %s9522_s7 = inlined_call_operand.vmem [shape: f32[1,10], index: 7, kind: input, shape index: {}]   ;;  %s9523_s8 = inlined_call_operand.vmem [shape: f32[256,10], index: 8, kind: output, shape index: {}]  }
   0x1   :  { %v99_v0 = vld [vmem:[%s9515_s1 + $0x28] sm:$0x7]  ;;  %v101_v1 = vld [vmem:[%s9515_s1 + $0x38] sm:$0x7]  ;;  %v98_v2 = vld [vmem:[%s9515_s1 + $0x20] sm:$0x7]  ;;  %276 = vmatprep.mubr.f32.mxu0 %v9524_v3  ;;  %533 = vmatprep.mubr.f32.mxu1 %v9524_v3 }
   0x2   :  { %5260 = vmatprep.subr.msk.mxu0 %vm199_vm0, %v99_v0  ;;  %5294 = vmatprep.subr.msk.mxu1 %vm199_vm0, %v101_v1  ;;  %v100_v4 = vld [vmem:[%s9515_s1 + $0x30] sm:$0x7]  ;;  %v95_v5 = vld [vmem:[%s9515_s1 + $0x8] sm:$0xff]  ;;  %v97_v6 = vld [vmem:[%s9515_s1 + $0x18] sm:$0xff]  ;;  %vm1094_vm4 = vcmask 523264  }
   0x3   :  { %5261 = vmatpush1.msk.msra.mxu0 %vm199_vm0, %v98_v2  ;;  %5295 = vmatpush1.msk.msra.mxu1 %vm199_vm0, %v100_v4  ;;  %v94_v7 = vld [vmem:[%s9515_s1] sm:$0xff]  ;;  %v96_v8 = vld [vmem:[%s9515_s1 + $0x10] sm:$0xff]  ;;  %v30_v11 = vld [vmem:[%s9516_s0 + $0x8] sm:$0xff] }
   0x4   :  { %v29_v9 = vld [vmem:[%s9516_s0] sm:$0xff]  ;;  %242 = vmatprep.subr.mxu0 %v95_v5  ;;  %499 = vmatprep.subr.mxu1 %v97_v6  ;;  %v63_v12 = vsel %vm61_vm1, %v30_v11, 1.0  ;;  %v31_v13 = vld [vmem:[%s9516_s0 + $0x10] sm:$0xff]  ;;  %v32_v15 = vld [vmem:[%s9516_s0 + $0x18] sm:$0xff] }
   0x5   :  { %v62_v10 = vsel %vm61_vm1, %v29_v9, 1.0  ;;  %243 = vmatpush1.msra.mxu0 %v94_v7  ;;  %500 = vmatpush1.msra.mxu1 %v96_v8  ;;  %v64_v14 = vsel %vm61_vm1, %v31_v13, 1.0  ;;  %v1093_v16 = vld [vmem:[%s9517_s3 + $0x38] sm:$0xff]  ;;  %v65_v17 = vsel %vm61_vm1, %v32_v15, 1.0  ;;  %v33_v18 = vld [vmem:[%s9516_s0 + $0x20] sm:$0xff]  ;;  %v1092_v19 = vld [vmem:[%s9517_s3 + $0x30] sm:$0xff] }
   0x6   :  { %5262 = vmatmul.mubr.msk.f32.vlgmr.msra.gmra.mxu0 %vm102_vm2, %v62_v10  ;;  %5296 = vmatmul.mubr.msk.f32.vlgmr.msra.gmra.mxu1 %vm102_vm2, %v62_v10  ;;  %v66_v20 = vsel %vm61_vm1, %v33_v18, 1.0  ;;  %v34_v21 = vld [vmem:[%s9516_s0 + $0x28] sm:$0xff]  ;;  %v35_v24 = vld [vmem:[%s9516_s0 + $0x30] sm:$0xff]  ;;  %v1090_v25 = vld [vmem:[%s9517_s3 + $0x20] sm:$0xff] }
   0x7   :  { %282 = vmatprep.mubr.f32.mxu0 %v9524_v3  ;;  %539 = vmatprep.mubr.f32.mxu1 %v9524_v3  ;;  %v1091_v22 = vld [vmem:[%s9517_s3 + $0x28] sm:$0xff]  ;;  %v67_v23 = vsel %vm61_vm1, %v34_v21, 1.0  ;;  %v68_v26 = vsel %vm61_vm1, %v35_v24, 1.0  ;;  %v36_v27 = vld [vmem:[%s9516_s0 + $0x38] sm:$0xff]  ;;  %v37_v30 = vld [vmem:[%s9516_s0 + $0x40] sm:$0xff] }
   0x8   :  { %5795 = vmatprep.subr.mxu0 %v1093_v16  ;;  %v1089_v28 = vld [vmem:[%s9517_s3 + $0x18] sm:$0xff]  ;;  %v69_v29 = vsel %vm61_vm1, %v36_v27, 1.0  ;;  %v1088_v31 = vld [vmem:[%s9517_s3 + $0x10] sm:$0xff]  ;;  %v70_v32 = vsel %vm61_vm1, %v37_v30, 1.0  ;;  %v38_v33 = vld [vmem:[%s9516_s0 + $0x48] sm:$0xff] }
   0x9   :  { %5796 = vmatpush3.msra.mxu0 %v1093_v16  ;;  %v1087_v34 = vld [vmem:[%s9517_s3 + $0x8] sm:$0xff]  ;;  %v71_v35 = vsel %vm61_vm1, %v38_v33, 1.0  ;;  %v39_v36 = vld [vmem:[%s9516_s0 + $0x50] sm:$0xff]  ;;  %v1086_v37 = vld [vmem:[%s9517_s3] sm:$0xff]  ;;  %v9606_v27 = vmov 0.2  }
   0xa   :  { %5263 = vmatmul.mubr.msk.f32.gmra.mxu0 %vm102_vm2, %v63_v12  ;;  %5297 = vmatmul.mubr.msk.f32.gmra.mxu1 %vm102_vm2, %v63_v12  ;;  %v72_v38 = vsel %vm61_vm1, %v39_v36, 1.0  ;;  %v40_v39 = vld [vmem:[%s9516_s0 + $0x58] sm:$0xff]  ;;  %v41_v41 = vld [vmem:[%s9516_s0 + $0x60] sm:$0xff]  ;;  %v42_v43 = vld [vmem:[%s9516_s0 + $0x68] sm:$0xff] }
   0xb   :  { %288 = vmatprep.mubr.f32.mxu0 %v9524_v3  ;;  %545 = vmatprep.mubr.f32.mxu1 %v9524_v3  ;;  %v73_v40 = vsel %vm61_vm1, %v40_v39, 1.0  ;;  %v74_v42 = vsel %vm61_vm1, %v41_v41, 1.0  ;;  %v75_v44 = vsel %vm61_vm1, %v42_v43, 1.0  ;;  %v43_v45 = vld [vmem:[%s9516_s0 + $0x70] sm:$0xff]  ;;  %v44_v47 = vld [vmem:[%s9516_s0 + $0x78] sm:$0xff]  ;;  %v45_v49 = vld [vmem:[%s9516_s0 + $0x80] sm:$0xff] }
   0xc   :  { %5797 = vmatprep.subr.mxu0 %v1092_v19  ;;  %v76_v46 = vsel %vm61_vm1, %v43_v45, 1.0  ;;  %v77_v48 = vsel %vm61_vm1, %v44_v47, 1.0  ;;  %v78_v50 = vsel %vm61_vm1, %v45_v49, 1.0  ;;  %v46_v51 = vld [vmem:[%s9516_s0 + $0x88] sm:$0xff]  ;;  %v47_v53 = vld [vmem:[%s9516_s0 + $0x90] sm:$0xff]  ;;  %v48_v55 = vld [vmem:[%s9516_s0 + $0x98] sm:$0xff] }
   0xd   :  { %5798 = vmatpush3.msra.mxu0 %v1092_v19  ;;  %v79_v52 = vsel %vm61_vm1, %v46_v51, 1.0  ;;  %v80_v54 = vsel %vm61_vm1, %v47_v53, 1.0  ;;  %v81_v56 = vsel %vm61_vm1, %v48_v55, 1.0  ;;  %v49_v57 = vld [vmem:[%s9516_s0 + $0xa0] sm:$0xff]  ;;  %v50_v59 = vld [vmem:[%s9516_s0 + $0xa8] sm:$0xff]  ;;  %v51_v61 = vld [vmem:[%s9516_s0 + $0xb0] sm:$0xff] }
   0xe   :  { %5264 = vmatmul.mubr.msk.f32.gmra.mxu0 %vm102_vm2, %v64_v14  ;;  %5298 = vmatmul.mubr.msk.f32.gmra.mxu1 %vm102_vm2, %v64_v14  ;;  %v82_v58 = vsel %vm61_vm1, %v49_v57, 1.0  ;;  %v83_v60 = vsel %vm61_vm1, %v50_v59, 1.0  ;;  %v84_v62 = vsel %vm61_vm1, %v51_v61, 1.0  ;;  %v52_v63 = vld [vmem:[%s9516_s0 + $0xb8] sm:$0xff]  ;;  %v53_v1 = vld [vmem:[%s9516_s0 + $0xc0] sm:$0xff]  ;;  %v54_v4 = vld [vmem:[%s9516_s0 + $0xc8] sm:$0xff] }
   0xf   :  { %294 = vmatprep.mubr.f32.mxu0 %v9524_v3  ;;  %551 = vmatprep.mubr.f32.mxu1 %v9524_v3  ;;  %v85_v0 = vsel %vm61_vm1, %v52_v63, 1.0  ;;  %v86_v2 = vsel %vm61_vm1, %v53_v1, 1.0  ;;  %v87_v5 = vsel %vm61_vm1, %v54_v4, 1.0  ;;  %v55_v6 = vld [vmem:[%s9516_s0 + $0xd0] sm:$0xff]  ;;  %v56_v8 = vld [vmem:[%s9516_s0 + $0xd8] sm:$0xff]  ;;  %v57_v10 = vld [vmem:[%s9516_s0 + $0xe0] sm:$0xff] }
  0x10   :  { %5799 = vmatprep.subr.mxu0 %v1091_v22  ;;  %v88_v7 = vsel %vm61_vm1, %v55_v6, 1.0  ;;  %v89_v9 = vsel %vm61_vm1, %v56_v8, 1.0  ;;  %v90_v11 = vsel %vm61_vm1, %v57_v10, 1.0  ;;  %v58_v12 = vld [vmem:[%s9516_s0 + $0xe8] sm:$0xff]  ;;  %v59_v14 = vld [vmem:[%s9516_s0 + $0xf0] sm:$0xff]  ;;  %v60_v16 = vld [vmem:[%s9516_s0 + $0xf8] sm:$0xff] }
  0x11   :  { %5800 = vmatpush3.msra.mxu0 %v1091_v22  ;;  %v91_v13 = vsel %vm61_vm1, %v58_v12, 1.0  ;;  %v92_v15 = vsel %vm61_vm1, %v59_v14, 1.0 }
  0x12   :  { %5265 = vmatmul.mubr.msk.f32.gmra.mxu0 %vm102_vm2, %v65_v17  ;;  %5299 = vmatmul.mubr.msk.f32.gmra.mxu1 %vm102_vm2, %v65_v17  ;;  %v93_v17 = vsel %vm61_vm1, %v60_v16, 1.0 }
  0x13   :  { %300 = vmatprep.mubr.f32.mxu0 %v9524_v3  ;;  %557 = vmatprep.mubr.f32.mxu1 %v9524_v3 }
  0x14   :  { %5801 = vmatprep.subr.mxu0 %v1090_v25 }
  0x15   :  { %5802 = vmatpush3.msra.mxu0 %v1090_v25 }
  0x16   :  { %5266 = vmatmul.mubr.msk.f32.gmra.mxu0 %vm102_vm2, %v66_v20  ;;  %5300 = vmatmul.mubr.msk.f32.gmra.mxu1 %vm102_vm2, %v66_v20 }
  0x17   :  { %306 = vmatprep.mubr.f32.mxu0 %v9524_v3  ;;  %563 = vmatprep.mubr.f32.mxu1 %v9524_v3 }
  0x18   :  { %5803 = vmatprep.subr.mxu0 %v1089_v28 }
  0x19   :  { %5804 = vmatpush3.msra.mxu0 %v1089_v28 }
  0x1a   :  { %5267 = vmatmul.mubr.msk.f32.gmra.mxu0 %vm102_vm2, %v67_v23  ;;  %5301 = vmatmul.mubr.msk.f32.gmra.mxu1 %vm102_vm2, %v67_v23 }
  0x1b   :  { %312 = vmatprep.mubr.f32.mxu0 %v9524_v3  ;;  %569 = vmatprep.mubr.f32.mxu1 %v9524_v3 }
  0x1c   :  { %5805 = vmatprep.subr.mxu0 %v1088_v31 }
  0x1d   :  { %5806 = vmatpush3.msra.mxu0 %v1088_v31 }
  0x1e   :  { %5268 = vmatmul.mubr.msk.f32.gmra.mxu0 %vm102_vm2, %v68_v26  ;;  %5302 = vmatmul.mubr.msk.f32.gmra.mxu1 %vm102_vm2, %v68_v26 }
  0x1f   :  { %318 = vmatprep.mubr.f32.mxu0 %v9524_v3  ;;  %575 = vmatprep.mubr.f32.mxu1 %v9524_v3 }
  0x20   :  { %5807 = vmatprep.subr.mxu0 %v1087_v34 }
  0x21   :  { %5808 = vmatpush3.msra.mxu0 %v1087_v34 }
  0x22   :  { %5269 = vmatmul.mubr.msk.f32.gmra.mxu0 %vm102_vm2, %v69_v29  ;;  %5303 = vmatmul.mubr.msk.f32.gmra.mxu1 %vm102_vm2, %v69_v29 }
  0x23   :  { %324 = vmatprep.mubr.f32.mxu0 %v9524_v3  ;;  %581 = vmatprep.mubr.f32.mxu1 %v9524_v3 }
  0x24   :  { %5809 = vmatprep.subr.mxu0 %v1086_v37 }
  0x25   :  { %5810 = vmatpush3.msra.mxu0 %v1086_v37 }
  0x26   :  { %5270 = vmatmul.mubr.msk.f32.gmra.mxu0 %vm102_vm2, %v70_v32  ;;  %5304 = vmatmul.mubr.msk.f32.gmra.mxu1 %vm102_vm2, %v70_v32 }
  0x27   :  { %330 = vmatprep.mubr.f32.mxu0 %v9524_v3  ;;  %587 = vmatprep.mubr.f32.mxu1 %v9524_v3 }
  0x2a   :  { %5271 = vmatmul.mubr.msk.f32.gmra.mxu0 %vm102_vm2, %v71_v35  ;;  %5305 = vmatmul.mubr.msk.f32.gmra.mxu1 %vm102_vm2, %v71_v35 }
  0x2b   :  { %336 = vmatprep.mubr.f32.mxu0 %v9524_v3  ;;  %593 = vmatprep.mubr.f32.mxu1 %v9524_v3 }
  0x2e   :  { %5272 = vmatmul.mubr.msk.f32.gmra.mxu0 %vm102_vm2, %v72_v38  ;;  %5306 = vmatmul.mubr.msk.f32.gmra.mxu1 %vm102_vm2, %v72_v38 }
  0x2f   :  { %342 = vmatprep.mubr.f32.mxu0 %v9524_v3  ;;  %599 = vmatprep.mubr.f32.mxu1 %v9524_v3 }
  0x32   :  { %5273 = vmatmul.mubr.msk.f32.gmra.mxu0 %vm102_vm2, %v73_v40  ;;  %5307 = vmatmul.mubr.msk.f32.gmra.mxu1 %vm102_vm2, %v73_v40 }
  0x33   :  { %348 = vmatprep.mubr.f32.mxu0 %v9524_v3  ;;  %605 = vmatprep.mubr.f32.mxu1 %v9524_v3 }
  0x36   :  { %5274 = vmatmul.mubr.msk.f32.gmra.mxu0 %vm102_vm2, %v74_v42  ;;  %5308 = vmatmul.mubr.msk.f32.gmra.mxu1 %vm102_vm2, %v74_v42 }
  0x37   :  { %354 = vmatprep.mubr.f32.mxu0 %v9524_v3  ;;  %611 = vmatprep.mubr.f32.mxu1 %v9524_v3 }
  0x3a   :  { %5275 = vmatmul.mubr.msk.f32.gmra.mxu0 %vm102_vm2, %v75_v44  ;;  %5309 = vmatmul.mubr.msk.f32.gmra.mxu1 %vm102_vm2, %v75_v44 }
  0x3b   :  { %360 = vmatprep.mubr.f32.mxu0 %v9524_v3  ;;  %617 = vmatprep.mubr.f32.mxu1 %v9524_v3 }
  0x3e   :  { %5276 = vmatmul.mubr.msk.f32.gmra.mxu0 %vm102_vm2, %v76_v46  ;;  %5310 = vmatmul.mubr.msk.f32.gmra.mxu1 %vm102_vm2, %v76_v46 }
  0x3f   :  { %366 = vmatprep.mubr.f32.mxu0 %v9524_v3  ;;  %623 = vmatprep.mubr.f32.mxu1 %v9524_v3 }
  0x42   :  { %5277 = vmatmul.mubr.msk.f32.gmra.mxu0 %vm102_vm2, %v77_v48  ;;  %5311 = vmatmul.mubr.msk.f32.gmra.mxu1 %vm102_vm2, %v77_v48 }
  0x43   :  { %372 = vmatprep.mubr.f32.mxu0 %v9524_v3  ;;  %629 = vmatprep.mubr.f32.mxu1 %v9524_v3 }
  0x46   :  { %5278 = vmatmul.mubr.msk.f32.gmra.mxu0 %vm102_vm2, %v78_v50  ;;  %5312 = vmatmul.mubr.msk.f32.gmra.mxu1 %vm102_vm2, %v78_v50 }
  0x47   :  { %378 = vmatprep.mubr.f32.mxu0 %v9524_v3  ;;  %635 = vmatprep.mubr.f32.mxu1 %v9524_v3 }
  0x4a   :  { %5279 = vmatmul.mubr.msk.f32.gmra.mxu0 %vm102_vm2, %v79_v52  ;;  %5313 = vmatmul.mubr.msk.f32.gmra.mxu1 %vm102_vm2, %v79_v52 }
  0x4b   :  { %384 = vmatprep.mubr.f32.mxu0 %v9524_v3  ;;  %641 = vmatprep.mubr.f32.mxu1 %v9524_v3 }
  0x4e   :  { %5280 = vmatmul.mubr.msk.f32.gmra.mxu0 %vm102_vm2, %v80_v54  ;;  %5314 = vmatmul.mubr.msk.f32.gmra.mxu1 %vm102_vm2, %v80_v54 }
  0x4f   :  { %390 = vmatprep.mubr.f32.mxu0 %v9524_v3  ;;  %647 = vmatprep.mubr.f32.mxu1 %v9524_v3 }
  0x52   :  { %5281 = vmatmul.mubr.msk.f32.gmra.mxu0 %vm102_vm2, %v81_v56  ;;  %5315 = vmatmul.mubr.msk.f32.gmra.mxu1 %vm102_vm2, %v81_v56 }
  0x53   :  { %396 = vmatprep.mubr.f32.mxu0 %v9524_v3  ;;  %653 = vmatprep.mubr.f32.mxu1 %v9524_v3 }
  0x56   :  { %5282 = vmatmul.mubr.msk.f32.gmra.mxu0 %vm102_vm2, %v82_v58  ;;  %5316 = vmatmul.mubr.msk.f32.gmra.mxu1 %vm102_vm2, %v82_v58 }
  0x57   :  { %402 = vmatprep.mubr.f32.mxu0 %v9524_v3  ;;  %659 = vmatprep.mubr.f32.mxu1 %v9524_v3 }
  0x5a   :  { %5283 = vmatmul.mubr.msk.f32.gmra.mxu0 %vm102_vm2, %v83_v60  ;;  %5317 = vmatmul.mubr.msk.f32.gmra.mxu1 %vm102_vm2, %v83_v60 }
  0x5b   :  { %408 = vmatprep.mubr.f32.mxu0 %v9524_v3  ;;  %665 = vmatprep.mubr.f32.mxu1 %v9524_v3 }
  0x5e   :  { %5284 = vmatmul.mubr.msk.f32.gmra.mxu0 %vm102_vm2, %v84_v62  ;;  %5318 = vmatmul.mubr.msk.f32.gmra.mxu1 %vm102_vm2, %v84_v62 }
  0x5f   :  { %414 = vmatprep.mubr.f32.mxu0 %v9524_v3  ;;  %671 = vmatprep.mubr.f32.mxu1 %v9524_v3 }
  0x62   :  { %5285 = vmatmul.mubr.msk.f32.gmra.mxu0 %vm102_vm2, %v85_v0  ;;  %5319 = vmatmul.mubr.msk.f32.gmra.mxu1 %vm102_vm2, %v85_v0 }
  0x63   :  { %420 = vmatprep.mubr.f32.mxu0 %v9524_v3  ;;  %677 = vmatprep.mubr.f32.mxu1 %v9524_v3 }
  0x66   :  { %5286 = vmatmul.mubr.msk.f32.gmra.mxu0 %vm102_vm2, %v86_v2  ;;  %5320 = vmatmul.mubr.msk.f32.gmra.mxu1 %vm102_vm2, %v86_v2 }
  0x67   :  { %426 = vmatprep.mubr.f32.mxu0 %v9524_v3  ;;  %683 = vmatprep.mubr.f32.mxu1 %v9524_v3 }
  0x6a   :  { %5287 = vmatmul.mubr.msk.f32.gmra.mxu0 %vm102_vm2, %v87_v5  ;;  %5321 = vmatmul.mubr.msk.f32.gmra.mxu1 %vm102_vm2, %v87_v5 }
  0x6b   :  { %432 = vmatprep.mubr.f32.mxu0 %v9524_v3  ;;  %689 = vmatprep.mubr.f32.mxu1 %v9524_v3 }
  0x6e   :  { %5288 = vmatmul.mubr.msk.f32.gmra.mxu0 %vm102_vm2, %v88_v7  ;;  %5322 = vmatmul.mubr.msk.f32.gmra.mxu1 %vm102_vm2, %v88_v7 }
  0x6f   :  { %438 = vmatprep.mubr.f32.mxu0 %v9524_v3  ;;  %695 = vmatprep.mubr.f32.mxu1 %v9524_v3 }
  0x72   :  { %5289 = vmatmul.mubr.msk.f32.gmra.mxu0 %vm102_vm2, %v89_v9  ;;  %5323 = vmatmul.mubr.msk.f32.gmra.mxu1 %vm102_vm2, %v89_v9 }
  0x73   :  { %444 = vmatprep.mubr.f32.mxu0 %v9524_v3  ;;  %701 = vmatprep.mubr.f32.mxu1 %v9524_v3 }
  0x76   :  { %5290 = vmatmul.mubr.msk.f32.gmra.mxu0 %vm102_vm2, %v90_v11  ;;  %5324 = vmatmul.mubr.msk.f32.gmra.mxu1 %vm102_vm2, %v90_v11 }
  0x77   :  { %450 = vmatprep.mubr.f32.mxu0 %v9524_v3  ;;  %707 = vmatprep.mubr.f32.mxu1 %v9524_v3 }
  0x7a   :  { %5291 = vmatmul.mubr.msk.f32.gmra.mxu0 %vm102_vm2, %v91_v13  ;;  %5325 = vmatmul.mubr.msk.f32.gmra.mxu1 %vm102_vm2, %v91_v13 }
  0x7b   :  { %456 = vmatprep.mubr.f32.mxu0 %v9524_v3  ;;  %713 = vmatprep.mubr.f32.mxu1 %v9524_v3 }
  0x7e   :  { %5292 = vmatmul.mubr.msk.f32.gmra.mxu0 %vm102_vm2, %v92_v15  ;;  %5326 = vmatmul.mubr.msk.f32.gmra.mxu1 %vm102_vm2, %v92_v15 }
  0x7f   :  { %462 = vmatprep.mubr.f32.mxu0 %v9524_v3  ;;  %719 = vmatprep.mubr.f32.mxu1 %v9524_v3 }
  0x82   :  { %5293 = vmatmul.mubr.msk.f32.gmra.mxu0 %vm102_vm2, %v93_v17  ;;  %5327 = vmatmul.mubr.msk.f32.gmra.mxu1 %vm102_vm2, %v93_v17 }
  0xc6   :  { %v6597_v18 = vpop.f32.mrf.mxu0  ;;  %v535_v19 = vpop.f32.mrf.mxu1 }
  0xc7   :  { %9667 = vst [vmem:[#allocation2_spill] sm:$0xff] %v6597_v18  ;;  %v726_v20 = vmul.f32 %v6597_v18, %v6597_v18 }
  0xc8   :  { %v6601_v21 = vpop.f32.mrf.mxu0  ;;  %v6603_v22 = vpop.f32.mrf.mxu1 }
  0xc9   :  { %9668 = vst [vmem:[#allocation3_spill] sm:$0xff] %v6601_v21  ;;  %v6605_v23 = vadd.f32 %v726_v20, %v535_v19 }
  0xca   :  { %v6607_v24 = vpop.f32.mrf.mxu0  ;;  %v541_v25 = vpop.f32.mrf.mxu1 }
  0xcb   :  { %9669 = vst [vmem:[#allocation4_spill] sm:$0xff] %v6607_v24  ;;  %vm990_vm3 = vcmp.gt.f32.partialorder %v6605_v23, 0.0  ;;  %v728_v26 = vmul.f32 %v6607_v24, %v6607_v24 }
  0xcc   :  { %v6613_v28 = vsel %vm990_vm3, 1.0, %v9606_v27  ;;  %v6615_v29 = vpop.f32.mrf.mxu0  ;;  %v6617_v30 = vpop.f32.mrf.mxu1 }
  0xcd   :  { %9670 = vst [vmem:[#allocation5_spill] sm:$0xff] %v6613_v28  ;;  %9671 = vst [vmem:[#allocation6_spill] sm:$0xff] %v6615_v29  ;;  %v1054_v31 = vmul.f32 %v6613_v28, %v6605_v23  ;;  %v6621_v32 = vadd.f32 %v728_v26, %v541_v25 }
  0xce   :  { %v6623_v33 = vpop.f32.mrf.mxu0  ;;  %v547_v34 = vpop.f32.mrf.mxu1 }
  0xcf   :  { %9672 = vst [vmem:[#allocation7_spill] sm:$0xff] %v6623_v33  ;;  %vm991_vm5 = vcmp.gt.f32.partialorder %v6621_v32, 0.0  ;;  %v730_v35 = vmul.f32 %v6623_v33, %v6623_v33  ;;  %5811 = vmatprep.mubr.msk.f32.mxu0 %vm1094_vm4, %v1054_v31 }
  0xd0   :  { %v6630_v36 = vsel %vm991_vm5, 1.0, %v9606_v27  ;;  %v6632_v37 = vpop.f32.mrf.mxu0  ;;  %v6634_v38 = vpop.f32.mrf.mxu1 }
  0xd1   :  { %9673 = vst [vmem:[#allocation8_spill] sm:$0xff] %v6630_v36  ;;  %9674 = vst [vmem:[#allocation9_spill] sm:$0xff] %v6632_v37  ;;  %v1055_v39 = vmul.f32 %v6630_v36, %v6621_v32  ;;  %v6638_v40 = vadd.f32 %v730_v35, %v547_v34 }
  0xd2   :  { %v6640_v41 = vpop.f32.mrf.mxu0  ;;  %v553_v42 = vpop.f32.mrf.mxu1 }
  0xd3   :  { %9675 = vst [vmem:[#allocation10_spill] sm:$0xff] %v6640_v41  ;;  %vm992_vm6 = vcmp.gt.f32.partialorder %v6638_v40, 0.0  ;;  %v732_v43 = vmul.f32 %v6640_v41, %v6640_v41  ;;  %5812 = vmatmul.mubr.msk.f32.vlgmr.msra.gmra.mxu0 %vm1094_vm4, %v1055_v39 }
  0xd4   :  { %v6647_v44 = vsel %vm992_vm6, 1.0, %v9606_v27  ;;  %v6649_v45 = vpop.f32.mrf.mxu0  ;;  %v6651_v46 = vpop.f32.mrf.mxu1 }
  0xd5   :  { %9676 = vst [vmem:[#allocation11_spill] sm:$0xff] %v6647_v44  ;;  %9677 = vst [vmem:[#allocation12_spill] sm:$0xff] %v6649_v45  ;;  %v1056_v47 = vmul.f32 %v6647_v44, %v6638_v40  ;;  %v6655_v48 = vadd.f32 %v732_v43, %v553_v42 }
  0xd6   :  { %v6657_v49 = vpop.f32.mrf.mxu0  ;;  %v559_v50 = vpop.f32.mrf.mxu1 }
  0xd7   :  { %9678 = vst [vmem:[#allocation13_spill] sm:$0xff] %v6657_v49  ;;  %vm993_vm7 = vcmp.gt.f32.partialorder %v6655_v48, 0.0  ;;  %v734_v51 = vmul.f32 %v6657_v49, %v6657_v49  ;;  %5814 = vmatprep.mubr.msk.f32.mxu0 %vm1094_vm4, %v1056_v47 }
  0xd8   :  { %v6664_v52 = vsel %vm993_vm7, 1.0, %v9606_v27  ;;  %v6666_v53 = vpop.f32.mrf.mxu0  ;;  %v6668_v54 = vpop.f32.mrf.mxu1 }
  0xd9   :  { %9679 = vst [vmem:[#allocation14_spill] sm:$0xff] %v6664_v52  ;;  %9680 = vst [vmem:[#allocation15_spill] sm:$0xff] %v6666_v53  ;;  %v1057_v55 = vmul.f32 %v6664_v52, %v6655_v48  ;;  %v6672_v56 = vadd.f32 %v734_v51, %v559_v50 }
  0xda   :  { %v6674_v57 = vpop.f32.mrf.mxu0  ;;  %v565_v58 = vpop.f32.mrf.mxu1 }
  0xdb   :  { %9681 = vst [vmem:[#allocation16_spill] sm:$0xff] %v6674_v57  ;;  %vm994_vm8 = vcmp.gt.f32.partialorder %v6672_v56, 0.0  ;;  %v736_v59 = vmul.f32 %v6674_v57, %v6674_v57  ;;  %5815 = vmatmul.mubr.msk.f32.gmra.mxu0 %vm1094_vm4, %v1057_v55 }
  0xdc   :  { %v6681_v60 = vsel %vm994_vm8, 1.0, %v9606_v27  ;;  %v6683_v61 = vpop.f32.mrf.mxu0  ;;  %v6685_v62 = vpop.f32.mrf.mxu1 }
  0xdd   :  { %9682 = vst [vmem:[#allocation17_spill] sm:$0xff] %v6681_v60  ;;  %9683 = vst [vmem:[#allocation18_spill] sm:$0xff] %v6683_v61  ;;  %v1058_v63 = vmul.f32 %v6681_v60, %v6672_v56  ;;  %v6689_v0 = vadd.f32 %v736_v59, %v565_v58 }
  0xde   :  { %v6691_v1 = vpop.f32.mrf.mxu0  ;;  %v571_v2 = vpop.f32.mrf.mxu1 }
  0xdf   :  { %9684 = vst [vmem:[#allocation19_spill] sm:$0xff] %v6691_v1  ;;  %vm995_vm9 = vcmp.gt.f32.partialorder %v6689_v0, 0.0  ;;  %v738_v4 = vmul.f32 %v6691_v1, %v6691_v1  ;;  %5817 = vmatprep.mubr.msk.f32.mxu0 %vm1094_vm4, %v1058_v63 }
  0xe0   :  { %v6698_v5 = vsel %vm995_vm9, 1.0, %v9606_v27  ;;  %v6700_v6 = vpop.f32.mrf.mxu0  ;;  %v6702_v7 = vpop.f32.mrf.mxu1 }
  0xe1   :  { %9685 = vst [vmem:[#allocation20_spill] sm:$0xff] %v6698_v5  ;;  %9686 = vst [vmem:[#allocation21_spill] sm:$0xff] %v6700_v6  ;;  %v1059_v8 = vmul.f32 %v6698_v5, %v6689_v0  ;;  %v6706_v9 = vadd.f32 %v738_v4, %v571_v2 }
  0xe2   :  { %v6708_v10 = vpop.f32.mrf.mxu0  ;;  %v577_v11 = vpop.f32.mrf.mxu1 }
  0xe3   :  { %9687 = vst [vmem:[#allocation22_spill] sm:$0xff] %v6708_v10  ;;  %vm996_vm10 = vcmp.gt.f32.partialorder %v6706_v9, 0.0  ;;  %v740_v12 = vmul.f32 %v6708_v10, %v6708_v10  ;;  %5818 = vmatmul.mubr.msk.f32.gmra.mxu0 %vm1094_vm4, %v1059_v8 }
  0xe4   :  { %v6715_v13 = vsel %vm996_vm10, 1.0, %v9606_v27  ;;  %v6717_v14 = vpop.f32.mrf.mxu0  ;;  %v6719_v15 = vpop.f32.mrf.mxu1 }
  0xe5   :  { %9688 = vst [vmem:[#allocation23_spill] sm:$0xff] %v6715_v13  ;;  %9689 = vst [vmem:[#allocation24_spill] sm:$0xff] %v6717_v14  ;;  %v1060_v16 = vmul.f32 %v6715_v13, %v6706_v9  ;;  %v6723_v17 = vadd.f32 %v740_v12, %v577_v11 }
  0xe6   :  { %v6725_v19 = vpop.f32.mrf.mxu0  ;;  %v583_v20 = vpop.f32.mrf.mxu1 }
  0xe7   :  { %9690 = vst [vmem:[#allocation25_spill] sm:$0xff] %v6725_v19  ;;  %vm997_vm11 = vcmp.gt.f32.partialorder %v6723_v17, 0.0  ;;  %v742_v25 = vmul.f32 %v6725_v19, %v6725_v19  ;;  %5820 = vmatprep.mubr.msk.f32.mxu0 %vm1094_vm4, %v1060_v16 }
  0xe8   :  { %v6732_v26 = vsel %vm997_vm11, 1.0, %v9606_v27  ;;  %v6734_v31 = vpop.f32.mrf.mxu0  ;;  %v6736_v34 = vpop.f32.mrf.mxu1 }
  0xe9   :  { %9691 = vst [vmem:[#allocation26_spill] sm:$0xff] %v6732_v26  ;;  %9692 = vst [vmem:[#allocation27_spill] sm:$0xff] %v6734_v31  ;;  %v1061_v35 = vmul.f32 %v6732_v26, %v6723_v17  ;;  %v6740_v39 = vadd.f32 %v742_v25, %v583_v20 }
  0xea   :  { %v6742_v42 = vpop.f32.mrf.mxu0  ;;  %v589_v43 = vpop.f32.mrf.mxu1 }
  0xeb   :  { %9693 = vst [vmem:[#allocation28_spill] sm:$0xff] %v6742_v42  ;;  %vm998_vm12 = vcmp.gt.f32.partialorder %v6740_v39, 0.0  ;;  %v744_v47 = vmul.f32 %v6742_v42, %v6742_v42  ;;  %5821 = vmatmul.mubr.msk.f32.gmra.mxu0 %vm1094_vm4, %v1061_v35 }
  0xec   :  { %v6749_v50 = vsel %vm998_vm12, 1.0, %v9606_v27  ;;  %v6751_v51 = vpop.f32.mrf.mxu0  ;;  %v6753_v55 = vpop.f32.mrf.mxu1 }
  0xed   :  { %9694 = vst [vmem:[#allocation29_spill] sm:$0xff] %v6749_v50  ;;  %9695 = vst [vmem:[#allocation30_spill] sm:$0xff] %v6751_v51  ;;  %v1062_v58 = vmul.f32 %v6749_v50, %v6740_v39  ;;  %v6757_v59 = vadd.f32 %v744_v47, %v589_v43 }
  0xee   :  { %v6759_v63 = vpop.f32.mrf.mxu0  ;;  %v595_v2 = vpop.f32.mrf.mxu1 }
  0xef   :  { %9696 = vst [vmem:[#allocation31_spill] sm:$0xff] %v6759_v63  ;;  %vm999_vm13 = vcmp.gt.f32.partialorder %v6757_v59, 0.0  ;;  %v746_v4 = vmul.f32 %v6759_v63, %v6759_v63  ;;  %5823 = vmatprep.mubr.msk.f32.mxu0 %vm1094_vm4, %v1062_v58 }
  0xf0   :  { %v6766_v8 = vsel %vm999_vm13, 1.0, %v9606_v27  ;;  %v6768_v11 = vpop.f32.mrf.mxu0  ;;  %v6770_v12 = vpop.f32.mrf.mxu1 }
  0xf1   :  { %9697 = vst [vmem:[#allocation32_spill] sm:$0xff] %v6766_v8  ;;  %9698 = vst [vmem:[#allocation33_spill] sm:$0xff] %v6768_v11  ;;  %v1063_v16 = vmul.f32 %v6766_v8, %v6757_v59  ;;  %v6774_v20 = vadd.f32 %v746_v4, %v595_v2 }
  0xf2   :  { %9699 = vst [vmem:[#allocation34_spill] sm:$0xff] %v6770_v12  ;;  %v6776_v25 = vpop.f32.mrf.mxu0  ;;  %v601_v35 = vpop.f32.mrf.mxu1 }
  0xf3   :  { %9700 = vst [vmem:[#allocation35_spill] sm:$0xff] %v6776_v25  ;;  %vm1000_vm14 = vcmp.gt.f32.partialorder %v6774_v20, 0.0  ;;  %v748_v43 = vmul.f32 %v6776_v25, %v6776_v25  ;;  %5824 = vmatmul.mubr.msk.f32.gmra.mxu0 %vm1094_vm4, %v1063_v16 }
  0xf4   :  { %v6783_v47 = vsel %vm1000_vm14, 1.0, %v9606_v27  ;;  %v6785_v58 = vpop.f32.mrf.mxu0  ;;  %v6787_v3 = vpop.f32.mrf.mxu1 }
  0xf5   :  { %9701 = vst [vmem:[#allocation36_spill] sm:$0xff] %v6783_v47  ;;  %9702 = vst [vmem:[#allocation37_spill] sm:$0xff] %v6785_v58  ;;  %v1064_v2 = vmul.f32 %v6783_v47, %v6774_v20  ;;  %v6791_v4 = vadd.f32 %v748_v43, %v601_v35 }
  0xf6   :  { %9703 = vst [vmem:[#allocation38_spill] sm:$0xff] %v6787_v3  ;;  %v6793_v63 = vpop.f32.mrf.mxu0  ;;  %v607_v42 = vpop.f32.mrf.mxu1 }
  0xf7   :  { %9704 = vst [vmem:[#allocation39_spill] sm:$0xff] %v6793_v63  ;;  %vm1001_vm15 = vcmp.gt.f32.partialorder %v6791_v4, 0.0  ;;  %v750_v16 = vmul.f32 %v6793_v63, %v6793_v63  ;;  %5826 = vmatprep.mubr.msk.f32.mxu0 %vm1094_vm4, %v1064_v2 }
  0xf8   :  { %v6800_v25 = vsel %vm1001_vm15, 1.0, %v9606_v27  ;;  %v6802_v19 = vpop.f32.mrf.mxu0  ;;  %v6804_v50 = vpop.f32.mrf.mxu1 }
  0xf9   :  { %9705 = vst [vmem:[#allocation40_spill] sm:$0xff] %v6800_v25  ;;  %9706 = vst [vmem:[#allocation41_spill] sm:$0xff] %v6802_v19  ;;  %v1065_v35 = vmul.f32 %v6800_v25, %v6791_v4  ;;  %v6808_v43 = vadd.f32 %v750_v16, %v607_v42 }
  0xfa   :  { %9707 = vst [vmem:[#allocation42_spill] sm:$0xff] %v6804_v50  ;;  %v6810_v47 = vpop.f32.mrf.mxu0  ;;  %v613_v8 = vpop.f32.mrf.mxu1 }
  0xfb   :  { %9708 = vst [vmem:[#allocation43_spill] sm:$0xff] %v6810_v47  ;;  %vm1002_vm0 = vcmp.gt.f32.partialorder %v6808_v43, 0.0  ;;  %v752_v2 = vmul.f32 %v6810_v47, %v6810_v47  ;;  %5827 = vmatmul.mubr.msk.f32.gmra.mxu0 %vm1094_vm4, %v1065_v35 }
  0xfc   :  { %v6817_v63 = vsel %vm1002_vm0, 1.0, %v9606_v27  ;;  %v6819_v10 = vpop.f32.mrf.mxu0  ;;  %v6821_v1 = vpop.f32.mrf.mxu1 }
  0xfd   :  { %9709 = vst [vmem:[#allocation44_spill] sm:$0xff] %v6817_v63  ;;  %9710 = vst [vmem:[#allocation45_spill] sm:$0xff] %v6819_v10  ;;  %v1066_v42 = vmul.f32 %v6817_v63, %v6808_v43  ;;  %v6825_v16 = vadd.f32 %v752_v2, %v613_v8 }
  0xfe   :  { %9711 = vst [vmem:[#allocation46_spill] sm:$0xff] %v6821_v1  ;;  %v6827_v25 = vpop.f32.mrf.mxu0  ;;  %v619_v13 = vpop.f32.mrf.mxu1 }
  0xff   :  { %9712 = vst [vmem:[#allocation47_spill] sm:$0xff] %v6827_v25  ;;  %vm1003_vm2 = vcmp.gt.f32.partialorder %v6825_v16, 0.0  ;;  %v754_v35 = vmul.f32 %v6827_v25, %v6827_v25  ;;  %5829 = vmatprep.mubr.msk.f32.mxu0 %vm1094_vm4, %v1066_v42 }
 0x100   :  { %v6834_v47 = vsel %vm1003_vm2, 1.0, %v9606_v27  ;;  %v6836_v26 = vpop.f32.mrf.mxu0  ;;  %v6838_v57 = vpop.f32.mrf.mxu1 }
 0x101   :  { %9713 = vst [vmem:[#allocation48_spill] sm:$0xff] %v6834_v47  ;;  %9714 = vst [vmem:[#allocation49_spill] sm:$0xff] %v6836_v26  ;;  %v1067_v8 = vmul.f32 %v6834_v47, %v6825_v16  ;;  %v6842_v2 = vadd.f32 %v754_v35, %v619_v13 }
 0x102   :  { %9715 = vst [vmem:[#allocation50_spill] sm:$0xff] %v6838_v57  ;;  %v6844_v63 = vpop.f32.mrf.mxu0  ;;  %v625_v49 = vpop.f32.mrf.mxu1 }
 0x103   :  { %9716 = vst [vmem:[#allocation51_spill] sm:$0xff] %v6844_v63  ;;  %vm1004_vm3 = vcmp.gt.f32.partialorder %v6842_v2, 0.0  ;;  %v756_v42 = vmul.f32 %v6844_v63, %v6844_v63  ;;  %5830 = vmatmul.mubr.msk.f32.gmra.mxu0 %vm1094_vm4, %v1067_v8 }
 0x104   :  { %v6851_v25 = vsel %vm1004_vm3, 1.0, %v9606_v27  ;;  %v6853_v60 = vpop.f32.mrf.mxu0  ;;  %v6855_v5 = vpop.f32.mrf.mxu1 }
 0x105   :  { %9717 = vst [vmem:[#allocation52_spill] sm:$0xff] %v6851_v25  ;;  %9718 = vst [vmem:[#allocation53_spill] sm:$0xff] %v6853_v60  ;;  %v1068_v13 = vmul.f32 %v6851_v25, %v6842_v2  ;;  %v6859_v35 = vadd.f32 %v756_v42, %v625_v49 }
 0x106   :  { %9719 = vst [vmem:[#allocation54_spill] sm:$0xff] %v6855_v5  ;;  %v6861_v47 = vpop.f32.mrf.mxu0  ;;  %v631_v41 = vpop.f32.mrf.mxu1 }
 0x107   :  { %9720 = vst [vmem:[#allocation55_spill] sm:$0xff] %v6861_v47  ;;  %vm1005_vm5 = vcmp.gt.f32.partialorder %v6859_v35, 0.0  ;;  %v758_v8 = vmul.f32 %v6861_v47, %v6861_v47  ;;  %5832 = vmatprep.mubr.msk.f32.mxu0 %vm1094_vm4, %v1068_v13 }
 0x108   :  { %v6868_v63 = vsel %vm1005_vm5, 1.0, %v9606_v27  ;;  %v6870_v33 = vpop.f32.mrf.mxu0  ;;  %v6872_v44 = vpop.f32.mrf.mxu1 }
 0x109   :  { %9721 = vst [vmem:[#allocation56_spill] sm:$0xff] %v6868_v63  ;;  %9722 = vst [vmem:[#allocation57_spill] sm:$0xff] %v6870_v33  ;;  %v1069_v49 = vmul.f32 %v6868_v63, %v6859_v35  ;;  %v6876_v42 = vadd.f32 %v758_v8, %v631_v41 }
 0x10a   :  { %9723 = vst [vmem:[#allocation58_spill] sm:$0xff] %v6872_v44  ;;  %v6878_v25 = vpop.f32.mrf.mxu0  ;;  %v637_v52 = vpop.f32.mrf.mxu1 }
 0x10b   :  { %9724 = vst [vmem:[#allocation59_spill] sm:$0xff] %v6878_v25  ;;  %vm1006_vm6 = vcmp.gt.f32.partialorder %v6876_v42, 0.0  ;;  %v760_v13 = vmul.f32 %v6878_v25, %v6878_v25  ;;  %5833 = vmatmul.mubr.msk.f32.gmra.mxu0 %vm1094_vm4, %v1069_v49 }
 0x10c   :  { %v6885_v47 = vsel %vm1006_vm6, 1.0, %v9606_v27  ;;  %v6887_v24 = vpop.f32.mrf.mxu0  ;;  %v6889_v18 = vpop.f32.mrf.mxu1 }
 0x10d   :  { %9725 = vst [vmem:[#allocation60_spill] sm:$0xff] %v6885_v47  ;;  %9726 = vst [vmem:[#allocation61_spill] sm:$0xff] %v6887_v24  ;;  %v1070_v41 = vmul.f32 %v6885_v47, %v6876_v42  ;;  %v6893_v8 = vadd.f32 %v760_v13, %v637_v52 }
 0x10e   :  { %9727 = vst [vmem:[#allocation62_spill] sm:$0xff] %v6889_v18  ;;  %v6895_v63 = vpop.f32.mrf.mxu0  ;;  %v643_v28 = vpop.f32.mrf.mxu1 }
 0x10f   :  { %9728 = vst [vmem:[#allocation63_spill] sm:$0xff] %v6895_v63  ;;  %vm1007_vm7 = vcmp.gt.f32.partialorder %v6893_v8, 0.0  ;;  %v762_v49 = vmul.f32 %v6895_v63, %v6895_v63  ;;  %5835 = vmatprep.mubr.msk.f32.mxu0 %vm1094_vm4, %v1070_v41 }
 0x110   :  { %v6902_v25 = vsel %vm1007_vm7, 1.0, %v9606_v27  ;;  %v6904_v36 = vpop.f32.mrf.mxu0  ;;  %v6906_v44 = vpop.f32.mrf.mxu1 }
 0x111   :  { %9729 = vst [vmem:[#allocation64_spill] sm:$0xff] %v6902_v25  ;;  %9730 = vst [vmem:[#allocation65_spill] sm:$0xff] %v6904_v36  ;;  %v1071_v52 = vmul.f32 %v6902_v25, %v6893_v8  ;;  %v6910_v13 = vadd.f32 %v762_v49, %v643_v28 }
 0x112   :  { %9731 = vst [vmem:[#allocation66_spill] sm:$0xff] %v6906_v44  ;;  %v6912_v47 = vpop.f32.mrf.mxu0  ;;  %v649_v18 = vpop.f32.mrf.mxu1 }
 0x113   :  { %9732 = vst [vmem:[#allocation67_spill] sm:$0xff] %v6912_v47  ;;  %vm1008_vm8 = vcmp.gt.f32.partialorder %v6910_v13, 0.0  ;;  %v764_v41 = vmul.f32 %v6912_v47, %v6912_v47  ;;  %5836 = vmatmul.mubr.msk.f32.gmra.mxu0 %vm1094_vm4, %v1071_v52 }
 0x114   :  { %v6919_v63 = vsel %vm1008_vm8, 1.0, %v9606_v27  ;;  %v6921_v36 = vpop.f32.mrf.mxu0  ;;  %v6923_v44 = vpop.f32.mrf.mxu1 }
 0x115   :  { %9733 = vst [vmem:[#allocation68_spill] sm:$0xff] %v6919_v63  ;;  %9734 = vst [vmem:[#allocation69_spill] sm:$0xff] %v6921_v36  ;;  %v1072_v28 = vmul.f32 %v6919_v63, %v6910_v13  ;;  %v6927_v49 = vadd.f32 %v764_v41, %v649_v18 }
 0x116   :  { %9735 = vst [vmem:[#allocation70_spill] sm:$0xff] %v6923_v44  ;;  %v6929_v25 = vpop.f32.mrf.mxu0  ;;  %v655_v33 = vpop.f32.mrf.mxu1 }
 0x117   :  { %9736 = vst [vmem:[#allocation71_spill] sm:$0xff] %v6929_v25  ;;  %vm1009_vm9 = vcmp.gt.f32.partialorder %v6927_v49, 0.0  ;;  %v766_v52 = vmul.f32 %v6929_v25, %v6929_v25  ;;  %5838 = vmatprep.mubr.msk.f32.mxu0 %vm1094_vm4, %v1072_v28 }
 0x118   :  { %v6936_v47 = vsel %vm1009_vm9, 1.0, %v9606_v27  ;;  %v6938_v36 = vpop.f32.mrf.mxu0  ;;  %v6940_v44 = vpop.f32.mrf.mxu1 }
 0x119   :  { %9737 = vst [vmem:[#allocation72_spill] sm:$0xff] %v6936_v47  ;;  %9738 = vst [vmem:[#allocation73_spill] sm:$0xff] %v6938_v36  ;;  %v1073_v18 = vmul.f32 %v6936_v47, %v6927_v49  ;;  %v6944_v41 = vadd.f32 %v766_v52, %v655_v33 }
 0x11a   :  { %9739 = vst [vmem:[#allocation74_spill] sm:$0xff] %v6940_v44  ;;  %v6946_v63 = vpop.f32.mrf.mxu0  ;;  %v661_v24 = vpop.f32.mrf.mxu1 }
 0x11b   :  { %9740 = vst [vmem:[#allocation75_spill] sm:$0xff] %v6946_v63  ;;  %vm1010_vm10 = vcmp.gt.f32.partialorder %v6944_v41, 0.0  ;;  %v768_v28 = vmul.f32 %v6946_v63, %v6946_v63  ;;  %5839 = vmatmul.mubr.msk.f32.gmra.mxu0 %vm1094_vm4, %v1073_v18 }
 0x11c   :  { %v6953_v25 = vsel %vm1010_vm10, 1.0, %v9606_v27  ;;  %v6955_v36 = vpop.f32.mrf.mxu0  ;;  %v6957_v44 = vpop.f32.mrf.mxu1 }
 0x11d   :  { %9741 = vst [vmem:[#allocation76_spill] sm:$0xff] %v6953_v25  ;;  %9742 = vst [vmem:[#allocation77_spill] sm:$0xff] %v6955_v36  ;;  %v1074_v33 = vmul.f32 %v6953_v25, %v6944_v41  ;;  %v6961_v52 = vadd.f32 %v768_v28, %v661_v24 }
 0x11e   :  { %9743 = vst [vmem:[#allocation78_spill] sm:$0xff] %v6957_v44  ;;  %v6963_v47 = vpop.f32.mrf.mxu0  ;;  %v667_v57 = vpop.f32.mrf.mxu1 }
 0x11f   :  { %9744 = vst [vmem:[#allocation79_spill] sm:$0xff] %v6963_v47  ;;  %vm1011_vm11 = vcmp.gt.f32.partialorder %v6961_v52, 0.0  ;;  %v770_v18 = vmul.f32 %v6963_v47, %v6963_v47  ;;  %5841 = vmatprep.mubr.msk.f32.mxu0 %vm1094_vm4, %v1074_v33 }
 0x120   :  { %v6970_v63 = vsel %vm1011_vm11, 1.0, %v9606_v27  ;;  %v6972_v36 = vpop.f32.mrf.mxu0  ;;  %v6974_v44 = vpop.f32.mrf.mxu1 }
 0x121   :  { %9745 = vst [vmem:[#allocation80_spill] sm:$0xff] %v6970_v63  ;;  %9746 = vst [vmem:[#allocation81_spill] sm:$0xff] %v6972_v36  ;;  %v1075_v24 = vmul.f32 %v6970_v63, %v6961_v52  ;;  %v6978_v28 = vadd.f32 %v770_v18, %v667_v57 }
 0x122   :  { %9747 = vst [vmem:[#allocation82_spill] sm:$0xff] %v6974_v44  ;;  %v6980_v25 = vpop.f32.mrf.mxu0  ;;  %v673_v5 = vpop.f32.mrf.mxu1 }
 0x123   :  { %9748 = vst [vmem:[#allocation83_spill] sm:$0xff] %v6980_v25  ;;  %vm1012_vm12 = vcmp.gt.f32.partialorder %v6978_v28, 0.0  ;;  %v772_v33 = vmul.f32 %v6980_v25, %v6980_v25  ;;  %5842 = vmatmul.mubr.msk.f32.gmra.mxu0 %vm1094_vm4, %v1075_v24 }
 0x124   :  { %v6987_v47 = vsel %vm1012_vm12, 1.0, %v9606_v27  ;;  %v6989_v36 = vpop.f32.mrf.mxu0  ;;  %v6991_v44 = vpop.f32.mrf.mxu1 }
 0x125   :  { %9749 = vst [vmem:[#allocation84_spill] sm:$0xff] %v6987_v47  ;;  %9750 = vst [vmem:[#allocation85_spill] sm:$0xff] %v6989_v36  ;;  %v1076_v57 = vmul.f32 %v6987_v47, %v6978_v28  ;;  %v6995_v18 = vadd.f32 %v772_v33, %v673_v5 }
 0x126   :  { %9751 = vst [vmem:[#allocation86_spill] sm:$0xff] %v6991_v44  ;;  %v6997_v63 = vpop.f32.mrf.mxu0  ;;  %v679_v26 = vpop.f32.mrf.mxu1 }
 0x127   :  { %9752 = vst [vmem:[#allocation87_spill] sm:$0xff] %v6997_v63  ;;  %vm1013_vm13 = vcmp.gt.f32.partialorder %v6995_v18, 0.0  ;;  %v774_v24 = vmul.f32 %v6997_v63, %v6997_v63  ;;  %5844 = vmatprep.mubr.msk.f32.mxu0 %vm1094_vm4, %v1076_v57 }
 0x128   :  { %v7004_v25 = vsel %vm1013_vm13, 1.0, %v9606_v27  ;;  %v7006_v36 = vpop.f32.mrf.mxu0  ;;  %v7008_v44 = vpop.f32.mrf.mxu1 }
 0x129   :  { %9753 = vst [vmem:[#allocation88_spill] sm:$0xff] %v7004_v25  ;;  %9754 = vst [vmem:[#allocation89_spill] sm:$0xff] %v7006_v36  ;;  %v1077_v5 = vmul.f32 %v7004_v25, %v6995_v18  ;;  %v7012_v33 = vadd.f32 %v774_v24, %v679_v26 }
 0x12a   :  { %9755 = vst [vmem:[#allocation90_spill] sm:$0xff] %v7008_v44  ;;  %v7014_v47 = vpop.f32.mrf.mxu0  ;;  %v685_v60 = vpop.f32.mrf.mxu1 }
 0x12b   :  { %9756 = vst [vmem:[#allocation91_spill] sm:$0xff] %v7014_v47  ;;  %vm1014_vm14 = vcmp.gt.f32.partialorder %v7012_v33, 0.0  ;;  %v776_v57 = vmul.f32 %v7014_v47, %v7014_v47  ;;  %5845 = vmatmul.mubr.msk.f32.gmra.mxu0 %vm1094_vm4, %v1077_v5 }
 0x12c   :  { %v7021_v63 = vsel %vm1014_vm14, 1.0, %v9606_v27  ;;  %v7023_v36 = vpop.f32.mrf.mxu0  ;;  %v7025_v44 = vpop.f32.mrf.mxu1 }
 0x12d   :  { %9757 = vst [vmem:[#allocation92_spill] sm:$0xff] %v7021_v63  ;;  %9758 = vst [vmem:[#allocation93_spill] sm:$0xff] %v7023_v36  ;;  %v1078_v26 = vmul.f32 %v7021_v63, %v7012_v33  ;;  %v7029_v24 = vadd.f32 %v776_v57, %v685_v60 }
 0x12e   :  { %9759 = vst [vmem:[#allocation94_spill] sm:$0xff] %v7025_v44  ;;  %v7031_v25 = vpop.f32.mrf.mxu0  ;;  %v691_v50 = vpop.f32.mrf.mxu1 }
 0x12f   :  { %9760 = vst [vmem:[#allocation95_spill] sm:$0xff] %v7031_v25  ;;  %vm1015_vm15 = vcmp.gt.f32.partialorder %v7029_v24, 0.0  ;;  %v778_v5 = vmul.f32 %v7031_v25, %v7031_v25  ;;  %5847 = vmatprep.mubr.msk.f32.mxu0 %vm1094_vm4, %v1078_v26 }
 0x130   :  { %v7038_v47 = vsel %vm1015_vm15, 1.0, %v9606_v27  ;;  %v7040_v36 = vpop.f32.mrf.mxu0  ;;  %v7042_v44 = vpop.f32.mrf.mxu1 }
 0x131   :  { %9761 = vst [vmem:[#allocation96_spill] sm:$0xff] %v7038_v47  ;;  %9762 = vst [vmem:[#allocation97_spill] sm:$0xff] %v7040_v36  ;;  %v1079_v60 = vmul.f32 %v7038_v47, %v7029_v24  ;;  %v7046_v57 = vadd.f32 %v778_v5, %v691_v50 }
 0x132   :  { %9763 = vst [vmem:[#allocation98_spill] sm:$0xff] %v7042_v44  ;;  %v7048_v63 = vpop.f32.mrf.mxu0  ;;  %v697_v1 = vpop.f32.mrf.mxu1 }
 0x133   :  { %9764 = vst [vmem:[#allocation99_spill] sm:$0xff] %v7048_v63  ;;  %vm1016_vm0 = vcmp.gt.f32.partialorder %v7046_v57, 0.0  ;;  %v780_v26 = vmul.f32 %v7048_v63, %v7048_v63  ;;  %5848 = vmatmul.mubr.msk.f32.gmra.mxu0 %vm1094_vm4, %v1079_v60 }
 0x134   :  { %v7055_v25 = vsel %vm1016_vm0, 1.0, %v9606_v27  ;;  %v7057_v36 = vpop.f32.mrf.mxu0  ;;  %v7059_v44 = vpop.f32.mrf.mxu1 }
 0x135   :  { %9765 = vst [vmem:[#allocation100_spill] sm:$0xff] %v7055_v25  ;;  %9766 = vst [vmem:[#allocation101_spill] sm:$0xff] %v7057_v36  ;;  %v1080_v50 = vmul.f32 %v7055_v25, %v7046_v57  ;;  %v7063_v5 = vadd.f32 %v780_v26, %v697_v1 }
 0x136   :  { %9767 = vst [vmem:[#allocation102_spill] sm:$0xff] %v7059_v44  ;;  %v7065_v47 = vpop.f32.mrf.mxu0  ;;  %v703_v19 = vpop.f32.mrf.mxu1 }
 0x137   :  { %9768 = vst [vmem:[#allocation103_spill] sm:$0xff] %v7065_v47  ;;  %vm1017_vm2 = vcmp.gt.f32.partialorder %v7063_v5, 0.0  ;;  %v782_v60 = vmul.f32 %v7065_v47, %v7065_v47  ;;  %5850 = vmatprep.mubr.msk.f32.mxu0 %vm1094_vm4, %v1080_v50 }
 0x138   :  { %v7072_v63 = vsel %vm1017_vm2, 1.0, %v9606_v27  ;;  %v7074_v36 = vpop.f32.mrf.mxu0  ;;  %v7076_v44 = vpop.f32.mrf.mxu1 }
 0x139   :  { %9769 = vst [vmem:[#allocation104_spill] sm:$0xff] %v7072_v63  ;;  %9770 = vst [vmem:[#allocation105_spill] sm:$0xff] %v7074_v36  ;;  %v1081_v1 = vmul.f32 %v7072_v63, %v7063_v5  ;;  %v7080_v26 = vadd.f32 %v782_v60, %v703_v19 }
 0x13a   :  { %9771 = vst [vmem:[#allocation106_spill] sm:$0xff] %v7076_v44  ;;  %v7082_v25 = vpop.f32.mrf.mxu0  ;;  %v709_v10 = vpop.f32.mrf.mxu1 }
 0x13b   :  { %9772 = vst [vmem:[#allocation107_spill] sm:$0xff] %v7082_v25  ;;  %vm1018_vm3 = vcmp.gt.f32.partialorder %v7080_v26, 0.0  ;;  %v784_v50 = vmul.f32 %v7082_v25, %v7082_v25  ;;  %5851 = vmatmul.mubr.msk.f32.gmra.mxu0 %vm1094_vm4, %v1081_v1 }
 0x13c   :  { %v7089_v47 = vsel %vm1018_vm3, 1.0, %v9606_v27  ;;  %v7091_v36 = vpop.f32.mrf.mxu0  ;;  %v7093_v44 = vpop.f32.mrf.mxu1 }
 0x13d   :  { %9773 = vst [vmem:[#allocation108_spill] sm:$0xff] %v7089_v47  ;;  %9774 = vst [vmem:[#allocation109_spill] sm:$0xff] %v7091_v36  ;;  %v1082_v19 = vmul.f32 %v7089_v47, %v7080_v26  ;;  %v7097_v60 = vadd.f32 %v784_v50, %v709_v10 }
 0x13e   :  { %9775 = vst [vmem:[#allocation110_spill] sm:$0xff] %v7093_v44  ;;  %v7099_v63 = vpop.f32.mrf.mxu0  ;;  %v715_v12 = vpop.f32.mrf.mxu1 }
 0x13f   :  { %9776 = vst [vmem:[#allocation111_spill] sm:$0xff] %v7099_v63  ;;  %vm1019_vm5 = vcmp.gt.f32.partialorder %v7097_v60, 0.0  ;;  %v786_v1 = vmul.f32 %v7099_v63, %v7099_v63  ;;  %5853 = vmatprep.mubr.msk.f32.mxu0 %vm1094_vm4, %v1082_v19 }
 0x140   :  { %v7106_v25 = vsel %vm1019_vm5, 1.0, %v9606_v27  ;;  %v7108_v36 = vpop.f32.mrf.mxu0  ;;  %v7110_v44 = vpop.f32.mrf.mxu1 }
 0x141   :  { %9777 = vst [vmem:[#allocation112_spill] sm:$0xff] %v7106_v25  ;;  %9778 = vst [vmem:[#allocation113_spill] sm:$0xff] %v7108_v36  ;;  %v1083_v10 = vmul.f32 %v7106_v25, %v7097_v60  ;;  %v7114_v50 = vadd.f32 %v786_v1, %v715_v12 }
 0x142   :  { %9779 = vst [vmem:[#allocation114_spill] sm:$0xff] %v7110_v44  ;;  %v7116_v47 = vpop.f32.mrf.mxu0  ;;  %v721_v3 = vpop.f32.mrf.mxu1 }
 0x143   :  { %9780 = vst [vmem:[#allocation115_spill] sm:$0xff] %v7116_v47  ;;  %vm1020_vm6 = vcmp.gt.f32.partialorder %v7114_v50, 0.0  ;;  %v788_v19 = vmul.f32 %v7116_v47, %v7116_v47  ;;  %5854 = vmatmul.mubr.msk.f32.gmra.mxu0 %vm1094_vm4, %v1083_v10  ;;  %v5368_v10 = vld [vmem:[%s9517_s3 + $0x78] sm:$0xff] }
 0x144   :  { %v7123_v63 = vsel %vm1020_vm6, 1.0, %v9606_v27  ;;  %5859 = vmatprep.subr.mxu1 %v5368_v10 }
 0x145   :  { %9781 = vst [vmem:[#allocation116_spill] sm:$0xff] %v7123_v63  ;;  %v1084_v44 = vmul.f32 %v7123_v63, %v7114_v50  ;;  %v7127_v36 = vadd.f32 %v788_v19, %v721_v3  ;;  %5860 = vmatpush3.msra.mxu1 %v5368_v10  ;;  %v7140_v3 = vpop.f32.mrf.mxu0 }
 0x146   :  { %9783 = vst [vmem:[#allocation118_spill] sm:$0xff] %v7140_v3 }
 0x147   :  { %vm1021_vm7 = vcmp.gt.f32.partialorder %v7127_v36, 0.0  ;;  %5856 = vmatprep.mubr.msk.f32.mxu0 %vm1094_vm4, %v1084_v44  ;;  %v5367_v44 = vld [vmem:[%s9517_s3 + $0x70] sm:$0xff] }
 0x148   :  { %v7132_v12 = vsel %vm1021_vm7, 1.0, %v9606_v27  ;;  %5861 = vmatprep.subr.mxu1 %v5367_v44 }
 0x149   :  { %9782 = vst [vmem:[#allocation117_spill] sm:$0xff] %v7132_v12  ;;  %v1085_v1 = vmul.f32 %v7132_v12, %v7127_v36  ;;  %5862 = vmatpush3.msra.mxu1 %v5367_v44  ;;  %v5365_v12 = vld [vmem:[%s9517_s3 + $0x60] sm:$0xff] }
 0x14b   :  { %5857 = vmatmul.mubr.msk.f32.gmra.mxu0 %vm1094_vm4, %v1085_v1 }
 0x193   :  { %v5813_v19 = vpop.f32.mrf.mxu0 }
 0x195   :  { %v1257_v47 = vpop.f32.mrf.mxu0 }
 0x196   :  { %1448 = vrot.lane.b32.xlu0 %v1257_v47, %s6247_s11  ;;  %v5366_v47 = vld [vmem:[%s9517_s3 + $0x68] sm:$0xff] }
 0x197   :  { %5863 = vmatprep.subr.mxu1 %v5366_v47 }
 0x198   :  { %5864 = vmatpush3.msra.mxu1 %v5366_v47 }
 0x199   :  { %5865 = vmatprep.subr.mxu1 %v5365_v12 }
 0x19a   :  { %1450 = vrot.lane.b32.xlu0 %v5813_v19, %s6247_s11  ;;  %5866 = vmatpush3.msra.mxu1 %v5365_v12 }
 0x19b   :  { %v5816_v1 = vpop.f32.mrf.mxu0 }
 0x19d   :  { %v1267_v27 = vpop.f32.mrf.mxu0 }
 0x19e   :  { %1452 = vrot.lane.b32.xlu1 %v1267_v27, %s6247_s11 }
 0x1a2   :  { %1454 = vrot.lane.b32.xlu1 %v5816_v1, %s6247_s11 }
 0x1a3   :  { %v5819_v10 = vpop.f32.mrf.mxu0 }
 0x1a5   :  { %v1277_v63 = vpop.f32.mrf.mxu0 }
 0x1a6   :  { %1458 = vrot.lane.b32.xlu1 %v5819_v10, %s6247_s11  ;;  %1456 = vrot.lane.b32.xlu0 %v1277_v63, %s6247_s11 }
 0x1ab   :  { %v5822_v19 = vpop.f32.mrf.mxu0 }
 0x1ac   :  { %1462 = vrot.lane.b32.xlu1 %v5822_v19, %s6247_s11 }
 0x1ad   :  { %v1287_v44 = vpop.f32.mrf.mxu0 }
 0x1ae   :  { %1460 = vrot.lane.b32.xlu0 %v1287_v44, %s6247_s11  ;;  %v5364_v44 = vld [vmem:[%s9517_s3 + $0x58] sm:$0xff] }
 0x1af   :  { %5867 = vmatprep.subr.mxu1 %v5364_v44 }
 0x1b0   :  { %5868 = vmatpush3.msra.mxu1 %v5364_v44 }
 0x1b3   :  { %v5825_v27 = vpop.f32.mrf.mxu0 }
 0x1b4   :  { %1466 = vrot.lane.b32.xlu1 %v5825_v27, %s6247_s11 }
 0x1b5   :  { %v1297_v1 = vpop.f32.mrf.mxu0 }
 0x1b6   :  { %1464 = vrot.lane.b32.xlu0 %v1297_v1, %s6247_s11 }
 0x1bb   :  { %v5828_v63 = vpop.f32.mrf.mxu0 }
 0x1bc   :  { %1470 = vrot.lane.b32.xlu1 %v5828_v63, %s6247_s11 }
 0x1bd   :  { %v1307_v10 = vpop.f32.mrf.mxu0 }
 0x1be   :  { %1468 = vrot.lane.b32.xlu0 %v1307_v10, %s6247_s11  ;;  %v5363_v10 = vld [vmem:[%s9517_s3 + $0x50] sm:$0xff] }
 0x1bf   :  { %5869 = vmatprep.subr.mxu1 %v5363_v10 }
 0x1c0   :  { %5870 = vmatpush3.msra.mxu1 %v5363_v10 }
 0x1c3   :  { %v5831_v47 = vpop.f32.mrf.mxu0 }
 0x1c4   :  { %1474 = vrot.lane.b32.xlu1 %v5831_v47, %s6247_s11 }
 0x1c5   :  { %v1317_v19 = vpop.f32.mrf.mxu0 }
 0x1c6   :  { %1472 = vrot.lane.b32.xlu0 %v1317_v19, %s6247_s11 }
 0x1cb   :  { %v5834_v27 = vpop.f32.mrf.mxu0 }
 0x1cc   :  { %1478 = vrot.lane.b32.xlu1 %v5834_v27, %s6247_s11 }
 0x1cd   :  { %v1327_v12 = vpop.f32.mrf.mxu0 }
 0x1ce   :  { %1476 = vrot.lane.b32.xlu0 %v1327_v12, %s6247_s11  ;;  %v5362_v12 = vld [vmem:[%s9517_s3 + $0x48] sm:$0xff] }
 0x1cf   :  { %5871 = vmatprep.subr.mxu1 %v5362_v12 }
 0x1d0   :  { %5872 = vmatpush3.msra.mxu1 %v5362_v12 }
 0x1d3   :  { %v5837_v1 = vpop.f32.mrf.mxu0 }
 0x1d5   :  { %v1337_v63 = vpop.f32.mrf.mxu0 }
 0x1d6   :  { %1480 = vrot.lane.b32.xlu0 %v1337_v63, %s6247_s11 }
 0x1da   :  { %1482 = vrot.lane.b32.xlu0 %v5837_v1, %s6247_s11 }
 0x1db   :  { %v5840_v47 = vpop.f32.mrf.mxu0 }
 0x1dd   :  { %v1347_v19 = vpop.f32.mrf.mxu0 }
 0x1de   :  { %1484 = vrot.lane.b32.xlu0 %v1347_v19, %s6247_s11  ;;  %v5361_v19 = vld [vmem:[%s9517_s3 + $0x40] sm:$0xff] }
 0x1df   :  { %5873 = vmatprep.subr.mxu1 %v5361_v19 }
 0x1e0   :  { %5874 = vmatpush3.msra.mxu1 %v5361_v19 }
 0x1e2   :  { %1486 = vrot.lane.b32.xlu0 %v5840_v47, %s6247_s11 }
 0x1e3   :  { %v5843_v44 = vpop.f32.mrf.mxu0 }
 0x1e5   :  { %v1357_v27 = vpop.f32.mrf.mxu0 }
 0x1e6   :  { %1488 = vrot.lane.b32.xlu0 %v1357_v27, %s6247_s11 }
 0x1ea   :  { %1490 = vrot.lane.b32.xlu0 %v5843_v44, %s6247_s11 }
 0x1eb   :  { %v5846_v1 = vpop.f32.mrf.mxu0 }
 0x1ed   :  { %v1367_v63 = vpop.f32.mrf.mxu0 }
 0x1ee   :  { %1492 = vrot.lane.b32.xlu0 %v1367_v63, %s6247_s11 }
 0x1f2   :  { %1494 = vrot.lane.b32.xlu0 %v5846_v1, %s6247_s11 }
 0x1f3   :  { %v5849_v10 = vpop.f32.mrf.mxu0 }
 0x1f5   :  { %v1377_v47 = vpop.f32.mrf.mxu0 }
 0x1f6   :  { %1496 = vrot.lane.b32.xlu0 %v1377_v47, %s6247_s11 }
 0x1fa   :  { %1498 = vrot.lane.b32.xlu0 %v5849_v10, %s6247_s11  ;;  %v9784_v10 = vmov 0.2  }
 0x1fb   :  { %v5852_v44 = vpop.f32.mrf.mxu0 }
 0x1fd   :  { %v1387_v27 = vpop.f32.mrf.mxu0 }
 0x1fe   :  { %1500 = vrot.lane.b32.xlu0 %v1387_v27, %s6247_s11 }
 0x202   :  { %1502 = vrot.lane.b32.xlu0 %v5852_v44, %s6247_s11 }
 0x203   :  { %v5855_v12 = vpop.f32.mrf.mxu0 }
 0x205   :  { %v1397_v1 = vpop.f32.mrf.mxu0 }
 0x206   :  { %1504 = vrot.lane.b32.xlu0 %v1397_v1, %s6247_s11 }
 0x208   :  { %v1449_v63 = vpop.permute.xlu0 %1448 }
 0x209   :  { %v1544_v47 = vadd.f32 %v1449_v63, %v6605_v23 }
 0x20a   :  { %1506 = vrot.lane.b32.xlu0 %v5855_v12, %s6247_s11 }
 0x20b   :  { %vm1576_vm8 = vcmp.gt.f32.partialorder %v1544_v47, 0.0  ;;  %v5858_v25 = vpop.f32.mrf.mxu0 }
 0x20c   :  { %v7195_v3 = vsel %vm1576_vm8, 1.0, %v9784_v10  ;;  %v1451_v19 = vpop.permute.xlu0 %1450 }
 0x20d   :  { %v1640_v11 = vmul.f32 %v7195_v3, %v1544_v47  ;;  %v1545_v27 = vadd.f32 %v1451_v19, %v6621_v32  ;;  %v1407_v44 = vpop.f32.mrf.mxu0 }
 0x20e   :  { %1508 = vrot.lane.b32.xlu0 %v1407_v44, %s6247_s11 }
 0x20f   :  { %vm1577_vm9 = vcmp.gt.f32.partialorder %v1545_v27, 0.0  ;;  %1713 = vrot.lane.b32.xlu1 %v1640_v11, %s6247_s11 }
 0x210   :  { %v7202_v23 = vsel %vm1577_vm9, 1.0, %v9784_v10  ;;  %v1453_v12 = vpop.permute.xlu1 %1452 }
 0x211   :  { %v1641_v1 = vmul.f32 %v7202_v23, %v1545_v27  ;;  %v1546_v63 = vadd.f32 %v1453_v12, %v6638_v40 }
 0x212   :  { %1510 = vrot.lane.b32.xlu0 %v5858_v25, %s6247_s11 }
 0x213   :  { %vm1578_vm10 = vcmp.gt.f32.partialorder %v1546_v63, 0.0  ;;  %1715 = vrot.lane.b32.xlu1 %v1641_v1, %s6247_s11 }
 0x214   :  { %v7209_v32 = vsel %vm1578_vm10, 1.0, %v9784_v10  ;;  %v1455_v47 = vpop.permute.xlu1 %1454 }
 0x215   :  { %9785 = vst [vmem:[#allocation119_spill] sm:$0xff] %v7209_v32  ;;  %v1642_v19 = vmul.f32 %v7209_v32, %v1546_v63  ;;  %v1547_v11 = vadd.f32 %v1455_v47, %v6655_v48 }
 0x217   :  { %vm1579_vm11 = vcmp.gt.f32.partialorder %v1547_v11, 0.0  ;;  %1717 = vrot.lane.b32.xlu1 %v1642_v19, %s6247_s11 }
 0x218   :  { %v7215_v27 = vsel %vm1579_vm11, 1.0, %v9784_v10  ;;  %v1459_v40 = vpop.permute.xlu1 %1458  ;;  %v1457_v44 = vpop.permute.xlu0 %1456 }
 0x219   :  { %v1643_v25 = vmul.f32 %v7215_v27, %v1547_v11  ;;  %v1549_v12 = vadd.f32 %v1459_v40, %v6689_v0  ;;  %v1548_v1 = vadd.f32 %v1457_v44, %v6672_v56 }
 0x21b   :  { %vm1581_vm12 = vcmp.gt.f32.partialorder %v1549_v12, 0.0  ;;  %vm1580_vm13 = vcmp.gt.f32.partialorder %v1548_v1, 0.0  ;;  %1719 = vrot.lane.b32.xlu1 %v1643_v25, %s6247_s11 }
 0x21c   :  { %v7222_v48 = vsel %vm1580_vm13, 1.0, %v9784_v10  ;;  %v7226_v47 = vsel %vm1581_vm12, 1.0, %v9784_v10 }
 0x21d   :  { %v1644_v63 = vmul.f32 %v7222_v48, %v1548_v1  ;;  %v1645_v56 = vmul.f32 %v7226_v47, %v1549_v12 }
 0x21e   :  { %v1463_v19 = vpop.permute.xlu1 %1462 }
 0x21f   :  { %v1551_v32 = vadd.f32 %v1463_v19, %v6723_v17  ;;  %1721 = vrot.lane.b32.xlu1 %v1644_v63, %s6247_s11 }
 0x220   :  { %v1461_v0 = vpop.permute.xlu0 %1460 }
 0x221   :  { %v1550_v11 = vadd.f32 %v1461_v0, %v6706_v9  ;;  %vm1583_vm14 = vcmp.gt.f32.partialorder %v1551_v32, 0.0 }
 0x222   :  { %v7238_v25 = vsel %vm1583_vm14, 1.0, %v9784_v10 }
 0x223   :  { %vm1582_vm15 = vcmp.gt.f32.partialorder %v1550_v11, 0.0  ;;  %1723 = vrot.lane.b32.xlu1 %v1645_v56, %s6247_s11  ;;  %v1647_v9 = vmul.f32 %v7238_v25, %v1551_v32 }
 0x224   :  { %v7234_v40 = vsel %vm1582_vm15, 1.0, %v9784_v10 }
 0x225   :  { %v1646_v44 = vmul.f32 %v7234_v40, %v1550_v11 }
 0x226   :  { %v1467_v17 = vpop.permute.xlu1 %1466 }
 0x227   :  { %v1553_v1 = vadd.f32 %v1467_v17, %v6757_v59  ;;  %1725 = vrot.lane.b32.xlu1 %v1646_v44, %s6247_s11 }
 0x228   :  { %v1465_v12 = vpop.permute.xlu0 %1464 }
 0x229   :  { %v1552_v63 = vadd.f32 %v1465_v12, %v6740_v39  ;;  %vm1585_vm0 = vcmp.gt.f32.partialorder %v1553_v1, 0.0 }
 0x22a   :  { %v7250_v56 = vsel %vm1585_vm0, 1.0, %v9784_v10 }
 0x22b   :  { %vm1584_vm2 = vcmp.gt.f32.partialorder %v1552_v63, 0.0  ;;  %1727 = vrot.lane.b32.xlu1 %v1647_v9, %s6247_s11  ;;  %v1649_v39 = vmul.f32 %v7250_v56, %v1553_v1 }
 0x22c   :  { %v7246_v19 = vsel %vm1584_vm2, 1.0, %v9784_v10 }
 0x22d   :  { %v1648_v0 = vmul.f32 %v7246_v19, %v1552_v63 }
 0x22e   :  { %v1471_v59 = vpop.permute.xlu1 %1470 }
 0x22f   :  { %v1555_v11 = vadd.f32 %v1471_v59, %v6791_v4  ;;  %1729 = vrot.lane.b32.xlu1 %v1648_v0, %s6247_s11 }
 0x230   :  { %v1469_v32 = vpop.permute.xlu0 %1468 }
 0x231   :  { %v1554_v44 = vadd.f32 %v1469_v32, %v6774_v20  ;;  %vm1587_vm3 = vcmp.gt.f32.partialorder %v1555_v11, 0.0 }
 0x232   :  { %v7262_v9 = vsel %vm1587_vm3, 1.0, %v9784_v10 }
 0x233   :  { %vm1586_vm5 = vcmp.gt.f32.partialorder %v1554_v44, 0.0  ;;  %1731 = vrot.lane.b32.xlu1 %v1649_v39, %s6247_s11  ;;  %v1651_v20 = vmul.f32 %v7262_v9, %v1555_v11 }
 0x234   :  { %v7258_v17 = vsel %vm1586_vm5, 1.0, %v9784_v10 }
 0x235   :  { %v1650_v12 = vmul.f32 %v7258_v17, %v1554_v44 }
 0x236   :  { %v1475_v4 = vpop.permute.xlu1 %1474 }
 0x237   :  { %v1557_v63 = vadd.f32 %v1475_v4, %v6825_v16  ;;  %1733 = vrot.lane.b32.xlu1 %v1650_v12, %s6247_s11 }
 0x238   :  { %v1473_v1 = vpop.permute.xlu0 %1472 }
 0x239   :  { %v1556_v0 = vadd.f32 %v1473_v1, %v6808_v43  ;;  %vm1589_vm6 = vcmp.gt.f32.partialorder %v1557_v63, 0.0 }
 0x23a   :  { %v7274_v39 = vsel %vm1589_vm6, 1.0, %v9784_v10 }
 0x23b   :  { %vm1588_vm7 = vcmp.gt.f32.partialorder %v1556_v0, 0.0  ;;  %1735 = vrot.lane.b32.xlu1 %v1651_v20, %s6247_s11  ;;  %v1653_v43 = vmul.f32 %v7274_v39, %v1557_v63 }
 0x23c   :  { %v7270_v59 = vsel %vm1588_vm7, 1.0, %v9784_v10 }
 0x23d   :  { %v1652_v32 = vmul.f32 %v7270_v59, %v1556_v0 }
 0x23e   :  { %v1479_v16 = vpop.permute.xlu1 %1478 }
 0x23f   :  { %v1559_v44 = vadd.f32 %v1479_v16, %v6859_v35  ;;  %1737 = vrot.lane.b32.xlu1 %v1652_v32, %s6247_s11 }
 0x240   :  { %v1477_v11 = vpop.permute.xlu0 %1476 }
 0x241   :  { %v1558_v12 = vadd.f32 %v1477_v11, %v6842_v2  ;;  %vm1591_vm8 = vcmp.gt.f32.partialorder %v1559_v44, 0.0 }
 0x242   :  { %v7286_v20 = vsel %vm1591_vm8, 1.0, %v9784_v10 }
 0x243   :  { %vm1590_vm9 = vcmp.gt.f32.partialorder %v1558_v12, 0.0  ;;  %1739 = vrot.lane.b32.xlu1 %v1653_v43, %s6247_s11  ;;  %v1655_v0 = vmul.f32 %v7286_v20, %v1559_v44 }
 0x244   :  { %v7282_v4 = vsel %vm1590_vm9, 1.0, %v9784_v10 }
 0x245   :  { %v1654_v1 = vmul.f32 %v7282_v4, %v1558_v12 }
 0x247   :  { %1741 = vrot.lane.b32.xlu1 %v1654_v1, %s6247_s11 }
 0x248   :  { %v1481_v35 = vpop.permute.xlu0 %1480 }
 0x249   :  { %v1560_v63 = vadd.f32 %v1481_v35, %v6876_v42 }
 0x24b   :  { %vm1592_vm10 = vcmp.gt.f32.partialorder %v1560_v63, 0.0  ;;  %1743 = vrot.lane.b32.xlu1 %v1655_v0, %s6247_s11 }
 0x24c   :  { %v7293_v2 = vsel %vm1592_vm10, 1.0, %v9784_v10  ;;  %v1483_v32 = vpop.permute.xlu0 %1482 }
 0x24d   :  { %v1656_v16 = vmul.f32 %v7293_v2, %v1560_v63  ;;  %v1561_v11 = vadd.f32 %v1483_v32, %v6893_v8 }
 0x24f   :  { %vm1593_vm11 = vcmp.gt.f32.partialorder %v1561_v11, 0.0  ;;  %1745 = vrot.lane.b32.xlu0 %v1656_v16, %s6247_s11 }
 0x250   :  { %v7299_v43 = vsel %vm1593_vm11, 1.0, %v9784_v10  ;;  %v1485_v44 = vpop.permute.xlu0 %1484 }
 0x251   :  { %v1657_v42 = vmul.f32 %v7299_v43, %v1561_v11  ;;  %v1562_v12 = vadd.f32 %v1485_v44, %v6910_v13 }
 0x253   :  { %vm1594_vm12 = vcmp.gt.f32.partialorder %v1562_v12, 0.0  ;;  %1747 = vrot.lane.b32.xlu1 %v1657_v42, %s6247_s11 }
 0x254   :  { %v7305_v1 = vsel %vm1594_vm12, 1.0, %v9784_v10  ;;  %v1487_v35 = vpop.permute.xlu0 %1486 }
 0x255   :  { %9786 = vst [vmem:[#allocation120_spill] sm:$0xff] %v7305_v1  ;;  %v1658_v8 = vmul.f32 %v7305_v1, %v1562_v12  ;;  %v1563_v0 = vadd.f32 %v1487_v35, %v6927_v49  ;;  %v9867_v1 = vld [vmem:[#allocation118_spill] sm:$0xff] }
 0x257   :  { %vm1595_vm13 = vcmp.gt.f32.partialorder %v1563_v0, 0.0  ;;  %1749 = vrot.lane.b32.xlu0 %v1658_v8, %s6247_s11 }
 0x258   :  { %v7311_v63 = vsel %vm1595_vm13, 1.0, %v9784_v10  ;;  %v1489_v32 = vpop.permute.xlu0 %1488 }
 0x259   :  { %9787 = vst [vmem:[#allocation121_spill] sm:$0xff] %v7311_v63  ;;  %v1659_v13 = vmul.f32 %v7311_v63, %v1563_v0  ;;  %v1564_v16 = vadd.f32 %v1489_v32, %v6944_v41  ;;  %v789_v63 = vmul.f32 %v9867_v1, %v9867_v1  ;;  %v9869_v1 = vld [vmem:[#allocation114_spill] sm:$0xff] }
 0x25b   :  { %vm1596_vm14 = vcmp.gt.f32.partialorder %v1564_v16, 0.0  ;;  %1751 = vrot.lane.b32.xlu1 %v1659_v13, %s6247_s11 }
 0x25c   :  { %v7317_v11 = vsel %vm1596_vm14, 1.0, %v9784_v10  ;;  %v1491_v44 = vpop.permute.xlu0 %1490 }
 0x25d   :  { %9788 = vst [vmem:[#allocation122_spill] sm:$0xff] %v7317_v11  ;;  %v1660_v49 = vmul.f32 %v7317_v11, %v1564_v16  ;;  %v1565_v42 = vadd.f32 %v1491_v44, %v6961_v52  ;;  %v9861_v11 = vld [vmem:[#allocation109_spill] sm:$0xff] }
 0x25f   :  { %vm1597_vm15 = vcmp.gt.f32.partialorder %v1565_v42, 0.0  ;;  %1753 = vrot.lane.b32.xlu0 %v1660_v49, %s6247_s11 }
 0x260   :  { %v7323_v12 = vsel %vm1597_vm15, 1.0, %v9784_v10  ;;  %v1493_v35 = vpop.permute.xlu0 %1492 }
 0x261   :  { %9789 = vst [vmem:[#allocation123_spill] sm:$0xff] %v7323_v12  ;;  %v1661_v41 = vmul.f32 %v7323_v12, %v1565_v42  ;;  %v1566_v8 = vadd.f32 %v1493_v35, %v6978_v28  ;;  %v785_v12 = vmul.f32 %v9861_v11, %v9861_v11 }
 0x263   :  { %vm1598_vm0 = vcmp.gt.f32.partialorder %v1566_v8, 0.0  ;;  %1755 = vrot.lane.b32.xlu1 %v1661_v41, %s6247_s11 }
 0x264   :  { %v7329_v0 = vsel %vm1598_vm0, 1.0, %v9784_v10  ;;  %v1495_v32 = vpop.permute.xlu0 %1494 }
 0x265   :  { %9790 = vst [vmem:[#allocation124_spill] sm:$0xff] %v7329_v0  ;;  %v1662_v52 = vmul.f32 %v7329_v0, %v1566_v8  ;;  %v1567_v13 = vadd.f32 %v1495_v32, %v6995_v18  ;;  %v9855_v0 = vld [vmem:[#allocation101_spill] sm:$0xff] }
 0x267   :  { %vm1599_vm2 = vcmp.gt.f32.partialorder %v1567_v13, 0.0  ;;  %1757 = vrot.lane.b32.xlu0 %v1662_v52, %s6247_s11 }
 0x268   :  { %v7335_v16 = vsel %vm1599_vm2, 1.0, %v9784_v10  ;;  %v1497_v44 = vpop.permute.xlu0 %1496 }
 0x269   :  { %9791 = vst [vmem:[#allocation125_spill] sm:$0xff] %v7335_v16  ;;  %v1663_v28 = vmul.f32 %v7335_v16, %v1567_v13  ;;  %v1568_v49 = vadd.f32 %v1497_v44, %v7012_v33  ;;  %v781_v16 = vmul.f32 %v9855_v0, %v9855_v0 }
 0x26b   :  { %vm1600_vm3 = vcmp.gt.f32.partialorder %v1568_v49, 0.0  ;;  %1759 = vrot.lane.b32.xlu1 %v1663_v28, %s6247_s11 }
 0x26c   :  { %v7341_v42 = vsel %vm1600_vm3, 1.0, %v9784_v10  ;;  %v1499_v35 = vpop.permute.xlu0 %1498 }
 0x26d   :  { %9792 = vst [vmem:[#allocation126_spill] sm:$0xff] %v7341_v42  ;;  %v1664_v18 = vmul.f32 %v7341_v42, %v1568_v49  ;;  %v1569_v41 = vadd.f32 %v1499_v35, %v7029_v24  ;;  %v9849_v42 = vld [vmem:[#allocation93_spill] sm:$0xff] }
 0x26f   :  { %vm1601_vm5 = vcmp.gt.f32.partialorder %v1569_v41, 0.0  ;;  %1761 = vrot.lane.b32.xlu0 %v1664_v18, %s6247_s11 }
 0x270   :  { %v7347_v8 = vsel %vm1601_vm5, 1.0, %v9784_v10  ;;  %v1501_v32 = vpop.permute.xlu0 %1500 }
 0x271   :  { %9793 = vst [vmem:[#allocation127_spill] sm:$0xff] %v7347_v8  ;;  %v1665_v33 = vmul.f32 %v7347_v8, %v1569_v41  ;;  %v1570_v52 = vadd.f32 %v1501_v32, %v7046_v57  ;;  %v777_v8 = vmul.f32 %v9849_v42, %v9849_v42 }
 0x273   :  { %vm1602_vm6 = vcmp.gt.f32.partialorder %v1570_v52, 0.0  ;;  %1763 = vrot.lane.b32.xlu1 %v1665_v33, %s6247_s11 }
 0x274   :  { %v7353_v13 = vsel %vm1602_vm6, 1.0, %v9784_v10  ;;  %v1503_v44 = vpop.permute.xlu0 %1502 }
 0x275   :  { %9794 = vst [vmem:[#allocation128_spill] sm:$0xff] %v7353_v13  ;;  %v1666_v24 = vmul.f32 %v7353_v13, %v1570_v52  ;;  %v1571_v28 = vadd.f32 %v1503_v44, %v7063_v5  ;;  %v5408_v52 = vld [vmem:[%s9517_s3 + $0xb8] sm:$0xff]  ;;  %v5407_v44 = vld [vmem:[%s9517_s3 + $0xb0] sm:$0xff] }
 0x276   :  { %5923 = vmatprep.subr.mxu0 %v5408_v52  ;;  %v9843_v13 = vld [vmem:[#allocation85_spill] sm:$0xff] }
 0x277   :  { %vm1603_vm7 = vcmp.gt.f32.partialorder %v1571_v28, 0.0  ;;  %1765 = vrot.lane.b32.xlu0 %v1666_v24, %s6247_s11  ;;  %5924 = vmatpush3.msra.mxu0 %v5408_v52 }
 0x278   :  { %v7359_v49 = vsel %vm1603_vm7, 1.0, %v9784_v10  ;;  %v1505_v35 = vpop.permute.xlu0 %1504  ;;  %5925 = vmatprep.subr.mxu0 %v5407_v44 }
 0x279   :  { %9795 = vst [vmem:[#allocation129_spill] sm:$0xff] %v7359_v49  ;;  %v1667_v57 = vmul.f32 %v7359_v49, %v1571_v28  ;;  %v1572_v18 = vadd.f32 %v1505_v35, %v7080_v26  ;;  %5926 = vmatpush3.msra.mxu0 %v5407_v44  ;;  %v773_v49 = vmul.f32 %v9843_v13, %v9843_v13 }
 0x27b   :  { %vm1604_vm8 = vcmp.gt.f32.partialorder %v1572_v18, 0.0  ;;  %1767 = vrot.lane.b32.xlu1 %v1667_v57, %s6247_s11 }
 0x27c   :  { %v7365_v41 = vsel %vm1604_vm8, 1.0, %v9784_v10  ;;  %v1507_v32 = vpop.permute.xlu0 %1506 }
 0x27d   :  { %9796 = vst [vmem:[#allocation130_spill] sm:$0xff] %v7365_v41  ;;  %v1668_v5 = vmul.f32 %v7365_v41, %v1572_v18  ;;  %v1573_v33 = vadd.f32 %v1507_v32, %v7097_v60  ;;  %v5406_v60 = vld [vmem:[%s9517_s3 + $0xa8] sm:$0xff]  ;;  %v5405_v18 = vld [vmem:[%s9517_s3 + $0xa0] sm:$0xff]  ;;  %v9837_v41 = vld [vmem:[#allocation77_spill] sm:$0xff] }
 0x27e   :  { %5927 = vmatprep.subr.mxu0 %v5406_v60 }
 0x27f   :  { %vm1605_vm9 = vcmp.gt.f32.partialorder %v1573_v33, 0.0  ;;  %1769 = vrot.lane.b32.xlu0 %v1668_v5, %s6247_s11  ;;  %5928 = vmatpush3.msra.mxu0 %v5406_v60 }
 0x280   :  { %v7377_v26 = vsel %vm1605_vm9, 1.0, %v9784_v10  ;;  %v1509_v24 = vpop.permute.xlu0 %1508  ;;  %5929 = vmatprep.subr.mxu0 %v5405_v18 }
 0x281   :  { %9797 = vst [vmem:[#allocation131_spill] sm:$0xff] %v7377_v26  ;;  %v1669_v28 = vmul.f32 %v7377_v26, %v1573_v33  ;;  %v1574_v35 = vadd.f32 %v1509_v24, %v7114_v50  ;;  %v1714_v57 = vpop.permute.xlu1 %1713  ;;  %v5404_v50 = vld [vmem:[%s9517_s3 + $0x98] sm:$0xff]  ;;  %5930 = vmatpush3.msra.mxu0 %v5405_v18  ;;  %v5403_v24 = vld [vmem:[%s9517_s3 + $0x90] sm:$0xff]  ;;  %v769_v26 = vmul.f32 %v9837_v41, %v9837_v41 }
 0x282   :  { %5875 = vmatprep.mubr.msk.f32.mxu1 %vm1094_vm4, %v1714_v57  ;;  %5931 = vmatprep.subr.mxu0 %v5404_v50 }
 0x283   :  { %vm1606_vm10 = vcmp.gt.f32.partialorder %v1574_v35, 0.0  ;;  %1771 = vrot.lane.b32.xlu1 %v1669_v28, %s6247_s11  ;;  %5932 = vmatpush3.msra.mxu0 %v5404_v50 }
 0x284   :  { %v7390_v32 = vsel %vm1606_vm10, 1.0, %v9784_v10  ;;  %v1511_v5 = vpop.permute.xlu0 %1510  ;;  %5933 = vmatprep.subr.mxu0 %v5403_v24 }
 0x285   :  { %9798 = vst [vmem:[#allocation132_spill] sm:$0xff] %v7390_v32  ;;  %v1670_v33 = vmul.f32 %v7390_v32, %v1574_v35  ;;  %v1575_v52 = vadd.f32 %v1511_v5, %v7127_v36  ;;  %v1716_v44 = vpop.permute.xlu1 %1715  ;;  %v5402_v36 = vld [vmem:[%s9517_s3 + $0x88] sm:$0xff]  ;;  %5934 = vmatpush3.msra.mxu0 %v5403_v24  ;;  %v9831_v32 = vld [vmem:[#allocation69_spill] sm:$0xff] }
 0x286   :  { %5876 = vmatmul.mubr.msk.f32.vlgmr.msra.gmra.mxu1 %vm1094_vm4, %v1716_v44  ;;  %5935 = vmatprep.subr.mxu0 %v5402_v36 }
 0x287   :  { %vm1607_vm11 = vcmp.gt.f32.partialorder %v1575_v52, 0.0  ;;  %1773 = vrot.lane.b32.xlu0 %v1670_v33, %s6247_s11  ;;  %5936 = vmatpush3.msra.mxu0 %v5402_v36 }
 0x288   :  { %v7403_v60 = vsel %vm1607_vm11, 1.0, %v9784_v10 }
 0x289   :  { %9799 = vst [vmem:[#allocation133_spill] sm:$0xff] %v7403_v60  ;;  %v1671_v28 = vmul.f32 %v7403_v60, %v1575_v52  ;;  %v1718_v35 = vpop.permute.xlu1 %1717  ;;  %v765_v60 = vmul.f32 %v9831_v32, %v9831_v32 }
 0x28a   :  { %5878 = vmatprep.mubr.msk.f32.mxu1 %vm1094_vm4, %v1718_v35 }
 0x28b   :  { %1775 = vrot.lane.b32.xlu1 %v1671_v28, %s6247_s11 }
 0x28d   :  { %v1720_v57 = vpop.permute.xlu1 %1719 }
 0x28e   :  { %5879 = vmatmul.mubr.msk.f32.gmra.mxu1 %vm1094_vm4, %v1720_v57 }
 0x291   :  { %v1722_v18 = vpop.permute.xlu1 %1721 }
 0x292   :  { %5881 = vmatprep.mubr.msk.f32.mxu1 %vm1094_vm4, %v1722_v18 }
 0x295   :  { %v1724_v5 = vpop.permute.xlu1 %1723 }
 0x296   :  { %5882 = vmatmul.mubr.msk.f32.gmra.mxu1 %vm1094_vm4, %v1724_v5 }
 0x299   :  { %v1726_v50 = vpop.permute.xlu1 %1725 }
 0x29a   :  { %5884 = vmatprep.mubr.msk.f32.mxu1 %vm1094_vm4, %v1726_v50 }
 0x29d   :  { %v1728_v33 = vpop.permute.xlu1 %1727 }
 0x29e   :  { %5885 = vmatmul.mubr.msk.f32.gmra.mxu1 %vm1094_vm4, %v1728_v33 }
 0x2a1   :  { %v1730_v52 = vpop.permute.xlu1 %1729 }
 0x2a2   :  { %5887 = vmatprep.mubr.msk.f32.mxu1 %vm1094_vm4, %v1730_v52  ;;  %v5401_v52 = vld [vmem:[%s9517_s3 + $0x80] sm:$0xff] }
 0x2a3   :  { %5937 = vmatprep.subr.mxu0 %v5401_v52 }
 0x2a4   :  { %5938 = vmatpush3.msra.mxu0 %v5401_v52 }
 0x2a5   :  { %v1732_v44 = vpop.permute.xlu1 %1731 }
 0x2a6   :  { %5888 = vmatmul.mubr.msk.f32.gmra.mxu1 %vm1094_vm4, %v1732_v44 }
 0x2a9   :  { %v1734_v24 = vpop.permute.xlu1 %1733 }
 0x2aa   :  { %5890 = vmatprep.mubr.msk.f32.mxu1 %vm1094_vm4, %v1734_v24 }
 0x2ad   :  { %v1736_v36 = vpop.permute.xlu1 %1735 }
 0x2ae   :  { %5891 = vmatmul.mubr.msk.f32.gmra.mxu1 %vm1094_vm4, %v1736_v36 }
 0x2b1   :  { %v1738_v28 = vpop.permute.xlu1 %1737 }
 0x2b2   :  { %5893 = vmatprep.mubr.msk.f32.mxu1 %vm1094_vm4, %v1738_v28 }
 0x2b5   :  { %v1740_v35 = vpop.permute.xlu1 %1739 }
 0x2b6   :  { %5894 = vmatmul.mubr.msk.f32.gmra.mxu1 %vm1094_vm4, %v1740_v35 }
 0x2b9   :  { %v1742_v57 = vpop.permute.xlu1 %1741 }
 0x2ba   :  { %5896 = vmatprep.mubr.msk.f32.mxu1 %vm1094_vm4, %v1742_v57 }
 0x2bd   :  { %v1744_v18 = vpop.permute.xlu1 %1743 }
 0x2be   :  { %5897 = vmatmul.mubr.msk.f32.gmra.mxu1 %vm1094_vm4, %v1744_v18 }
 0x2c1   :  { %v1746_v5 = vpop.permute.xlu0 %1745 }
 0x2c2   :  { %5899 = vmatprep.mubr.msk.f32.mxu1 %vm1094_vm4, %v1746_v5 }
 0x2c5   :  { %v1748_v50 = vpop.permute.xlu1 %1747 }
 0x2c6   :  { %5900 = vmatmul.mubr.msk.f32.gmra.mxu1 %vm1094_vm4, %v1748_v50 }
 0x2c9   :  { %v1750_v33 = vpop.permute.xlu0 %1749 }
 0x2ca   :  { %5902 = vmatprep.mubr.msk.f32.mxu1 %vm1094_vm4, %v1750_v33 }
 0x2cd   :  { %v1752_v44 = vpop.permute.xlu1 %1751 }
 0x2ce   :  { %5903 = vmatmul.mubr.msk.f32.gmra.mxu1 %vm1094_vm4, %v1752_v44 }
 0x2d1   :  { %v1754_v24 = vpop.permute.xlu0 %1753 }
 0x2d2   :  { %5905 = vmatprep.mubr.msk.f32.mxu1 %vm1094_vm4, %v1754_v24 }
 0x2d5   :  { %v1756_v36 = vpop.permute.xlu1 %1755 }
 0x2d6   :  { %5906 = vmatmul.mubr.msk.f32.gmra.mxu1 %vm1094_vm4, %v1756_v36  ;;  %v729_v36 = vmul.f32 %v6615_v29, %v6615_v29 }
 0x2d9   :  { %v1758_v28 = vpop.permute.xlu0 %1757 }
 0x2da   :  { %5908 = vmatprep.mubr.msk.f32.mxu1 %vm1094_vm4, %v1758_v28  ;;  %v727_v28 = vmul.f32 %v6601_v21, %v6601_v21  ;;  %v737_v21 = vmul.f32 %v6683_v61, %v6683_v61 }
 0x2dd   :  { %v1760_v35 = vpop.permute.xlu1 %1759 }
 0x2de   :  { %5909 = vmatmul.mubr.msk.f32.gmra.mxu1 %vm1094_vm4, %v1760_v35  ;;  %v7447_v35 = vpop.f32.mrf.mxu1 }
 0x2e1   :  { %v1762_v57 = vpop.permute.xlu0 %1761 }
 0x2e2   :  { %5911 = vmatprep.mubr.msk.f32.mxu1 %vm1094_vm4, %v1762_v57  ;;  %v7450_v57 = vadd.f32 %v729_v36, %v6617_v30 }
 0x2e5   :  { %v1764_v18 = vpop.permute.xlu1 %1763 }
 0x2e6   :  { %5912 = vmatmul.mubr.msk.f32.gmra.mxu1 %vm1094_vm4, %v1764_v18 }
 0x2e9   :  { %v1766_v5 = vpop.permute.xlu0 %1765 }
 0x2ea   :  { %5914 = vmatprep.mubr.msk.f32.mxu1 %vm1094_vm4, %v1766_v5  ;;  %v7453_v5 = vadd.f32 %v727_v28, %v6603_v22 }
 0x2ed   :  { %v1768_v50 = vpop.permute.xlu1 %1767 }
 0x2ee   :  { %5915 = vmatmul.mubr.msk.f32.gmra.mxu1 %vm1094_vm4, %v1768_v50 }
 0x2f1   :  { %v1770_v33 = vpop.permute.xlu0 %1769 }
 0x2f2   :  { %5917 = vmatprep.mubr.msk.f32.mxu1 %vm1094_vm4, %v1770_v33 }
 0x2f5   :  { %v1772_v52 = vpop.permute.xlu1 %1771 }
 0x2f6   :  { %5918 = vmatmul.mubr.msk.f32.gmra.mxu1 %vm1094_vm4, %v1772_v52  ;;  %v733_v52 = vmul.f32 %v6649_v45, %v6649_v45 }
 0x2f8   :  { %v7468_v22 = vadd.f32 %v733_v52, %v6651_v46 }
 0x2f9   :  { %v1774_v44 = vpop.permute.xlu0 %1773 }
 0x2fa   :  { %5920 = vmatprep.mubr.msk.f32.mxu1 %vm1094_vm4, %v1774_v44 }
 0x2fd   :  { %v1776_v24 = vpop.permute.xlu1 %1775 }
 0x2fe   :  { %5921 = vmatmul.mubr.msk.f32.gmra.mxu1 %vm1094_vm4, %v1776_v24  ;;  %v731_v24 = vmul.f32 %v6632_v37, %v6632_v37 }
 0x346   :  { %v5877_v18 = vpop.f32.mrf.mxu1 }
 0x347   :  { %v2067_v50 = vadd.f32 %v5877_v18, %v7450_v57 }
 0x348   :  { %v1907_v33 = vpop.f32.mrf.mxu1 }
 0x349   :  { %vm2099_vm12 = vcmp.gt.f32.partialorder %v2067_v50, 0.0  ;;  %v2066_v44 = vadd.f32 %v1907_v33, %v7453_v5  ;;  %v7473_v33 = vadd.f32 %v731_v24, %v6634_v38 }
 0x34a   :  { %v7462_v29 = vsel %vm2099_vm12, 1.0, %v9784_v10 }
 0x34b   :  { %9800 = vst [vmem:[#allocation134_spill] sm:$0xff] %v7462_v29  ;;  %vm2098_vm13 = vcmp.gt.f32.partialorder %v2066_v44, 0.0  ;;  %v2163_v28 = vmul.f32 %v7462_v29, %v2067_v50  ;;  %v735_v50 = vmul.f32 %v6666_v53, %v6666_v53  ;;  %v741_v53 = vmul.f32 %v6717_v14, %v6717_v14  ;;  %v9825_v29 = vld [vmem:[#allocation61_spill] sm:$0xff] }
 0x34c   :  { %v7465_v30 = vsel %vm2098_vm13, 1.0, %v9784_v10 }
 0x34d   :  { %9801 = vst [vmem:[#allocation135_spill] sm:$0xff] %v7465_v30  ;;  %v2162_v36 = vmul.f32 %v7465_v30, %v2066_v44  ;;  %v7490_v44 = vadd.f32 %v737_v21, %v6685_v62  ;;  %v761_v30 = vmul.f32 %v9825_v29, %v9825_v29 }
 0x34e   :  { %v5880_v18 = vpop.f32.mrf.mxu1 }
 0x34f   :  { %v2069_v45 = vadd.f32 %v5880_v18, %v7468_v22  ;;  %5939 = vmatprep.mubr.msk.f32.mxu0 %vm1094_vm4, %v2162_v36 }
 0x350   :  { %v1917_v37 = vpop.f32.mrf.mxu1  ;;  %5940 = vmatmul.mubr.msk.f32.vlgmr.msra.gmra.mxu0 %vm1094_vm4, %v2163_v28 }
 0x351   :  { %vm2101_vm14 = vcmp.gt.f32.partialorder %v2069_v45, 0.0  ;;  %v2068_v46 = vadd.f32 %v1917_v37, %v7473_v33  ;;  %v7495_v37 = vadd.f32 %v735_v50, %v6668_v54 }
 0x352   :  { %v7484_v52 = vsel %vm2101_vm14, 1.0, %v9784_v10 }
 0x353   :  { %9802 = vst [vmem:[#allocation136_spill] sm:$0xff] %v7484_v52  ;;  %vm2100_vm15 = vcmp.gt.f32.partialorder %v2068_v46, 0.0  ;;  %v2165_v36 = vmul.f32 %v7484_v52, %v2069_v45  ;;  %v739_v45 = vmul.f32 %v6700_v6, %v6700_v6  ;;  %v745_v6 = vmul.f32 %v6751_v51, %v6751_v51  ;;  %v9819_v52 = vld [vmem:[#allocation53_spill] sm:$0xff] }
 0x354   :  { %v7487_v38 = vsel %vm2100_vm15, 1.0, %v9784_v10 }
 0x355   :  { %9803 = vst [vmem:[#allocation137_spill] sm:$0xff] %v7487_v38  ;;  %v2164_v24 = vmul.f32 %v7487_v38, %v2068_v46  ;;  %v7512_v46 = vadd.f32 %v741_v53, %v6719_v15  ;;  %v743_v15 = vmul.f32 %v6734_v31, %v6734_v31  ;;  %v749_v31 = vmul.f32 %v6785_v58, %v6785_v58 }
 0x356   :  { %v5883_v28 = vpop.f32.mrf.mxu1  ;;  %v757_v38 = vmul.f32 %v9819_v52, %v9819_v52 }
 0x357   :  { %v2071_v18 = vadd.f32 %v5883_v28, %v7490_v44  ;;  %5942 = vmatprep.mubr.msk.f32.mxu0 %vm1094_vm4, %v2164_v24 }
 0x358   :  { %v1927_v61 = vpop.f32.mrf.mxu1  ;;  %5943 = vmatmul.mubr.msk.f32.gmra.mxu0 %vm1094_vm4, %v2165_v36 }
 0x359   :  { %vm2103_vm0 = vcmp.gt.f32.partialorder %v2071_v18, 0.0  ;;  %v2070_v21 = vadd.f32 %v1927_v61, %v7495_v37  ;;  %v7517_v61 = vadd.f32 %v739_v45, %v6702_v7 }
 0x35a   :  { %v7506_v62 = vsel %vm2103_vm0, 1.0, %v9784_v10 }
 0x35b   :  { %9804 = vst [vmem:[#allocation138_spill] sm:$0xff] %v7506_v62  ;;  %vm2102_vm2 = vcmp.gt.f32.partialorder %v2070_v21, 0.0  ;;  %v2167_v24 = vmul.f32 %v7506_v62, %v2071_v18  ;;  %v9813_v62 = vld [vmem:[#allocation45_spill] sm:$0xff] }
 0x35c   :  { %v7509_v54 = vsel %vm2102_vm2, 1.0, %v9784_v10 }
 0x35d   :  { %9805 = vst [vmem:[#allocation139_spill] sm:$0xff] %v7509_v54  ;;  %v2166_v50 = vmul.f32 %v7509_v54, %v2070_v21  ;;  %v7534_v21 = vadd.f32 %v745_v6, %v6753_v55  ;;  %v9808_v55 = vld [vmem:[#allocation33_spill] sm:$0xff]  ;;  %v753_v54 = vmul.f32 %v9813_v62, %v9813_v62 }
 0x35e   :  { %v5886_v36 = vpop.f32.mrf.mxu1 }
 0x35f   :  { %v2073_v28 = vadd.f32 %v5886_v36, %v7512_v46  ;;  %5945 = vmatprep.mubr.msk.f32.mxu0 %vm1094_vm4, %v2166_v50 }
 0x360   :  { %v1937_v14 = vpop.f32.mrf.mxu1  ;;  %5946 = vmatmul.mubr.msk.f32.gmra.mxu0 %vm1094_vm4, %v2167_v24 }
 0x361   :  { %vm2105_vm3 = vcmp.gt.f32.partialorder %v2073_v28, 0.0  ;;  %v2072_v53 = vadd.f32 %v1937_v14, %v7517_v61  ;;  %v7539_v14 = vadd.f32 %v743_v15, %v6736_v34  ;;  %v9811_v15 = vld [vmem:[#allocation38_spill] sm:$0xff] }
 0x362   :  { %v7528_v18 = vsel %vm2105_vm3, 1.0, %v9784_v10 }
 0x363   :  { %9806 = vst [vmem:[#allocation140_spill] sm:$0xff] %v7528_v18  ;;  %vm2104_vm5 = vcmp.gt.f32.partialorder %v2072_v53, 0.0  ;;  %v2169_v50 = vmul.f32 %v7528_v18, %v2073_v28  ;;  %v747_v28 = vmul.f32 %v9808_v55, %v9808_v55  ;;  %v9812_v18 = vld [vmem:[#allocation34_spill] sm:$0xff] }
 0x364   :  { %v7531_v7 = vsel %vm2104_vm5, 1.0, %v9784_v10 }
 0x365   :  { %9807 = vst [vmem:[#allocation141_spill] sm:$0xff] %v7531_v7  ;;  %v2168_v45 = vmul.f32 %v7531_v7, %v2072_v53 }
 0x366   :  { %v5889_v24 = vpop.f32.mrf.mxu1 }
 0x367   :  { %v2075_v36 = vadd.f32 %v5889_v24, %v7534_v21  ;;  %5948 = vmatprep.mubr.msk.f32.mxu0 %vm1094_vm4, %v2168_v45  ;;  %v7556_v45 = vadd.f32 %v749_v31, %v9811_v15 }
 0x368   :  { %v1947_v51 = vpop.f32.mrf.mxu1  ;;  %5949 = vmatmul.mubr.msk.f32.gmra.mxu0 %vm1094_vm4, %v2169_v50 }
 0x369   :  { %vm2107_vm6 = vcmp.gt.f32.partialorder %v2075_v36, 0.0  ;;  %v2074_v6 = vadd.f32 %v1947_v51, %v7539_v14  ;;  %v7561_v51 = vadd.f32 %v747_v28, %v9812_v18  ;;  %v9817_v18 = vld [vmem:[#allocation46_spill] sm:$0xff] }
 0x36a   :  { %v7550_v53 = vsel %vm2107_vm6, 1.0, %v9784_v10  ;;  %v7578_v28 = vadd.f32 %v753_v54, %v9817_v18 }
 0x36b   :  { %9809 = vst [vmem:[#allocation142_spill] sm:$0xff] %v7550_v53  ;;  %vm2106_vm7 = vcmp.gt.f32.partialorder %v2074_v6, 0.0  ;;  %v2171_v24 = vmul.f32 %v7550_v53, %v2075_v36  ;;  %v9818_v53 = vld [vmem:[#allocation42_spill] sm:$0xff] }
 0x36c   :  { %v7553_v34 = vsel %vm2106_vm7, 1.0, %v9784_v10 }
 0x36d   :  { %9810 = vst [vmem:[#allocation143_spill] sm:$0xff] %v7553_v34  ;;  %v2170_v50 = vmul.f32 %v7553_v34, %v2074_v6  ;;  %v9814_v6 = vld [vmem:[#allocation41_spill] sm:$0xff] }
 0x36e   :  { %v5892_v58 = vpop.f32.mrf.mxu1  ;;  %v751_v36 = vmul.f32 %v9814_v6, %v9814_v6 }
 0x36f   :  { %v2077_v55 = vadd.f32 %v5892_v58, %v7556_v45  ;;  %5951 = vmatprep.mubr.msk.f32.mxu0 %vm1094_vm4, %v2170_v50 }
 0x370   :  { %v1957_v7 = vpop.f32.mrf.mxu1  ;;  %5952 = vmatmul.mubr.msk.f32.gmra.mxu0 %vm1094_vm4, %v2171_v24 }
 0x371   :  { %vm2109_vm8 = vcmp.gt.f32.partialorder %v2077_v55, 0.0  ;;  %v2076_v31 = vadd.f32 %v1957_v7, %v7561_v51  ;;  %v7583_v7 = vadd.f32 %v751_v36, %v9818_v53  ;;  %v9823_v53 = vld [vmem:[#allocation54_spill] sm:$0xff] }
 0x372   :  { %v7572_v15 = vsel %vm2109_vm8, 1.0, %v9784_v10  ;;  %v7600_v36 = vadd.f32 %v757_v38, %v9823_v53 }
 0x373   :  { %9815 = vst [vmem:[#allocation38_spill] sm:$0xff] %v7572_v15  ;;  %vm2108_vm9 = vcmp.gt.f32.partialorder %v2076_v31, 0.0  ;;  %v2173_v24 = vmul.f32 %v7572_v15, %v2077_v55  ;;  %v9824_v15 = vld [vmem:[#allocation50_spill] sm:$0xff] }
 0x374   :  { %v7575_v58 = vsel %vm2108_vm9, 1.0, %v9784_v10 }
 0x375   :  { %9816 = vst [vmem:[#allocation34_spill] sm:$0xff] %v7575_v58  ;;  %v2172_v50 = vmul.f32 %v7575_v58, %v2076_v31  ;;  %v9820_v31 = vld [vmem:[#allocation49_spill] sm:$0xff] }
 0x376   :  { %v5895_v62 = vpop.f32.mrf.mxu1  ;;  %v755_v55 = vmul.f32 %v9820_v31, %v9820_v31 }
 0x377   :  { %v2079_v6 = vadd.f32 %v5895_v62, %v7578_v28  ;;  %5954 = vmatprep.mubr.msk.f32.mxu0 %vm1094_vm4, %v2172_v50 }
 0x378   :  { %v1967_v34 = vpop.f32.mrf.mxu1  ;;  %5955 = vmatmul.mubr.msk.f32.gmra.mxu0 %vm1094_vm4, %v2173_v24 }
 0x379   :  { %vm2111_vm10 = vcmp.gt.f32.partialorder %v2079_v6, 0.0  ;;  %v2078_v54 = vadd.f32 %v1967_v34, %v7583_v7  ;;  %v7605_v34 = vadd.f32 %v755_v55, %v9824_v15  ;;  %v9829_v15 = vld [vmem:[#allocation62_spill] sm:$0xff] }
 0x37a   :  { %v7594_v18 = vsel %vm2111_vm10, 1.0, %v9784_v10  ;;  %v7622_v55 = vadd.f32 %v761_v30, %v9829_v15 }
 0x37b   :  { %9821 = vst [vmem:[#allocation46_spill] sm:$0xff] %v7594_v18  ;;  %vm2110_vm11 = vcmp.gt.f32.partialorder %v2078_v54, 0.0  ;;  %v2175_v24 = vmul.f32 %v7594_v18, %v2079_v6  ;;  %v9830_v18 = vld [vmem:[#allocation58_spill] sm:$0xff] }
 0x37c   :  { %v7597_v62 = vsel %vm2110_vm11, 1.0, %v9784_v10 }
 0x37d   :  { %9822 = vst [vmem:[#allocation42_spill] sm:$0xff] %v7597_v62  ;;  %v2174_v50 = vmul.f32 %v7597_v62, %v2078_v54  ;;  %v9826_v54 = vld [vmem:[#allocation57_spill] sm:$0xff] }
 0x37e   :  { %v5898_v52 = vpop.f32.mrf.mxu1  ;;  %v759_v6 = vmul.f32 %v9826_v54, %v9826_v54 }
 0x37f   :  { %v2081_v31 = vadd.f32 %v5898_v52, %v7600_v36  ;;  %5957 = vmatprep.mubr.msk.f32.mxu0 %vm1094_vm4, %v2174_v50 }
 0x380   :  { %v1977_v58 = vpop.f32.mrf.mxu1  ;;  %5958 = vmatmul.mubr.msk.f32.gmra.mxu0 %vm1094_vm4, %v2175_v24 }
 0x381   :  { %vm2113_vm12 = vcmp.gt.f32.partialorder %v2081_v31, 0.0  ;;  %v2080_v38 = vadd.f32 %v1977_v58, %v7605_v34  ;;  %v7627_v58 = vadd.f32 %v759_v6, %v9830_v18  ;;  %v9835_v18 = vld [vmem:[#allocation70_spill] sm:$0xff] }
 0x382   :  { %v7616_v53 = vsel %vm2113_vm12, 1.0, %v9784_v10  ;;  %v7644_v6 = vadd.f32 %v765_v60, %v9835_v18 }
 0x383   :  { %9827 = vst [vmem:[#allocation54_spill] sm:$0xff] %v7616_v53  ;;  %vm2112_vm13 = vcmp.gt.f32.partialorder %v2080_v38, 0.0  ;;  %v2177_v24 = vmul.f32 %v7616_v53, %v2081_v31  ;;  %v9836_v53 = vld [vmem:[#allocation66_spill] sm:$0xff] }
 0x384   :  { %v7619_v52 = vsel %vm2112_vm13, 1.0, %v9784_v10 }
 0x385   :  { %9828 = vst [vmem:[#allocation50_spill] sm:$0xff] %v7619_v52  ;;  %v2176_v50 = vmul.f32 %v7619_v52, %v2080_v38  ;;  %v9832_v38 = vld [vmem:[#allocation65_spill] sm:$0xff] }
 0x386   :  { %v5901_v29 = vpop.f32.mrf.mxu1  ;;  %v763_v31 = vmul.f32 %v9832_v38, %v9832_v38 }
 0x387   :  { %v2083_v54 = vadd.f32 %v5901_v29, %v7622_v55  ;;  %5960 = vmatprep.mubr.msk.f32.mxu0 %vm1094_vm4, %v2176_v50 }
 0x388   :  { %v1987_v62 = vpop.f32.mrf.mxu1  ;;  %5961 = vmatmul.mubr.msk.f32.gmra.mxu0 %vm1094_vm4, %v2177_v24 }
 0x389   :  { %vm2115_vm14 = vcmp.gt.f32.partialorder %v2083_v54, 0.0  ;;  %v2082_v30 = vadd.f32 %v1987_v62, %v7627_v58  ;;  %v7649_v62 = vadd.f32 %v763_v31, %v9836_v53  ;;  %v9841_v53 = vld [vmem:[#allocation78_spill] sm:$0xff] }
 0x38a   :  { %v7638_v15 = vsel %vm2115_vm14, 1.0, %v9784_v10  ;;  %v7666_v31 = vadd.f32 %v769_v26, %v9841_v53 }
 0x38b   :  { %9833 = vst [vmem:[#allocation62_spill] sm:$0xff] %v7638_v15  ;;  %vm2114_vm15 = vcmp.gt.f32.partialorder %v2082_v30, 0.0  ;;  %v2179_v24 = vmul.f32 %v7638_v15, %v2083_v54  ;;  %v9842_v15 = vld [vmem:[#allocation74_spill] sm:$0xff] }
 0x38c   :  { %v7641_v29 = vsel %vm2114_vm15, 1.0, %v9784_v10 }
 0x38d   :  { %9834 = vst [vmem:[#allocation58_spill] sm:$0xff] %v7641_v29  ;;  %v2178_v50 = vmul.f32 %v7641_v29, %v2082_v30  ;;  %v9838_v30 = vld [vmem:[#allocation73_spill] sm:$0xff] }
 0x38e   :  { %v5904_v32 = vpop.f32.mrf.mxu1  ;;  %v767_v54 = vmul.f32 %v9838_v30, %v9838_v30 }
 0x38f   :  { %v2085_v38 = vadd.f32 %v5904_v32, %v7644_v6  ;;  %5963 = vmatprep.mubr.msk.f32.mxu0 %vm1094_vm4, %v2178_v50 }
 0x390   :  { %v1997_v52 = vpop.f32.mrf.mxu1  ;;  %5964 = vmatmul.mubr.msk.f32.gmra.mxu0 %vm1094_vm4, %v2179_v24 }
 0x391   :  { %vm2117_vm0 = vcmp.gt.f32.partialorder %v2085_v38, 0.0  ;;  %v2084_v60 = vadd.f32 %v1997_v52, %v7649_v62  ;;  %v7671_v52 = vadd.f32 %v767_v54, %v9842_v15  ;;  %v9847_v15 = vld [vmem:[#allocation86_spill] sm:$0xff] }
 0x392   :  { %v7660_v18 = vsel %vm2117_vm0, 1.0, %v9784_v10  ;;  %v7688_v54 = vadd.f32 %v773_v49, %v9847_v15 }
 0x393   :  { %9839 = vst [vmem:[#allocation70_spill] sm:$0xff] %v7660_v18  ;;  %vm2116_vm2 = vcmp.gt.f32.partialorder %v2084_v60, 0.0  ;;  %v2181_v24 = vmul.f32 %v7660_v18, %v2085_v38  ;;  %v9848_v18 = vld [vmem:[#allocation82_spill] sm:$0xff] }
 0x394   :  { %v7663_v32 = vsel %vm2116_vm2, 1.0, %v9784_v10 }
 0x395   :  { %9840 = vst [vmem:[#allocation66_spill] sm:$0xff] %v7663_v32  ;;  %v2180_v50 = vmul.f32 %v7663_v32, %v2084_v60  ;;  %v9844_v60 = vld [vmem:[#allocation81_spill] sm:$0xff] }
 0x396   :  { %v5907_v41 = vpop.f32.mrf.mxu1  ;;  %v771_v38 = vmul.f32 %v9844_v60, %v9844_v60 }
 0x397   :  { %v2087_v30 = vadd.f32 %v5907_v41, %v7666_v31  ;;  %5966 = vmatprep.mubr.msk.f32.mxu0 %vm1094_vm4, %v2180_v50 }
 0x398   :  { %v2007_v29 = vpop.f32.mrf.mxu1  ;;  %5967 = vmatmul.mubr.msk.f32.gmra.mxu0 %vm1094_vm4, %v2181_v24 }
 0x399   :  { %vm2119_vm3 = vcmp.gt.f32.partialorder %v2087_v30, 0.0  ;;  %v2086_v26 = vadd.f32 %v2007_v29, %v7671_v52  ;;  %v7693_v29 = vadd.f32 %v771_v38, %v9848_v18  ;;  %v9853_v18 = vld [vmem:[#allocation94_spill] sm:$0xff] }
 0x39a   :  { %v7682_v53 = vsel %vm2119_vm3, 1.0, %v9784_v10  ;;  %v7710_v38 = vadd.f32 %v777_v8, %v9853_v18 }
 0x39b   :  { %9845 = vst [vmem:[#allocation78_spill] sm:$0xff] %v7682_v53  ;;  %vm2118_vm5 = vcmp.gt.f32.partialorder %v2086_v26, 0.0  ;;  %v2183_v24 = vmul.f32 %v7682_v53, %v2087_v30  ;;  %v9854_v53 = vld [vmem:[#allocation90_spill] sm:$0xff] }
 0x39c   :  { %v7685_v41 = vsel %vm2118_vm5, 1.0, %v9784_v10 }
 0x39d   :  { %9846 = vst [vmem:[#allocation74_spill] sm:$0xff] %v7685_v41  ;;  %v2182_v50 = vmul.f32 %v7685_v41, %v2086_v26  ;;  %v9850_v26 = vld [vmem:[#allocation89_spill] sm:$0xff] }
 0x39e   :  { %v5910_v13 = vpop.f32.mrf.mxu1  ;;  %v775_v30 = vmul.f32 %v9850_v26, %v9850_v26 }
 0x39f   :  { %v2089_v60 = vadd.f32 %v5910_v13, %v7688_v54  ;;  %5969 = vmatprep.mubr.msk.f32.mxu0 %vm1094_vm4, %v2182_v50 }
 0x3a0   :  { %v2017_v32 = vpop.f32.mrf.mxu1  ;;  %5970 = vmatmul.mubr.msk.f32.gmra.mxu0 %vm1094_vm4, %v2183_v24 }
 0x3a1   :  { %vm2121_vm6 = vcmp.gt.f32.partialorder %v2089_v60, 0.0  ;;  %v2088_v49 = vadd.f32 %v2017_v32, %v7693_v29  ;;  %v7715_v32 = vadd.f32 %v775_v30, %v9854_v53  ;;  %v9859_v53 = vld [vmem:[#allocation102_spill] sm:$0xff] }
 0x3a2   :  { %v7704_v15 = vsel %vm2121_vm6, 1.0, %v9784_v10  ;;  %v7732_v30 = vadd.f32 %v781_v16, %v9859_v53 }
 0x3a3   :  { %9851 = vst [vmem:[#allocation86_spill] sm:$0xff] %v7704_v15  ;;  %vm2120_vm7 = vcmp.gt.f32.partialorder %v2088_v49, 0.0  ;;  %v2185_v24 = vmul.f32 %v7704_v15, %v2089_v60  ;;  %v9860_v15 = vld [vmem:[#allocation98_spill] sm:$0xff] }
 0x3a4   :  { %v7707_v13 = vsel %vm2120_vm7, 1.0, %v9784_v10 }
 0x3a5   :  { %9852 = vst [vmem:[#allocation82_spill] sm:$0xff] %v7707_v13  ;;  %v2184_v50 = vmul.f32 %v7707_v13, %v2088_v49  ;;  %v9856_v49 = vld [vmem:[#allocation97_spill] sm:$0xff] }
 0x3a6   :  { %v5913_v42 = vpop.f32.mrf.mxu1  ;;  %v779_v60 = vmul.f32 %v9856_v49, %v9856_v49 }
 0x3a7   :  { %v2091_v26 = vadd.f32 %v5913_v42, %v7710_v38  ;;  %5972 = vmatprep.mubr.msk.f32.mxu0 %vm1094_vm4, %v2184_v50 }
 0x3a8   :  { %v2027_v41 = vpop.f32.mrf.mxu1  ;;  %5973 = vmatmul.mubr.msk.f32.gmra.mxu0 %vm1094_vm4, %v2185_v24 }
 0x3a9   :  { %vm2123_vm8 = vcmp.gt.f32.partialorder %v2091_v26, 0.0  ;;  %v2090_v8 = vadd.f32 %v2027_v41, %v7715_v32  ;;  %v7737_v41 = vadd.f32 %v779_v60, %v9860_v15  ;;  %v9865_v15 = vld [vmem:[#allocation110_spill] sm:$0xff] }
 0x3aa   :  { %v7726_v18 = vsel %vm2123_vm8, 1.0, %v9784_v10  ;;  %v7754_v60 = vadd.f32 %v785_v12, %v9865_v15 }
 0x3ab   :  { %9857 = vst [vmem:[#allocation94_spill] sm:$0xff] %v7726_v18  ;;  %vm2122_vm9 = vcmp.gt.f32.partialorder %v2090_v8, 0.0  ;;  %v2187_v24 = vmul.f32 %v7726_v18, %v2091_v26  ;;  %v9866_v18 = vld [vmem:[#allocation106_spill] sm:$0xff] }
 0x3ac   :  { %v7729_v42 = vsel %vm2122_vm9, 1.0, %v9784_v10 }
 0x3ad   :  { %9858 = vst [vmem:[#allocation90_spill] sm:$0xff] %v7729_v42  ;;  %v2186_v50 = vmul.f32 %v7729_v42, %v2090_v8  ;;  %v9862_v8 = vld [vmem:[#allocation105_spill] sm:$0xff] }
 0x3ae   :  { %v5916_v0 = vpop.f32.mrf.mxu1  ;;  %v783_v26 = vmul.f32 %v9862_v8, %v9862_v8 }
 0x3af   :  { %v2093_v49 = vadd.f32 %v5916_v0, %v7732_v30  ;;  %5975 = vmatprep.mubr.msk.f32.mxu0 %vm1094_vm4, %v2186_v50 }
 0x3b0   :  { %v2037_v13 = vpop.f32.mrf.mxu1  ;;  %5976 = vmatmul.mubr.msk.f32.gmra.mxu0 %vm1094_vm4, %v2187_v24 }
 0x3b1   :  { %vm2125_vm10 = vcmp.gt.f32.partialorder %v2093_v49, 0.0  ;;  %v2092_v16 = vadd.f32 %v2037_v13, %v7737_v41  ;;  %v7759_v13 = vadd.f32 %v783_v26, %v9866_v18  ;;  %v7776_v18 = vadd.f32 %v789_v63, %v7447_v35 }
 0x3b2   :  { %v7748_v53 = vsel %vm2125_vm10, 1.0, %v9784_v10 }
 0x3b3   :  { %9863 = vst [vmem:[#allocation102_spill] sm:$0xff] %v7748_v53  ;;  %vm2124_vm11 = vcmp.gt.f32.partialorder %v2092_v16, 0.0  ;;  %v2189_v24 = vmul.f32 %v7748_v53, %v2093_v49 }
 0x3b4   :  { %v7751_v0 = vsel %vm2124_vm11, 1.0, %v9784_v10 }
 0x3b5   :  { %9864 = vst [vmem:[#allocation98_spill] sm:$0xff] %v7751_v0  ;;  %v2188_v50 = vmul.f32 %v7751_v0, %v2092_v16  ;;  %v9868_v16 = vld [vmem:[#allocation113_spill] sm:$0xff] }
 0x3b6   :  { %v5919_v11 = vpop.f32.mrf.mxu1  ;;  %v787_v49 = vmul.f32 %v9868_v16, %v9868_v16 }
 0x3b7   :  { %v2095_v8 = vadd.f32 %v5919_v11, %v7754_v60  ;;  %5978 = vmatprep.mubr.msk.f32.mxu0 %vm1094_vm4, %v2188_v50 }
 0x3b8   :  { %v2047_v42 = vpop.f32.mrf.mxu1  ;;  %5979 = vmatmul.mubr.msk.f32.gmra.mxu0 %vm1094_vm4, %v2189_v24 }
 0x3b9   :  { %vm2127_vm12 = vcmp.gt.f32.partialorder %v2095_v8, 0.0  ;;  %v2094_v12 = vadd.f32 %v2047_v42, %v7759_v13  ;;  %v7781_v42 = vadd.f32 %v787_v49, %v9869_v1 }
 0x3ba   :  { %v7770_v15 = vsel %vm2127_vm12, 1.0, %v9784_v10 }
 0x3bb   :  { %vm2126_vm13 = vcmp.gt.f32.partialorder %v2094_v12, 0.0  ;;  %v2191_v50 = vmul.f32 %v7770_v15, %v2095_v8 }
 0x3bc   :  { %v7773_v11 = vsel %vm2126_vm13, 1.0, %v9784_v10 }
 0x3bd   :  { %v2190_v26 = vmul.f32 %v7773_v11, %v2094_v12 }
 0x3be   :  { %v5922_v24 = vpop.f32.mrf.mxu1 }
 0x3bf   :  { %v2097_v16 = vadd.f32 %v5922_v24, %v7776_v18  ;;  %5981 = vmatprep.mubr.msk.f32.mxu0 %vm1094_vm4, %v2190_v26 }
 0x3c0   :  { %v2057_v53 = vpop.f32.mrf.mxu1  ;;  %5982 = vmatmul.mubr.msk.f32.gmra.mxu0 %vm1094_vm4, %v2191_v50 }
 0x3c1   :  { %vm2129_vm14 = vcmp.gt.f32.partialorder %v2097_v16, 0.0  ;;  %v2096_v0 = vadd.f32 %v2057_v53, %v7781_v42 }
 0x3c2   :  { %v7788_v63 = vsel %vm2129_vm14, 1.0, %v9784_v10 }
 0x3c3   :  { %vm2128_vm15 = vcmp.gt.f32.partialorder %v2096_v0, 0.0  ;;  %v2193_v8 = vmul.f32 %v7788_v63, %v2097_v16 }
 0x3c4   :  { %v7791_v35 = vsel %vm2128_vm15, 1.0, %v9784_v10 }
 0x3c5   :  { %v2192_v1 = vmul.f32 %v7791_v35, %v2096_v0 }
 0x3c7   :  { %5984 = vmatprep.mubr.msk.f32.mxu0 %vm1094_vm4, %v2192_v1 }
 0x3c8   :  { %5985 = vmatmul.mubr.msk.f32.gmra.mxu0 %vm1094_vm4, %v2193_v8 }
 0x410   :  { %v5941_v12 = vpop.f32.mrf.mxu0 }
 0x411   :  { %2558 = vrot.lane.b32.xlu1 %v5941_v12, %s6247_s11 }
 0x412   :  { %v2365_v49 = vpop.f32.mrf.mxu0 }
 0x413   :  { %2556 = vrot.lane.b32.xlu0 %v2365_v49, %s6247_s11 }
 0x418   :  { %v5944_v53 = vpop.f32.mrf.mxu0 }
 0x419   :  { %2562 = vrot.lane.b32.xlu1 %v5944_v53, %s6247_s11 }
 0x41a   :  { %v2375_v26 = vpop.f32.mrf.mxu0 }
 0x41b   :  { %2560 = vrot.lane.b32.xlu0 %v2375_v26, %s6247_s11 }
 0x420   :  { %v5947_v50 = vpop.f32.mrf.mxu0 }
 0x421   :  { %2566 = vrot.lane.b32.xlu1 %v5947_v50, %s6247_s11  ;;  %v5449_v50 = vld [vmem:[%s9518_s4 + $0xb8] sm:$0xff] }
 0x422   :  { %v2385_v0 = vpop.f32.mrf.mxu0  ;;  %5987 = vmatprep.subr.mxu1 %v5449_v50 }
 0x423   :  { %2564 = vrot.lane.b32.xlu0 %v2385_v0, %s6247_s11  ;;  %v5448_v0 = vld [vmem:[%s9518_s4 + $0xb0] sm:$0xff]  ;;  %5988 = vmatpush3.msra.mxu1 %v5449_v50 }
 0x424   :  { %5989 = vmatprep.subr.mxu1 %v5448_v0 }
 0x425   :  { %5990 = vmatpush3.msra.mxu1 %v5448_v0 }
 0x428   :  { %v5950_v16 = vpop.f32.mrf.mxu0 }
 0x429   :  { %2570 = vrot.lane.b32.xlu1 %v5950_v16, %s6247_s11 }
 0x42a   :  { %v2395_v24 = vpop.f32.mrf.mxu0 }
 0x42b   :  { %2568 = vrot.lane.b32.xlu0 %v2395_v24, %s6247_s11  ;;  %v5447_v24 = vld [vmem:[%s9518_s4 + $0xa8] sm:$0xff] }
 0x42c   :  { %5991 = vmatprep.subr.mxu1 %v5447_v24 }
 0x42d   :  { %5992 = vmatpush3.msra.mxu1 %v5447_v24 }
 0x430   :  { %v5953_v1 = vpop.f32.mrf.mxu0 }
 0x431   :  { %2574 = vrot.lane.b32.xlu1 %v5953_v1, %s6247_s11 }
 0x432   :  { %v2405_v8 = vpop.f32.mrf.mxu0 }
 0x433   :  { %2572 = vrot.lane.b32.xlu0 %v2405_v8, %s6247_s11  ;;  %v5446_v8 = vld [vmem:[%s9518_s4 + $0xa0] sm:$0xff] }
 0x434   :  { %5993 = vmatprep.subr.mxu1 %v5446_v8 }
 0x435   :  { %5994 = vmatpush3.msra.mxu1 %v5446_v8 }
 0x438   :  { %v5956_v12 = vpop.f32.mrf.mxu0 }
 0x439   :  { %2578 = vrot.lane.b32.xlu1 %v5956_v12, %s6247_s11  ;;  %v5445_v12 = vld [vmem:[%s9518_s4 + $0x98] sm:$0xff] }
 0x43a   :  { %v2415_v49 = vpop.f32.mrf.mxu0  ;;  %5995 = vmatprep.subr.mxu1 %v5445_v12 }
 0x43b   :  { %2576 = vrot.lane.b32.xlu0 %v2415_v49, %s6247_s11  ;;  %v5444_v49 = vld [vmem:[%s9518_s4 + $0x90] sm:$0xff]  ;;  %5996 = vmatpush3.msra.mxu1 %v5445_v12 }
 0x43c   :  { %5997 = vmatprep.subr.mxu1 %v5444_v49 }
 0x43d   :  { %5998 = vmatpush3.msra.mxu1 %v5444_v49 }
 0x440   :  { %v5959_v53 = vpop.f32.mrf.mxu0 }
 0x441   :  { %2582 = vrot.lane.b32.xlu1 %v5959_v53, %s6247_s11  ;;  %v5443_v53 = vld [vmem:[%s9518_s4 + $0x88] sm:$0xff] }
 0x442   :  { %v2425_v26 = vpop.f32.mrf.mxu0  ;;  %5999 = vmatprep.subr.mxu1 %v5443_v53 }
 0x443   :  { %2580 = vrot.lane.b32.xlu0 %v2425_v26, %s6247_s11  ;;  %6000 = vmatpush3.msra.mxu1 %v5443_v53  ;;  %v5442_v26 = vld [vmem:[%s9518_s4 + $0x80] sm:$0xff] }
 0x444   :  { %6001 = vmatprep.subr.mxu1 %v5442_v26 }
 0x445   :  { %6002 = vmatpush3.msra.mxu1 %v5442_v26 }
 0x448   :  { %v5962_v16 = vpop.f32.mrf.mxu0 }
 0x449   :  { %2586 = vrot.lane.b32.xlu1 %v5962_v16, %s6247_s11 }
 0x44a   :  { %v2435_v1 = vpop.f32.mrf.mxu0 }
 0x44b   :  { %2584 = vrot.lane.b32.xlu0 %v2435_v1, %s6247_s11 }
 0x450   :  { %v5965_v8 = vpop.f32.mrf.mxu0 }
 0x483   :  { %v2559_v50 = vpop.permute.xlu1 %2558 }
 0x484   :  { %v2653_v0 = vadd.f32 %v2559_v50, %v7450_v57  ;;  %v2445_v57 = vpop.f32.mrf.mxu0 }
 0x485   :  { %v2557_v16 = vpop.permute.xlu0 %2556 }
 0x486   :  { %vm2685_vm0 = vcmp.gt.f32.partialorder %v2653_v0, 0.0  ;;  %v2652_v24 = vadd.f32 %v2557_v16, %v7453_v5  ;;  %v5968_v0 = vpop.f32.mrf.mxu0 }
 0x487   :  { %v2717_v1 = vsel %vm2685_vm0, 1.0, %v9784_v10 }
 0x488   :  { %vm2684_vm2 = vcmp.gt.f32.partialorder %v2652_v24, 0.0  ;;  %2789 = vrot.lane.b32.xlu1 %v2717_v1, %s6247_s11  ;;  %v2455_v1 = vpop.f32.mrf.mxu0 }
 0x489   :  { %v2716_v12 = vsel %vm2684_vm2, 1.0, %v9784_v10 }
 0x48a   :  { %2787 = vrot.lane.b32.xlu0 %v2716_v12, %s6247_s11 }
 0x48b   :  { %v2563_v49 = vpop.permute.xlu1 %2562 }
 0x48c   :  { %v2655_v53 = vadd.f32 %v2563_v49, %v7468_v22  ;;  %2590 = vrot.lane.b32.xlu1 %v5965_v8, %s6247_s11  ;;  %v5971_v49 = vpop.f32.mrf.mxu0 }
 0x48d   :  { %v2561_v26 = vpop.permute.xlu0 %2560 }
 0x48e   :  { %vm2687_vm3 = vcmp.gt.f32.partialorder %v2655_v53, 0.0  ;;  %v2654_v5 = vadd.f32 %v2561_v26, %v7473_v33  ;;  %2588 = vrot.lane.b32.xlu0 %v2445_v57, %s6247_s11  ;;  %v2465_v26 = vpop.f32.mrf.mxu0 }
 0x48f   :  { %v2719_v50 = vsel %vm2687_vm3, 1.0, %v9784_v10 }
 0x490   :  { %vm2686_vm5 = vcmp.gt.f32.partialorder %v2654_v5, 0.0  ;;  %2793 = vrot.lane.b32.xlu1 %v2719_v50, %s6247_s11 }
 0x491   :  { %v2718_v16 = vsel %vm2686_vm5, 1.0, %v9784_v10 }
 0x492   :  { %2791 = vrot.lane.b32.xlu0 %v2718_v16, %s6247_s11 }
 0x493   :  { %v2567_v22 = vpop.permute.xlu1 %2566 }
 0x494   :  { %v2657_v24 = vadd.f32 %v2567_v22, %v7490_v44  ;;  %2594 = vrot.lane.b32.xlu1 %v5968_v0, %s6247_s11  ;;  %v5974_v0 = vpop.f32.mrf.mxu0 }
 0x495   :  { %v2565_v8 = vpop.permute.xlu0 %2564 }
 0x496   :  { %vm2689_vm6 = vcmp.gt.f32.partialorder %v2657_v24, 0.0  ;;  %v2656_v33 = vadd.f32 %v2565_v8, %v7495_v37  ;;  %2592 = vrot.lane.b32.xlu0 %v2455_v1, %s6247_s11  ;;  %v2475_v24 = vpop.f32.mrf.mxu0 }
 0x497   :  { %v2721_v12 = vsel %vm2689_vm6, 1.0, %v9784_v10 }
 0x498   :  { %vm2688_vm7 = vcmp.gt.f32.partialorder %v2656_v33, 0.0  ;;  %2797 = vrot.lane.b32.xlu1 %v2721_v12, %s6247_s11  ;;  %v5977_v33 = vpop.f32.mrf.mxu0 }
 0x499   :  { %v2720_v53 = vsel %vm2688_vm7, 1.0, %v9784_v10 }
 0x49a   :  { %2795 = vrot.lane.b32.xlu0 %v2720_v53, %s6247_s11  ;;  %v2485_v53 = vpop.f32.mrf.mxu0 }
 0x49b   :  { %v2571_v44 = vpop.permute.xlu1 %2570 }
 0x49c   :  { %v2659_v57 = vadd.f32 %v2571_v44, %v7512_v46  ;;  %2598 = vrot.lane.b32.xlu1 %v5971_v49, %s6247_s11 }
 0x49d   :  { %v2569_v5 = vpop.permute.xlu0 %2568 }
 0x49e   :  { %vm2691_vm8 = vcmp.gt.f32.partialorder %v2659_v57, 0.0  ;;  %v2658_v37 = vadd.f32 %v2569_v5, %v7517_v61  ;;  %2596 = vrot.lane.b32.xlu0 %v2465_v26, %s6247_s11  ;;  %v5980_v26 = vpop.f32.mrf.mxu0 }
 0x49f   :  { %v2723_v50 = vsel %vm2691_vm8, 1.0, %v9784_v10 }
 0x4a0   :  { %vm2690_vm9 = vcmp.gt.f32.partialorder %v2658_v37, 0.0  ;;  %2801 = vrot.lane.b32.xlu1 %v2723_v50, %s6247_s11  ;;  %v2495_v50 = vpop.f32.mrf.mxu0 }
 0x4a1   :  { %v2722_v16 = vsel %vm2690_vm9, 1.0, %v9784_v10 }
 0x4a2   :  { %2799 = vrot.lane.b32.xlu0 %v2722_v16, %s6247_s11 }
 0x4a3   :  { %v2575_v46 = vpop.permute.xlu1 %2574 }
 0x4a4   :  { %v2661_v22 = vadd.f32 %v2575_v46, %v7534_v21  ;;  %2602 = vrot.lane.b32.xlu1 %v5974_v0, %s6247_s11  ;;  %v5983_v46 = vpop.f32.mrf.mxu0 }
 0x4a5   :  { %v2573_v1 = vpop.permute.xlu0 %2572 }
 0x4a6   :  { %vm2693_vm10 = vcmp.gt.f32.partialorder %v2661_v22, 0.0  ;;  %v2660_v61 = vadd.f32 %v2573_v1, %v7539_v14  ;;  %2600 = vrot.lane.b32.xlu0 %v2475_v24, %s6247_s11  ;;  %v2505_v1 = vpop.f32.mrf.mxu0 }
 0x4a7   :  { %v2725_v8 = vsel %vm2693_vm10, 1.0, %v9784_v10 }
 0x4a8   :  { %vm2692_vm11 = vcmp.gt.f32.partialorder %v2660_v61, 0.0  ;;  %2805 = vrot.lane.b32.xlu1 %v2725_v8, %s6247_s11 }
 0x4a9   :  { %v2724_v12 = vsel %vm2692_vm11, 1.0, %v9784_v10 }
 0x4aa   :  { %2803 = vrot.lane.b32.xlu0 %v2724_v12, %s6247_s11 }
 0x4ab   :  { %v2579_v21 = vpop.permute.xlu1 %2578 }
 0x4ac   :  { %v2663_v49 = vadd.f32 %v2579_v21, %v7556_v45  ;;  %2606 = vrot.lane.b32.xlu1 %v5977_v33, %s6247_s11  ;;  %v5986_v33 = vpop.f32.mrf.mxu0 }
 0x4ad   :  { %v2577_v44 = vpop.permute.xlu0 %2576 }
 0x4ae   :  { %vm2695_vm12 = vcmp.gt.f32.partialorder %v2663_v49, 0.0  ;;  %v2662_v14 = vadd.f32 %v2577_v44, %v7561_v51  ;;  %2604 = vrot.lane.b32.xlu0 %v2485_v53, %s6247_s11 }
 0x4af   :  { %v2727_v57 = vsel %vm2695_vm12, 1.0, %v9784_v10 }
 0x4b0   :  { %vm2694_vm13 = vcmp.gt.f32.partialorder %v2662_v14, 0.0  ;;  %2809 = vrot.lane.b32.xlu1 %v2727_v57, %s6247_s11 }
 0x4b1   :  { %v2726_v5 = vsel %vm2694_vm13, 1.0, %v9784_v10 }
 0x4b2   :  { %2807 = vrot.lane.b32.xlu0 %v2726_v5, %s6247_s11 }
 0x4b3   :  { %v2583_v45 = vpop.permute.xlu1 %2582 }
 0x4b4   :  { %v2665_v37 = vadd.f32 %v2583_v45, %v7578_v28  ;;  %2610 = vrot.lane.b32.xlu1 %v5980_v26, %s6247_s11 }
 0x4b5   :  { %v2581_v0 = vpop.permute.xlu0 %2580 }
 0x4b6   :  { %vm2697_vm14 = vcmp.gt.f32.partialorder %v2665_v37, 0.0  ;;  %v2664_v51 = vadd.f32 %v2581_v0, %v7583_v7  ;;  %2608 = vrot.lane.b32.xlu0 %v2495_v50, %s6247_s11 }
 0x4b7   :  { %v2729_v16 = vsel %vm2697_vm14, 1.0, %v9784_v10 }
 0x4b8   :  { %vm2696_vm15 = vcmp.gt.f32.partialorder %v2664_v51, 0.0  ;;  %2813 = vrot.lane.b32.xlu1 %v2729_v16, %s6247_s11 }
 0x4b9   :  { %v2728_v22 = vsel %vm2696_vm15, 1.0, %v9784_v10 }
 0x4ba   :  { %2811 = vrot.lane.b32.xlu0 %v2728_v22, %s6247_s11 }
 0x4bb   :  { %v2587_v28 = vpop.permute.xlu1 %2586 }
 0x4bc   :  { %v2667_v24 = vadd.f32 %v2587_v28, %v7600_v36  ;;  %2614 = vrot.lane.b32.xlu1 %v5983_v46, %s6247_s11  ;;  %v2515_v36 = vpop.f32.mrf.mxu0 }
 0x4bd   :  { %v2585_v61 = vpop.permute.xlu0 %2584 }
 0x4be   :  { %vm2699_vm0 = vcmp.gt.f32.partialorder %v2667_v24, 0.0  ;;  %v2666_v7 = vadd.f32 %v2585_v61, %v7605_v34  ;;  %2612 = vrot.lane.b32.xlu0 %v2505_v1, %s6247_s11  ;;  %v7904_v34 = vld [vmem:[%s9519_s5] ss:$0 sm:$0xff] }
 0x4bf   :  { %v2731_v8 = vsel %vm2699_vm0, 1.0, %v9784_v10 }
 0x4c0   :  { %vm2698_vm2 = vcmp.gt.f32.partialorder %v2666_v7, 0.0  ;;  %2817 = vrot.lane.b32.xlu1 %v2731_v8, %s6247_s11 }
 0x4c1   :  { %v2730_v12 = vsel %vm2698_vm2, 1.0, %v9784_v10 }
 0x4c2   :  { %2815 = vrot.lane.b32.xlu0 %v2730_v12, %s6247_s11 }
 0x4c4   :  { %2618 = vrot.lane.b32.xlu1 %v5986_v33, %s6247_s11 }
 0x4c6   :  { %2616 = vrot.lane.b32.xlu0 %v2515_v36, %s6247_s11 }
 0x4fa   :  { %v2790_v21 = vpop.permute.xlu1 %2789 }
 0x4fb   :  { %v7910_v44 = vmul.f32 %v7904_v34, %v2790_v21 }
 0x4fc   :  { %v2788_v49 = vpop.permute.xlu0 %2787 }
 0x4fd   :  { %v7907_v53 = vmul.f32 %v7904_v34, %v2788_v49 }
 0x4fe   :  { %v2591_v14 = vpop.permute.xlu1 %2590 }
 0x4ff   :  { %v2669_v57 = vadd.f32 %v2591_v14, %v7622_v55  ;;  %6003 = vmatprep.mubr.msk.f32.mxu1 %vm1094_vm4, %v7907_v53 }
 0x500   :  { %6004 = vmatmul.mubr.msk.f32.vlgmr.msra.gmra.mxu1 %vm1094_vm4, %v7910_v44  ;;  %v2589_v26 = vpop.permute.xlu0 %2588 }
 0x501   :  { %vm2701_vm3 = vcmp.gt.f32.partialorder %v2669_v57, 0.0  ;;  %v2668_v5 = vadd.f32 %v2589_v26, %v7627_v58 }
 0x502   :  { %v2733_v45 = vsel %vm2701_vm3, 1.0, %v9784_v10  ;;  %v2794_v37 = vpop.permute.xlu1 %2793 }
 0x503   :  { %vm2700_vm5 = vcmp.gt.f32.partialorder %v2668_v5, 0.0  ;;  %2821 = vrot.lane.b32.xlu1 %v2733_v45, %s6247_s11  ;;  %v7926_v51 = vmul.f32 %v7904_v34, %v2794_v37 }
 0x504   :  { %v2732_v50 = vsel %vm2700_vm5, 1.0, %v9784_v10  ;;  %v2792_v0 = vpop.permute.xlu0 %2791 }
 0x505   :  { %v7922_v55 = vmul.f32 %v7904_v34, %v2792_v0  ;;  %2819 = vrot.lane.b32.xlu0 %v2732_v50, %s6247_s11 }
 0x506   :  { %v2595_v16 = vpop.permute.xlu1 %2594 }
 0x507   :  { %v2671_v58 = vadd.f32 %v2595_v16, %v7644_v6  ;;  %6006 = vmatprep.mubr.msk.f32.mxu1 %vm1094_vm4, %v7922_v55 }
 0x508   :  { %6007 = vmatmul.mubr.msk.f32.gmra.mxu1 %vm1094_vm4, %v7926_v51  ;;  %v2593_v46 = vpop.permute.xlu0 %2592 }
 0x509   :  { %vm2703_vm6 = vcmp.gt.f32.partialorder %v2671_v58, 0.0  ;;  %v2670_v22 = vadd.f32 %v2593_v46, %v7649_v62 }
 0x50a   :  { %v2735_v28 = vsel %vm2703_vm6, 1.0, %v9784_v10  ;;  %v2798_v24 = vpop.permute.xlu1 %2797 }
 0x50b   :  { %vm2702_vm7 = vcmp.gt.f32.partialorder %v2670_v22, 0.0  ;;  %2825 = vrot.lane.b32.xlu1 %v2735_v28, %s6247_s11  ;;  %v7942_v7 = vmul.f32 %v7904_v34, %v2798_v24 }
 0x50c   :  { %v2734_v1 = vsel %vm2702_vm7, 1.0, %v9784_v10  ;;  %v2796_v61 = vpop.permute.xlu0 %2795 }
 0x50d   :  { %v7938_v6 = vmul.f32 %v7904_v34, %v2796_v61  ;;  %2823 = vrot.lane.b32.xlu0 %v2734_v1, %s6247_s11 }
 0x50e   :  { %v2599_v8 = vpop.permute.xlu1 %2598 }
 0x50f   :  { %v2673_v62 = vadd.f32 %v2599_v8, %v7666_v31  ;;  %6009 = vmatprep.mubr.msk.f32.mxu1 %vm1094_vm4, %v7938_v6 }
 0x510   :  { %6010 = vmatmul.mubr.msk.f32.gmra.mxu1 %vm1094_vm4, %v7942_v7  ;;  %v2597_v33 = vpop.permute.xlu0 %2596 }
 0x511   :  { %vm2705_vm8 = vcmp.gt.f32.partialorder %v2673_v62, 0.0  ;;  %v2672_v12 = vadd.f32 %v2597_v33, %v7671_v52 }
 0x512   :  { %v2737_v36 = vsel %vm2705_vm8, 1.0, %v9784_v10  ;;  %v2802_v21 = vpop.permute.xlu1 %2801 }
 0x513   :  { %vm2704_vm9 = vcmp.gt.f32.partialorder %v2672_v12, 0.0  ;;  %2829 = vrot.lane.b32.xlu1 %v2737_v36, %s6247_s11  ;;  %v7958_v57 = vmul.f32 %v7904_v34, %v2802_v21 }
 0x514   :  { %v2736_v49 = vsel %vm2704_vm9, 1.0, %v9784_v10  ;;  %v2800_v14 = vpop.permute.xlu0 %2799 }
 0x515   :  { %v7954_v31 = vmul.f32 %v7904_v34, %v2800_v14  ;;  %2827 = vrot.lane.b32.xlu0 %v2736_v49, %s6247_s11 }
 0x516   :  { %v2603_v26 = vpop.permute.xlu1 %2602 }
 0x517   :  { %v2675_v52 = vadd.f32 %v2603_v26, %v7688_v54  ;;  %6012 = vmatprep.mubr.msk.f32.mxu1 %vm1094_vm4, %v7954_v31 }
 0x518   :  { %6013 = vmatmul.mubr.msk.f32.gmra.mxu1 %vm1094_vm4, %v7958_v57  ;;  %v2601_v5 = vpop.permute.xlu0 %2600 }
 0x519   :  { %vm2707_vm10 = vcmp.gt.f32.partialorder %v2675_v52, 0.0  ;;  %v2674_v45 = vadd.f32 %v2601_v5, %v7693_v29 }
 0x51a   :  { %v2739_v37 = vsel %vm2707_vm10, 1.0, %v9784_v10  ;;  %v2806_v50 = vpop.permute.xlu1 %2805 }
 0x51b   :  { %vm2706_vm11 = vcmp.gt.f32.partialorder %v2674_v45, 0.0  ;;  %2833 = vrot.lane.b32.xlu1 %v2739_v37, %s6247_s11  ;;  %v7974_v58 = vmul.f32 %v7904_v34, %v2806_v50 }
 0x51c   :  { %v2738_v0 = vsel %vm2706_vm11, 1.0, %v9784_v10  ;;  %v2804_v16 = vpop.permute.xlu0 %2803 }
 0x51d   :  { %v7970_v54 = vmul.f32 %v7904_v34, %v2804_v16  ;;  %2831 = vrot.lane.b32.xlu0 %v2738_v0, %s6247_s11 }
 0x51e   :  { %v2607_v46 = vpop.permute.xlu1 %2606 }
 0x51f   :  { %v2677_v29 = vadd.f32 %v2607_v46, %v7710_v38  ;;  %6015 = vmatprep.mubr.msk.f32.mxu1 %vm1094_vm4, %v7970_v54 }
 0x520   :  { %6016 = vmatmul.mubr.msk.f32.gmra.mxu1 %vm1094_vm4, %v7974_v58  ;;  %v2605_v22 = vpop.permute.xlu0 %2604 }
 0x521   :  { %vm2709_vm12 = vcmp.gt.f32.partialorder %v2677_v29, 0.0  ;;  %v2676_v28 = vadd.f32 %v2605_v22, %v7715_v32  ;;  %v5489_v29 = vld [vmem:[%s9518_s4 + $0x78] sm:$0xff] }
 0x522   :  { %v2741_v24 = vsel %vm2709_vm12, 1.0, %v9784_v10  ;;  %v2810_v1 = vpop.permute.xlu1 %2809  ;;  %6051 = vmatprep.subr.mxu0 %v5489_v29 }
 0x523   :  { %vm2708_vm13 = vcmp.gt.f32.partialorder %v2676_v28, 0.0  ;;  %2837 = vrot.lane.b32.xlu1 %v2741_v24, %s6247_s11  ;;  %v7990_v62 = vmul.f32 %v7904_v34, %v2810_v1  ;;  %6052 = vmatpush3.msra.mxu0 %v5489_v29  ;;  %v5488_v24 = vld [vmem:[%s9518_s4 + $0x70] sm:$0xff] }
 0x524   :  { %v2740_v61 = vsel %vm2708_vm13, 1.0, %v9784_v10  ;;  %v2808_v8 = vpop.permute.xlu0 %2807  ;;  %6053 = vmatprep.subr.mxu0 %v5488_v24 }
 0x525   :  { %v7986_v38 = vmul.f32 %v7904_v34, %v2808_v8  ;;  %2835 = vrot.lane.b32.xlu0 %v2740_v61, %s6247_s11  ;;  %6054 = vmatpush3.msra.mxu0 %v5488_v24 }
 0x526   :  { %v2611_v33 = vpop.permute.xlu1 %2610 }
 0x527   :  { %v2679_v32 = vadd.f32 %v2611_v33, %v7732_v30  ;;  %6018 = vmatprep.mubr.msk.f32.mxu1 %vm1094_vm4, %v7986_v38  ;;  %v5486_v33 = vld [vmem:[%s9518_s4 + $0x60] sm:$0xff] }
 0x528   :  { %6019 = vmatmul.mubr.msk.f32.gmra.mxu1 %vm1094_vm4, %v7990_v62  ;;  %v2609_v12 = vpop.permute.xlu0 %2608 }
 0x529   :  { %vm2711_vm14 = vcmp.gt.f32.partialorder %v2679_v32, 0.0  ;;  %v2678_v36 = vadd.f32 %v2609_v12, %v7737_v41  ;;  %v5484_v12 = vld [vmem:[%s9518_s4 + $0x50] sm:$0xff] }
 0x52a   :  { %v2743_v21 = vsel %vm2711_vm14, 1.0, %v9784_v10  ;;  %v2814_v49 = vpop.permute.xlu1 %2813 }
 0x52b   :  { %vm2710_vm15 = vcmp.gt.f32.partialorder %v2678_v36, 0.0  ;;  %2841 = vrot.lane.b32.xlu1 %v2743_v21, %s6247_s11  ;;  %v8006_v52 = vmul.f32 %v7904_v34, %v2814_v49  ;;  %v9870_v36 = vld [vmem:[#allocation119_spill] sm:$0xff]  ;;  %v9883_v21 = vld [vmem:[#allocation130_spill] sm:$0xff]  ;;  %v9884_v49 = vld [vmem:[#allocation133_spill] sm:$0xff] }
 0x52c   :  { %v2742_v14 = vsel %vm2710_vm15, 1.0, %v9784_v10  ;;  %v2812_v26 = vpop.permute.xlu0 %2811 }
 0x52d   :  { %v8002_v30 = vmul.f32 %v7904_v34, %v2812_v26  ;;  %2839 = vrot.lane.b32.xlu0 %v2742_v14, %s6247_s11  ;;  %v9885_v14 = vld [vmem:[#allocation132_spill] sm:$0xff] }
 0x52e   :  { %v2615_v5 = vpop.permute.xlu1 %2614 }
 0x52f   :  { %v2681_v41 = vadd.f32 %v2615_v5, %v7754_v60  ;;  %6021 = vmatprep.mubr.msk.f32.mxu1 %vm1094_vm4, %v8002_v30 }
 0x530   :  { %6022 = vmatmul.mubr.msk.f32.gmra.mxu1 %vm1094_vm4, %v8006_v52  ;;  %v2613_v45 = vpop.permute.xlu0 %2612 }
 0x531   :  { %vm2713_vm0 = vcmp.gt.f32.partialorder %v2681_v41, 0.0  ;;  %v2680_v37 = vadd.f32 %v2613_v45, %v7759_v13 }
 0x532   :  { %v2745_v50 = vsel %vm2713_vm0, 1.0, %v9784_v10  ;;  %v2818_v0 = vpop.permute.xlu1 %2817 }
 0x533   :  { %vm2712_vm2 = vcmp.gt.f32.partialorder %v2680_v37, 0.0  ;;  %2845 = vrot.lane.b32.xlu1 %v2745_v50, %s6247_s11  ;;  %v8025_v13 = vmul.f32 %v7904_v34, %v2818_v0 }
 0x534   :  { %v2744_v16 = vsel %vm2712_vm2, 1.0, %v9784_v10  ;;  %v2816_v46 = vpop.permute.xlu0 %2815 }
 0x535   :  { %v8018_v60 = vmul.f32 %v7904_v34, %v2816_v46  ;;  %2843 = vrot.lane.b32.xlu0 %v2744_v16, %s6247_s11 }
 0x536   :  { %v2619_v22 = vpop.permute.xlu1 %2618 }
 0x537   :  { %v2683_v28 = vadd.f32 %v2619_v22, %v7776_v18  ;;  %6024 = vmatprep.mubr.msk.f32.mxu1 %vm1094_vm4, %v8018_v60  ;;  %v5487_v18 = vld [vmem:[%s9518_s4 + $0x68] sm:$0xff] }
 0x538   :  { %6025 = vmatmul.mubr.msk.f32.gmra.mxu1 %vm1094_vm4, %v8025_v13  ;;  %v2617_v1 = vpop.permute.xlu0 %2616  ;;  %6055 = vmatprep.subr.mxu0 %v5487_v18 }
 0x539   :  { %vm2715_vm3 = vcmp.gt.f32.partialorder %v2683_v28, 0.0  ;;  %v2682_v61 = vadd.f32 %v2617_v1, %v7781_v42  ;;  %6056 = vmatpush3.msra.mxu0 %v5487_v18  ;;  %v5485_v42 = vld [vmem:[%s9518_s4 + $0x58] sm:$0xff] }
 0x53a   :  { %v2747_v8 = vsel %vm2715_vm3, 1.0, %v9784_v10  ;;  %6057 = vmatprep.subr.mxu0 %v5486_v33 }
 0x53b   :  { %vm2714_vm5 = vcmp.gt.f32.partialorder %v2682_v61, 0.0  ;;  %2849 = vrot.lane.b32.xlu1 %v2747_v8, %s6247_s11  ;;  %6058 = vmatpush3.msra.mxu0 %v5486_v33 }
 0x53c   :  { %v2746_v32 = vsel %vm2714_vm5, 1.0, %v9784_v10  ;;  %6059 = vmatprep.subr.mxu0 %v5485_v42  ;;  %v5483_v10 = vld [vmem:[%s9518_s4 + $0x48] sm:$0xff] }
 0x53d   :  { %2847 = vrot.lane.b32.xlu0 %v2746_v32, %s6247_s11  ;;  %6060 = vmatpush3.msra.mxu0 %v5485_v42  ;;  %v9887_v32 = vld [vmem:[#allocation134_spill] sm:$0xff] }
 0x53e   :  { %6061 = vmatprep.subr.mxu0 %v5484_v12 }
 0x53f   :  { %3641 = vrot.lane.b32.xlu1 %v7202_v23, %s6247_s11  ;;  %6062 = vmatpush3.msra.mxu0 %v5484_v12  ;;  %v5482_v23 = vld [vmem:[%s9518_s4 + $0x40] sm:$0xff] }
 0x540   :  { %6063 = vmatprep.subr.mxu0 %v5483_v10 }
 0x541   :  { %3639 = vrot.lane.b32.xlu0 %v7195_v3, %s6247_s11  ;;  %6064 = vmatpush3.msra.mxu0 %v5483_v10  ;;  %v9871_v3 = vmov 0.0   ;;  %v9889_v10 = vld [vmem:[#allocation136_spill] sm:$0xff] }
 0x542   :  { %6065 = vmatprep.subr.mxu0 %v5482_v23 }
 0x543   :  { %3645 = vrot.lane.b32.xlu1 %v7215_v27, %s6247_s11  ;;  %6066 = vmatpush3.msra.mxu0 %v5482_v23  ;;  %v9872_v27 = vld [vmem:[#allocation121_spill] sm:$0xff] }
 0x544   :  { %4640 = vmatprep.subr.mxu0 %v9871_v3 }
 0x545   :  { %3643 = vrot.lane.b32.xlu0 %v9870_v36, %s6247_s11 }
 0x547   :  { %3649 = vrot.lane.b32.xlu1 %v7226_v47, %s6247_s11  ;;  %v9874_v47 = vld [vmem:[#allocation123_spill] sm:$0xff] }
 0x549   :  { %3647 = vrot.lane.b32.xlu0 %v7222_v48, %s6247_s11  ;;  %v9873_v48 = vld [vmem:[#allocation120_spill] sm:$0xff] }
 0x54b   :  { %3653 = vrot.lane.b32.xlu1 %v7238_v25, %s6247_s11  ;;  %v9876_v25 = vld [vmem:[#allocation125_spill] sm:$0xff] }
 0x54d   :  { %3651 = vrot.lane.b32.xlu0 %v7234_v40, %s6247_s11  ;;  %v9875_v40 = vld [vmem:[#allocation122_spill] sm:$0xff] }
 0x54f   :  { %3657 = vrot.lane.b32.xlu1 %v7250_v56, %s6247_s11  ;;  %v9878_v56 = vld [vmem:[#allocation127_spill] sm:$0xff] }
 0x551   :  { %3655 = vrot.lane.b32.xlu0 %v7246_v19, %s6247_s11  ;;  %v9877_v19 = vld [vmem:[#allocation124_spill] sm:$0xff] }
 0x553   :  { %3661 = vrot.lane.b32.xlu1 %v7262_v9, %s6247_s11  ;;  %v9880_v9 = vld [vmem:[#allocation129_spill] sm:$0xff] }
 0x555   :  { %3659 = vrot.lane.b32.xlu0 %v7258_v17, %s6247_s11  ;;  %v9879_v17 = vld [vmem:[#allocation126_spill] sm:$0xff] }
 0x557   :  { %3665 = vrot.lane.b32.xlu1 %v7274_v39, %s6247_s11 }
 0x559   :  { %3663 = vrot.lane.b32.xlu0 %v7270_v59, %s6247_s11  ;;  %v9881_v59 = vld [vmem:[#allocation128_spill] sm:$0xff] }
 0x55b   :  { %3669 = vrot.lane.b32.xlu1 %v7286_v20, %s6247_s11 }
 0x55d   :  { %3667 = vrot.lane.b32.xlu0 %v7282_v4, %s6247_s11  ;;  %v9882_v4 = vld [vmem:[#allocation131_spill] sm:$0xff] }
 0x55f   :  { %3673 = vrot.lane.b32.xlu1 %v7299_v43, %s6247_s11 }
 0x561   :  { %3671 = vrot.lane.b32.xlu0 %v7293_v2, %s6247_s11 }
 0x563   :  { %3677 = vrot.lane.b32.xlu1 %v9872_v27, %s6247_s11 }
 0x565   :  { %3675 = vrot.lane.b32.xlu0 %v9873_v48, %s6247_s11  ;;  %v9890_v48 = vld [vmem:[#allocation139_spill] sm:$0xff] }
 0x567   :  { %3681 = vrot.lane.b32.xlu1 %v9874_v47, %s6247_s11 }
 0x569   :  { %3679 = vrot.lane.b32.xlu0 %v9875_v40, %s6247_s11  ;;  %v9891_v40 = vld [vmem:[#allocation138_spill] sm:$0xff] }
 0x56b   :  { %3685 = vrot.lane.b32.xlu1 %v9876_v25, %s6247_s11 }
 0x56d   :  { %3683 = vrot.lane.b32.xlu0 %v9877_v19, %s6247_s11 }
 0x56f   :  { %3689 = vrot.lane.b32.xlu1 %v9878_v56, %s6247_s11 }
 0x571   :  { %3687 = vrot.lane.b32.xlu0 %v9879_v17, %s6247_s11  ;;  %v9892_v17 = vld [vmem:[#allocation141_spill] sm:$0xff] }
 0x573   :  { %3693 = vrot.lane.b32.xlu1 %v9880_v9, %s6247_s11 }
 0x575   :  { %3691 = vrot.lane.b32.xlu0 %v9881_v59, %s6247_s11  ;;  %v2822_v39 = vpop.permute.xlu1 %2821  ;;  %v9893_v59 = vld [vmem:[#allocation140_spill] sm:$0xff] }
 0x576   :  { %v8121_v43 = vmul.f32 %v7904_v34, %v2822_v39 }
 0x577   :  { %3697 = vrot.lane.b32.xlu1 %v9882_v4, %s6247_s11  ;;  %v2820_v20 = vpop.permute.xlu0 %2819 }
 0x578   :  { %v8118_v2 = vmul.f32 %v7904_v34, %v2820_v20 }
 0x579   :  { %3695 = vrot.lane.b32.xlu0 %v9883_v21, %s6247_s11  ;;  %v9895_v21 = vld [vmem:[#allocation142_spill] sm:$0xff] }
 0x57a   :  { %6027 = vmatprep.mubr.msk.f32.mxu1 %vm1094_vm4, %v8118_v2 }
 0x57b   :  { %3701 = vrot.lane.b32.xlu1 %v9884_v49, %s6247_s11  ;;  %6028 = vmatmul.mubr.msk.f32.gmra.mxu1 %vm1094_vm4, %v8121_v43 }
 0x57d   :  { %3699 = vrot.lane.b32.xlu0 %v9885_v14, %s6247_s11  ;;  %v2826_v26 = vpop.permute.xlu1 %2825 }
 0x57e   :  { %v8137_v45 = vmul.f32 %v7904_v34, %v2826_v26 }
 0x57f   :  { %v2824_v5 = vpop.permute.xlu0 %2823 }
 0x580   :  { %v8134_v41 = vmul.f32 %v7904_v34, %v2824_v5  ;;  %v9896_v5 = vld [vmem:[#allocation34_spill] sm:$0xff] }
 0x581   :  { %4224 = vrot.lane.b32.xlu0 %v7907_v53, %s6247_s11 }
 0x582   :  { %6030 = vmatprep.mubr.msk.f32.mxu1 %vm1094_vm4, %v8134_v41 }
 0x583   :  { %6031 = vmatmul.mubr.msk.f32.gmra.mxu1 %vm1094_vm4, %v8137_v45 }
 0x585   :  { %4226 = vrot.lane.b32.xlu0 %v7910_v44, %s6247_s11  ;;  %v2830_v37 = vpop.permute.xlu1 %2829 }
 0x586   :  { %v8151_v16 = vmul.f32 %v7904_v34, %v2830_v37 }
 0x587   :  { %v2828_v50 = vpop.permute.xlu0 %2827 }
 0x588   :  { %v8148_v0 = vmul.f32 %v7904_v34, %v2828_v50 }
 0x589   :  { %4228 = vrot.lane.b32.xlu0 %v7922_v55, %s6247_s11 }
 0x58a   :  { %6033 = vmatprep.mubr.msk.f32.mxu1 %vm1094_vm4, %v8148_v0 }
 0x58b   :  { %6034 = vmatmul.mubr.msk.f32.gmra.mxu1 %vm1094_vm4, %v8151_v16 }
 0x58d   :  { %4230 = vrot.lane.b32.xlu0 %v7926_v51, %s6247_s11  ;;  %v2834_v53 = vpop.permute.xlu1 %2833 }
 0x58e   :  { %v8165_v29 = vmul.f32 %v7904_v34, %v2834_v53 }
 0x58f   :  { %v2832_v44 = vpop.permute.xlu0 %2831 }
 0x590   :  { %v8162_v46 = vmul.f32 %v7904_v34, %v2832_v44  ;;  %v9899_v44 = vld [vmem:[#allocation46_spill] sm:$0xff] }
 0x591   :  { %4232 = vrot.lane.b32.xlu0 %v7938_v6, %s6247_s11 }
 0x592   :  { %6036 = vmatprep.mubr.msk.f32.mxu1 %vm1094_vm4, %v8162_v46 }
 0x593   :  { %6037 = vmatmul.mubr.msk.f32.gmra.mxu1 %vm1094_vm4, %v8165_v29 }
 0x595   :  { %4234 = vrot.lane.b32.xlu0 %v7942_v7, %s6247_s11  ;;  %v2838_v55 = vpop.permute.xlu1 %2837 }
 0x596   :  { %v8179_v28 = vmul.f32 %v7904_v34, %v2838_v55 }
 0x597   :  { %v2836_v51 = vpop.permute.xlu0 %2835 }
 0x598   :  { %v8176_v22 = vmul.f32 %v7904_v34, %v2836_v51  ;;  %v3774_v51 = vld [vmem:[%s9518_s4 + $0x38] sm:$0xff] }
 0x599   :  { %4236 = vrot.lane.b32.xlu0 %v7954_v31, %s6247_s11  ;;  %6115 = vmatprep.subr.mxu1 %v3774_v51 }
 0x59a   :  { %6039 = vmatprep.mubr.msk.f32.mxu1 %vm1094_vm4, %v8176_v22  ;;  %6116 = vmatpush3.msra.mxu1 %v3774_v51 }
 0x59b   :  { %6040 = vmatmul.mubr.msk.f32.gmra.mxu1 %vm1094_vm4, %v8179_v28 }
 0x59d   :  { %4238 = vrot.lane.b32.xlu0 %v7958_v57, %s6247_s11  ;;  %v2842_v6 = vpop.permute.xlu1 %2841 }
 0x59e   :  { %v8193_v1 = vmul.f32 %v7904_v34, %v2842_v6  ;;  %v3773_v6 = vld [vmem:[%s9518_s4 + $0x30] sm:$0xff] }
 0x59f   :  { %v2840_v7 = vpop.permute.xlu0 %2839  ;;  %6117 = vmatprep.subr.mxu1 %v3773_v6 }
 0x5a0   :  { %v8190_v24 = vmul.f32 %v7904_v34, %v2840_v7  ;;  %v9901_v7 = vld [vmem:[#allocation54_spill] sm:$0xff]  ;;  %6118 = vmatpush3.msra.mxu1 %v3773_v6 }
 0x5a1   :  { %4240 = vrot.lane.b32.xlu0 %v7970_v54, %s6247_s11 }
 0x5a2   :  { %6042 = vmatprep.mubr.msk.f32.mxu1 %vm1094_vm4, %v8190_v24 }
 0x5a3   :  { %6043 = vmatmul.mubr.msk.f32.gmra.mxu1 %vm1094_vm4, %v8193_v1 }
 0x5a5   :  { %4242 = vrot.lane.b32.xlu0 %v7974_v58, %s6247_s11  ;;  %v2846_v31 = vpop.permute.xlu1 %2845 }
 0x5a6   :  { %v8207_v18 = vmul.f32 %v7904_v34, %v2846_v31  ;;  %v3771_v31 = vld [vmem:[%s9518_s4 + $0x20] sm:$0xff] }
 0x5a7   :  { %v2844_v57 = vpop.permute.xlu0 %2843 }
 0x5a8   :  { %v8204_v61 = vmul.f32 %v7904_v34, %v2844_v57  ;;  %v3770_v57 = vld [vmem:[%s9518_s4 + $0x18] sm:$0xff] }
 0x5a9   :  { %4244 = vrot.lane.b32.xlu0 %v7986_v38, %s6247_s11 }
 0x5aa   :  { %6045 = vmatprep.mubr.msk.f32.mxu1 %vm1094_vm4, %v8204_v61 }
 0x5ab   :  { %6046 = vmatmul.mubr.msk.f32.gmra.mxu1 %vm1094_vm4, %v8207_v18 }
 0x5ad   :  { %4246 = vrot.lane.b32.xlu0 %v7990_v62, %s6247_s11  ;;  %v2850_v54 = vpop.permute.xlu1 %2849  ;;  %v9886_v62 = vld [vmem:[#allocation135_spill] sm:$0xff] }
 0x5ae   :  { %v8221_v33 = vmul.f32 %v7904_v34, %v2850_v54  ;;  %v3767_v54 = vld [vmem:[%s9518_s4] sm:$0xff] }
 0x5af   :  { %v2848_v58 = vpop.permute.xlu0 %2847 }
 0x5b0   :  { %v8218_v8 = vmul.f32 %v7904_v34, %v2848_v58 }
 0x5b1   :  { %4248 = vrot.lane.b32.xlu0 %v8002_v30, %s6247_s11 }
 0x5b2   :  { %6048 = vmatprep.mubr.msk.f32.mxu1 %vm1094_vm4, %v8218_v8 }
 0x5b3   :  { %6049 = vmatmul.mubr.msk.f32.gmra.mxu1 %vm1094_vm4, %v8221_v33  ;;  %v8372_v58 = vpop.permute.xlu0 %3639 }
 0x5b5   :  { %4250 = vrot.lane.b32.xlu0 %v8006_v52, %s6247_s11 }
 0x5b9   :  { %4252 = vrot.lane.b32.xlu0 %v8018_v60, %s6247_s11 }
 0x5bd   :  { %4254 = vrot.lane.b32.xlu0 %v8025_v13, %s6247_s11  ;;  %v9888_v13 = vld [vmem:[#allocation137_spill] sm:$0xff] }
 0x5c0   :  { %v6005_v34 = vpop.f32.mrf.mxu1 }
 0x5c1   :  { %4256 = vrot.lane.b32.xlu0 %v8118_v2, %s6247_s11  ;;  %v8241_v42 = vmul.f32 %v6005_v34, %v9887_v32  ;;  %v9894_v2 = vld [vmem:[#allocation143_spill] sm:$0xff] }
 0x5c2   :  { %v3086_v38 = vpop.f32.mrf.mxu1 }
 0x5c3   :  { %v8238_v30 = vmul.f32 %v3086_v38, %v9886_v62 }
 0x5c5   :  { %6067 = vmatprep.mubr.msk.f32.mxu0 %vm1094_vm4, %v8238_v30  ;;  %4258 = vrot.lane.b32.xlu0 %v8121_v43, %s6247_s11 }
 0x5c6   :  { %6068 = vmatmul.mubr.msk.f32.vlgmr.msra.gmra.mxu0 %vm1094_vm4, %v8241_v42 }
 0x5c8   :  { %v6008_v52 = vpop.f32.mrf.mxu1 }
 0x5c9   :  { %4260 = vrot.lane.b32.xlu0 %v8134_v41, %s6247_s11  ;;  %v8255_v23 = vmul.f32 %v6008_v52, %v9889_v10  ;;  %v9902_v10 = vld [vmem:[#allocation58_spill] sm:$0xff] }
 0x5ca   :  { %v3096_v60 = vpop.f32.mrf.mxu1 }
 0x5cb   :  { %v8252_v12 = vmul.f32 %v3096_v60, %v9888_v13 }
 0x5cd   :  { %6070 = vmatprep.mubr.msk.f32.mxu0 %vm1094_vm4, %v8252_v12  ;;  %4262 = vrot.lane.b32.xlu0 %v8137_v45, %s6247_s11  ;;  %v9897_v45 = vld [vmem:[#allocation38_spill] sm:$0xff] }
 0x5ce   :  { %6071 = vmatmul.mubr.msk.f32.gmra.mxu0 %vm1094_vm4, %v8255_v23 }
 0x5d0   :  { %v6011_v36 = vpop.f32.mrf.mxu1 }
 0x5d1   :  { %4264 = vrot.lane.b32.xlu0 %v8148_v0, %s6247_s11  ;;  %v8269_v25 = vmul.f32 %v6011_v36, %v9891_v40 }
 0x5d2   :  { %v3106_v27 = vpop.f32.mrf.mxu1 }
 0x5d3   :  { %v8266_v47 = vmul.f32 %v3106_v27, %v9890_v48  ;;  %v9903_v27 = vld [vmem:[#allocation62_spill] sm:$0xff] }
 0x5d5   :  { %6073 = vmatprep.mubr.msk.f32.mxu0 %vm1094_vm4, %v8266_v47  ;;  %4266 = vrot.lane.b32.xlu0 %v8151_v16, %s6247_s11  ;;  %v9898_v16 = vld [vmem:[#allocation42_spill] sm:$0xff] }
 0x5d6   :  { %6074 = vmatmul.mubr.msk.f32.gmra.mxu0 %vm1094_vm4, %v8269_v25 }
 0x5d8   :  { %v6014_v19 = vpop.f32.mrf.mxu1 }
 0x5d9   :  { %4268 = vrot.lane.b32.xlu0 %v8162_v46, %s6247_s11  ;;  %v8283_v39 = vmul.f32 %v6014_v19, %v9893_v59 }
 0x5da   :  { %v3116_v56 = vpop.f32.mrf.mxu1 }
 0x5db   :  { %v8280_v9 = vmul.f32 %v3116_v56, %v9892_v17  ;;  %v9904_v17 = vld [vmem:[#allocation66_spill] sm:$0xff] }
 0x5dd   :  { %6076 = vmatprep.mubr.msk.f32.mxu0 %vm1094_vm4, %v8280_v9  ;;  %4270 = vrot.lane.b32.xlu0 %v8165_v29, %s6247_s11 }
 0x5de   :  { %6077 = vmatmul.mubr.msk.f32.gmra.mxu0 %vm1094_vm4, %v8283_v39 }
 0x5e0   :  { %v6017_v4 = vpop.f32.mrf.mxu1 }
 0x5e1   :  { %4272 = vrot.lane.b32.xlu0 %v8176_v22, %s6247_s11  ;;  %v8297_v49 = vmul.f32 %v6017_v4, %v9895_v21  ;;  %v9900_v22 = vld [vmem:[#allocation50_spill] sm:$0xff] }
 0x5e2   :  { %v3126_v20 = vpop.f32.mrf.mxu1  ;;  %v9905_v4 = vld [vmem:[#allocation70_spill] sm:$0xff] }
 0x5e3   :  { %v8294_v43 = vmul.f32 %v3126_v20, %v9894_v2 }
 0x5e5   :  { %6079 = vmatprep.mubr.msk.f32.mxu0 %vm1094_vm4, %v8294_v43  ;;  %4274 = vrot.lane.b32.xlu0 %v8179_v28, %s6247_s11 }
 0x5e6   :  { %6080 = vmatmul.mubr.msk.f32.gmra.mxu0 %vm1094_vm4, %v8297_v49 }
 0x5e8   :  { %v6020_v14 = vpop.f32.mrf.mxu1 }
 0x5e9   :  { %4276 = vrot.lane.b32.xlu0 %v8190_v24, %s6247_s11  ;;  %v8311_v37 = vmul.f32 %v6020_v14, %v9897_v45 }
 0x5ea   :  { %v3136_v26 = vpop.f32.mrf.mxu1 }
 0x5eb   :  { %v8308_v41 = vmul.f32 %v3136_v26, %v9896_v5  ;;  %v9906_v5 = vld [vmem:[#allocation74_spill] sm:$0xff] }
 0x5ed   :  { %6082 = vmatprep.mubr.msk.f32.mxu0 %vm1094_vm4, %v8308_v41  ;;  %4278 = vrot.lane.b32.xlu0 %v8193_v1, %s6247_s11  ;;  %v3772_v1 = vld [vmem:[%s9518_s4 + $0x28] sm:$0xff] }
 0x5ee   :  { %6083 = vmatmul.mubr.msk.f32.gmra.mxu0 %vm1094_vm4, %v8311_v37  ;;  %6119 = vmatprep.subr.mxu1 %v3772_v1 }
 0x5ef   :  { %6120 = vmatpush3.msra.mxu1 %v3772_v1 }
 0x5f0   :  { %v6023_v50 = vpop.f32.mrf.mxu1  ;;  %6121 = vmatprep.subr.mxu1 %v3771_v31 }
 0x5f1   :  { %4280 = vrot.lane.b32.xlu0 %v8204_v61, %s6247_s11  ;;  %v8325_v46 = vmul.f32 %v6023_v50, %v9899_v44  ;;  %6122 = vmatpush3.msra.mxu1 %v3771_v31  ;;  %v3769_v61 = vld [vmem:[%s9518_s4 + $0x10] sm:$0xff]  ;;  %v9907_v50 = vld [vmem:[#allocation78_spill] sm:$0xff] }
 0x5f2   :  { %v3146_v0 = vpop.f32.mrf.mxu1  ;;  %6123 = vmatprep.subr.mxu1 %v3770_v57 }
 0x5f3   :  { %v8322_v53 = vmul.f32 %v3146_v0, %v9898_v16  ;;  %6124 = vmatpush3.msra.mxu1 %v3770_v57  ;;  %v9910_v57 = vld [vmem:[#allocation90_spill] sm:$0xff] }
 0x5f4   :  { %6125 = vmatprep.subr.mxu1 %v3769_v61 }
 0x5f5   :  { %6085 = vmatprep.mubr.msk.f32.mxu0 %vm1094_vm4, %v8322_v53  ;;  %4282 = vrot.lane.b32.xlu0 %v8207_v18, %s6247_s11  ;;  %v3768_v18 = vld [vmem:[%s9518_s4 + $0x8] sm:$0xff] }
 0x5f6   :  { %6086 = vmatmul.mubr.msk.f32.gmra.mxu0 %vm1094_vm4, %v8325_v46  ;;  %6126 = vmatpush3.msra.mxu1 %v3769_v61 }
 0x5f7   :  { %6127 = vmatprep.subr.mxu1 %v3768_v18 }
 0x5f8   :  { %v6026_v29 = vpop.f32.mrf.mxu1  ;;  %6128 = vmatpush3.msra.mxu1 %v3768_v18  ;;  %v9911_v18 = vld [vmem:[#allocation94_spill] sm:$0xff] }
 0x5f9   :  { %4284 = vrot.lane.b32.xlu0 %v8218_v8, %s6247_s11  ;;  %v8345_v24 = vmul.f32 %v6026_v29, %v9901_v7  ;;  %6129 = vmatprep.subr.mxu1 %v3767_v54  ;;  %v8374_v8 = vpop.permute.xlu0 %3643 }
 0x5fa   :  { %v3156_v55 = vpop.f32.mrf.mxu1  ;;  %6130 = vmatpush3.msra.mxu1 %v3767_v54 }
 0x5fb   :  { %v8339_v28 = vmul.f32 %v3156_v55, %v9900_v22  ;;  %4865 = vmatprep.subr.mxu1 %v9871_v3  ;;  %v9908_v55 = vld [vmem:[#allocation82_spill] sm:$0xff] }
 0x5fc   :  { %v9909_v22 = vld [vmem:[#allocation86_spill] sm:$0xff] }
 0x5fd   :  { %6088 = vmatprep.mubr.msk.f32.mxu0 %vm1094_vm4, %v8339_v28  ;;  %4286 = vrot.lane.b32.xlu0 %v8221_v33, %s6247_s11  ;;  %v8376_v33 = vpop.permute.xlu0 %3647 }
 0x5fe   :  { %6089 = vmatmul.mubr.msk.f32.gmra.mxu0 %vm1094_vm4, %v8345_v24 }
 0x601   :  { %v8378_v34 = vpop.permute.xlu0 %3651 }
 0x605   :  { %v8380_v38 = vpop.permute.xlu0 %3655 }
 0x609   :  { %v8382_v62 = vpop.permute.xlu0 %3659 }
 0x60d   :  { %v8384_v32 = vpop.permute.xlu0 %3663 }
 0x611   :  { %v8386_v60 = vpop.permute.xlu0 %3667 }
 0x615   :  { %v8398_v40 = vpop.permute.xlu0 %3671 }
 0x619   :  { %v8406_v2 = vpop.permute.xlu0 %3675 }
 0x61d   :  { %v8412_v26 = vpop.permute.xlu0 %3679 }
 0x621   :  { %v8424_v44 = vpop.permute.xlu0 %3683 }
 0x625   :  { %v8436_v7 = vpop.permute.xlu0 %3687 }
 0x63b   :  { %v6029_v52 = vpop.f32.mrf.mxu1 }
 0x63c   :  { %v8392_v48 = vmul.f32 %v6029_v52, %v9903_v27  ;;  %v8444_v52 = vpop.permute.xlu0 %3691 }
 0x63d   :  { %v3166_v13 = vpop.f32.mrf.mxu1 }
 0x63e   :  { %v8389_v36 = vmul.f32 %v3166_v13, %v9902_v10 }
 0x640   :  { %6091 = vmatprep.mubr.msk.f32.mxu0 %vm1094_vm4, %v8389_v36  ;;  %v8450_v27 = vpop.permute.xlu0 %3695 }
 0x641   :  { %6092 = vmatmul.mubr.msk.f32.gmra.mxu0 %vm1094_vm4, %v8392_v48 }
 0x643   :  { %v6032_v19 = vpop.f32.mrf.mxu1 }
 0x644   :  { %v8404_v20 = vmul.f32 %v6032_v19, %v9905_v4  ;;  %v9912_v19 = vld [vmem:[#allocation98_spill] sm:$0xff] }
 0x645   :  { %v3176_v56 = vpop.f32.mrf.mxu1 }
 0x646   :  { %v8401_v59 = vmul.f32 %v3176_v56, %v9904_v17  ;;  %v9913_v17 = vld [vmem:[#allocation102_spill] sm:$0xff] }
 0x648   :  { %6094 = vmatprep.mubr.msk.f32.mxu0 %vm1094_vm4, %v8401_v59 }
 0x649   :  { %6095 = vmatmul.mubr.msk.f32.gmra.mxu0 %vm1094_vm4, %v8404_v20 }
 0x64b   :  { %v6035_v21 = vpop.f32.mrf.mxu1 }
 0x64c   :  { %v8418_v0 = vmul.f32 %v6035_v21, %v9907_v50 }
 0x64d   :  { %v3186_v14 = vpop.f32.mrf.mxu1 }
 0x64e   :  { %v8415_v45 = vmul.f32 %v3186_v14, %v9906_v5  ;;  %v8462_v14 = vpop.permute.xlu0 %3699 }
 0x650   :  { %6097 = vmatprep.mubr.msk.f32.mxu0 %vm1094_vm4, %v8415_v45 }
 0x651   :  { %6098 = vmatmul.mubr.msk.f32.gmra.mxu0 %vm1094_vm4, %v8418_v0 }
 0x653   :  { %v6038_v16 = vpop.f32.mrf.mxu1 }
 0x654   :  { %v8430_v6 = vmul.f32 %v6038_v16, %v9909_v22 }
 0x655   :  { %v3196_v29 = vpop.f32.mrf.mxu1 }
 0x656   :  { %v8427_v51 = vmul.f32 %v3196_v29, %v9908_v55  ;;  %v4225_v29 = vpop.permute.xlu0 %4224 }
 0x657   :  { %v8476_v22 = vsel %vm1094_vm4, %v8238_v30, %v4225_v29 }
 0x658   :  { %6100 = vmatprep.mubr.msk.f32.mxu0 %vm1094_vm4, %v8427_v51 }
 0x659   :  { %6101 = vmatmul.mubr.msk.f32.gmra.mxu0 %vm1094_vm4, %v8430_v6 }
 0x65b   :  { %v6041_v1 = vpop.f32.mrf.mxu1 }
 0x65c   :  { %v8442_v54 = vmul.f32 %v6041_v1, %v9911_v18 }
 0x65d   :  { %v3206_v31 = vpop.f32.mrf.mxu1 }
 0x65e   :  { %v8439_v61 = vmul.f32 %v3206_v31, %v9910_v57  ;;  %v9914_v31 = vld [vmem:[#allocation3_spill] sm:$0xff] }
 0x65f   :  { %v4385_v57 = vmul.f32 2.0, %v9914_v31  ;;  %v4526_v31 = vld [vmem:[%s9520_s2 + $0x70] sm:$0xff] }
 0x660   :  { %6103 = vmatprep.mubr.msk.f32.mxu0 %vm1094_vm4, %v8439_v61 }
 0x661   :  { %6104 = vmatmul.mubr.msk.f32.gmra.mxu0 %vm1094_vm4, %v8442_v54  ;;  %v4449_v18 = vmul.f32 %v4385_v57, %v8476_v22  ;;  %v4557_v57 = vld [vmem:[%s9520_s2 + $0x168] sm:$0xff] }
 0x663   :  { %v6044_v13 = vpop.f32.mrf.mxu1 }
 0x664   :  { %v8456_v4 = vmul.f32 %v6044_v13, %v9913_v17 }
 0x665   :  { %v3216_v10 = vpop.f32.mrf.mxu1 }
 0x666   :  { %v8453_v56 = vmul.f32 %v3216_v10, %v9912_v19  ;;  %v3642_v10 = vpop.permute.xlu1 %3641 }
 0x668   :  { %6106 = vmatprep.mubr.msk.f32.mxu0 %vm1094_vm4, %v8453_v56 }
 0x669   :  { %6107 = vmatmul.mubr.msk.f32.gmra.mxu0 %vm1094_vm4, %v8456_v4 }
 0x66b   :  { %v6047_v21 = vpop.f32.mrf.mxu1 }
 0x66c   :  { %v8468_v16 = vmul.f32 %v6047_v21, %v7770_v15  ;;  %v3646_v21 = vpop.permute.xlu1 %3645 }
 0x66d   :  { %v3226_v5 = vpop.f32.mrf.mxu1 }
 0x66e   :  { %v8465_v50 = vmul.f32 %v3226_v5, %v7773_v11 }
 0x670   :  { %6109 = vmatprep.mubr.msk.f32.mxu0 %vm1094_vm4, %v8465_v50 }
 0x671   :  { %6110 = vmatmul.mubr.msk.f32.gmra.mxu0 %vm1094_vm4, %v8468_v16 }
 0x673   :  { %v6050_v55 = vpop.f32.mrf.mxu1 }
 0x674   :  { %v8483_v15 = vmul.f32 %v6050_v55, %v7788_v63  ;;  %v4559_v55 = vld [vmem:[%s9520_s2 + $0x178] sm:$0xff] }
 0x675   :  { %v3236_v1 = vpop.f32.mrf.mxu1 }
 0x676   :  { %v8480_v11 = vmul.f32 %v3236_v1, %v7791_v35  ;;  %v4558_v1 = vld [vmem:[%s9520_s2 + $0x170] sm:$0xff] }
 0x678   :  { %6112 = vmatprep.mubr.msk.f32.mxu0 %vm1094_vm4, %v8480_v11 }
 0x679   :  { %6113 = vmatmul.mubr.msk.f32.gmra.mxu0 %vm1094_vm4, %v8483_v15 }
 0x67a   :  { %4704 = vmatprep.mubr.f32.mxu0 %v4449_v18  ;;  %v4525_v18 = vld [vmem:[%s9520_s2 + $0x68] sm:$0xff] }
 0x686   :  { %v6069_v30 = vpop.f32.mrf.mxu0 }
 0x687   :  { %v3736_v17 = vmul.f32 %v6069_v30, %v3642_v10 }
 0x688   :  { %v3448_v13 = vpop.f32.mrf.mxu0 }
 0x689   :  { %v3735_v19 = vmul.f32 %v8372_v58, %v3448_v13  ;;  %v4527_v58 = vld [vmem:[%s9520_s2 + $0x78] sm:$0xff]  ;;  %v3650_v13 = vpop.permute.xlu1 %3649 }
 0x68a   :  { %4641 = vmatpush1.msra.mxu0 %v4527_v58 }
 0x68b   :  { %4128 = vrot.lane.b32.xlu1 %v3735_v19, %s6247_s11  ;;  %6131 = vmatprep.mubr.msk.f32.mxu1 %vm1094_vm4, %v3735_v19 }
 0x68c   :  { %6132 = vmatmul.mubr.msk.f32.vlgmr.msra.gmra.mxu1 %vm1094_vm4, %v3736_v17  ;;  %4642 = vmatprep.subr.mxu0 %v9871_v3 }
 0x68d   :  { %4866 = vmatpush1.msra.mxu1 %v4559_v55  ;;  %4643 = vmatpush1.msra.mxu0 %v4526_v31  ;;  %v3654_v58 = vpop.permute.xlu1 %3653  ;;  %v4553_v31 = vld [vmem:[%s9520_s2 + $0x148] sm:$0xff] }
 0x68e   :  { %v6072_v63 = vpop.f32.mrf.mxu0  ;;  %4867 = vmatprep.subr.mxu1 %v9871_v3  ;;  %4644 = vmatprep.subr.mxu0 %v9871_v3 }
 0x68f   :  { %4130 = vrot.lane.b32.xlu1 %v3736_v17, %s6247_s11  ;;  %v3738_v29 = vmul.f32 %v6072_v63, %v3646_v21  ;;  %4868 = vmatpush1.msra.mxu1 %v4558_v1  ;;  %v4556_v17 = vld [vmem:[%s9520_s2 + $0x160] sm:$0xff] }
 0x690   :  { %v3458_v35 = vpop.f32.mrf.mxu0  ;;  %4869 = vmatprep.subr.mxu1 %v9871_v3  ;;  %4645 = vmatpush1.msra.mxu0 %v4525_v18  ;;  %v4524_v63 = vld [vmem:[%s9520_s2 + $0x60] sm:$0xff] }
 0x691   :  { %v3737_v5 = vmul.f32 %v8374_v8, %v3458_v35  ;;  %4870 = vmatpush1.msra.mxu1 %v4557_v57  ;;  %4646 = vmatprep.subr.mxu0 %v9871_v3  ;;  %v4523_v35 = vld [vmem:[%s9520_s2 + $0x58] sm:$0xff]  ;;  %v4521_v57 = vld [vmem:[%s9520_s2 + $0x48] sm:$0xff]  ;;  %v4520_v18 = vld [vmem:[%s9520_s2 + $0x40] sm:$0xff] }
 0x692   :  { %4871 = vmatprep.subr.mxu1 %v9871_v3  ;;  %4647 = vmatpush1.msra.mxu0 %v4524_v63 }
 0x693   :  { %4132 = vrot.lane.b32.xlu1 %v3737_v5, %s6247_s11  ;;  %6134 = vmatprep.mubr.msk.f32.mxu1 %vm1094_vm4, %v3737_v5  ;;  %v4554_v5 = vld [vmem:[%s9520_s2 + $0x150] sm:$0xff] }
 0x694   :  { %6135 = vmatmul.mubr.msk.f32.gmra.mxu1 %vm1094_vm4, %v3738_v29  ;;  %4648 = vmatprep.subr.mxu0 %v9871_v3 }
 0x695   :  { %4872 = vmatpush1.msra.mxu1 %v4556_v17  ;;  %4649 = vmatpush1.msra.mxu0 %v4523_v35  ;;  %v3658_v17 = vpop.permute.xlu1 %3657  ;;  %v4550_v35 = vld [vmem:[%s9520_s2 + $0x130] sm:$0xff] }
 0x696   :  { %v6075_v8 = vpop.f32.mrf.mxu0  ;;  %4873 = vmatprep.subr.mxu1 %v9871_v3  ;;  %4650 = vmatprep.subr.mxu0 %v9871_v3 }
 0x697   :  { %4134 = vrot.lane.b32.xlu1 %v3738_v29, %s6247_s11  ;;  %v3740_v19 = vmul.f32 %v6075_v8, %v3650_v13  ;;  %v4522_v29 = vld [vmem:[%s9520_s2 + $0x50] sm:$0xff]  ;;  %v4551_v13 = vld [vmem:[%s9520_s2 + $0x138] sm:$0xff] }
 0x698   :  { %v3468_v30 = vpop.f32.mrf.mxu0  ;;  %4651 = vmatpush1.msra.mxu0 %v4522_v29 }
 0x699   :  { %v3739_v10 = vmul.f32 %v8376_v33, %v3468_v30  ;;  %v4555_v33 = vld [vmem:[%s9520_s2 + $0x158] sm:$0xff]  ;;  %4652 = vmatprep.subr.mxu0 %v9871_v3 }
 0x69a   :  { %4874 = vmatpush1.msra.mxu1 %v4555_v33  ;;  %4653 = vmatpush1.msra.mxu0 %v4521_v57 }
 0x69b   :  { %4136 = vrot.lane.b32.xlu1 %v3739_v10, %s6247_s11  ;;  %6137 = vmatprep.mubr.msk.f32.mxu1 %vm1094_vm4, %v3739_v10  ;;  %v4519_v10 = vld [vmem:[%s9520_s2 + $0x38] sm:$0xff] }
 0x69c   :  { %6138 = vmatmul.mubr.msk.f32.gmra.mxu1 %vm1094_vm4, %v3740_v19  ;;  %4875 = vmatprep.subr.mxu1 %v9871_v3 }
 0x69d   :  { %4876 = vmatpush1.msra.mxu1 %v4554_v5  ;;  %4654 = vmatprep.subr.mxu0 %v9871_v3  ;;  %v4517_v5 = vld [vmem:[%s9520_s2 + $0x28] sm:$0xff] }
 0x69e   :  { %v6078_v21 = vpop.f32.mrf.mxu0  ;;  %4877 = vmatprep.subr.mxu1 %v9871_v3  ;;  %4655 = vmatpush1.msra.mxu0 %v4520_v18  ;;  %v4515_v18 = vld [vmem:[%s9520_s2 + $0x18] sm:$0xff] }
 0x69f   :  { %4138 = vrot.lane.b32.xlu1 %v3740_v19, %s6247_s11  ;;  %v3742_v8 = vmul.f32 %v6078_v21, %v3654_v58  ;;  %4878 = vmatpush1.msra.mxu1 %v4553_v31  ;;  %v4518_v21 = vld [vmem:[%s9520_s2 + $0x30] sm:$0xff]  ;;  %v4516_v58 = vld [vmem:[%s9520_s2 + $0x20] sm:$0xff] }
 0x6a0   :  { %v3478_v55 = vpop.f32.mrf.mxu0  ;;  %4879 = vmatprep.subr.mxu1 %v9871_v3  ;;  %4656 = vmatprep.subr.mxu0 %v9871_v3 }
 0x6a1   :  { %v3741_v1 = vmul.f32 %v8378_v34, %v3478_v55  ;;  %v4552_v34 = vld [vmem:[%s9520_s2 + $0x140] sm:$0xff]  ;;  %4657 = vmatpush1.msra.mxu0 %v4519_v10  ;;  %v4545_v10 = vld [vmem:[%s9520_s2 + $0x108] sm:$0xff] }
 0x6a2   :  { %4880 = vmatpush1.msra.mxu1 %v4552_v34  ;;  %4658 = vmatprep.subr.mxu0 %v9871_v3  ;;  %v4548_v55 = vld [vmem:[%s9520_s2 + $0x120] sm:$0xff]  ;;  %v4547_v34 = vld [vmem:[%s9520_s2 + $0x118] sm:$0xff] }
 0x6a3   :  { %4140 = vrot.lane.b32.xlu1 %v3741_v1, %s6247_s11  ;;  %6140 = vmatprep.mubr.msk.f32.mxu1 %vm1094_vm4, %v3741_v1 }
 0x6a4   :  { %6141 = vmatmul.mubr.msk.f32.gmra.mxu1 %vm1094_vm4, %v3742_v8  ;;  %4881 = vmatprep.subr.mxu1 %v9871_v3 }
 0x6a5   :  { %4882 = vmatpush1.msra.mxu1 %v4551_v13  ;;  %4659 = vmatpush1.msra.mxu0 %v4518_v21  ;;  %v4544_v21 = vld [vmem:[%s9520_s2 + $0x100] sm:$0xff] }
 0x6a6   :  { %v6081_v30 = vpop.f32.mrf.mxu0  ;;  %4883 = vmatprep.subr.mxu1 %v9871_v3  ;;  %4660 = vmatprep.subr.mxu0 %v9871_v3 }
 0x6a7   :  { %4142 = vrot.lane.b32.xlu1 %v3742_v8, %s6247_s11  ;;  %v3744_v33 = vmul.f32 %v6081_v30, %v3658_v17  ;;  %4884 = vmatpush1.msra.mxu1 %v4550_v35  ;;  %v3662_v8 = vpop.permute.xlu1 %3661  ;;  %v4514_v30 = vld [vmem:[%s9520_s2 + $0x10] sm:$0xff] }
 0x6a8   :  { %v3488_v19 = vpop.f32.mrf.mxu0  ;;  %4885 = vmatprep.subr.mxu1 %v9871_v3  ;;  %4661 = vmatpush1.msra.mxu0 %v4517_v5  ;;  %v4543_v5 = vld [vmem:[%s9520_s2 + $0xf8] sm:$0xff] }
 0x6a9   :  { %v3743_v63 = vmul.f32 %v8380_v38, %v3488_v19  ;;  %v4549_v38 = vld [vmem:[%s9520_s2 + $0x128] sm:$0xff]  ;;  %4662 = vmatprep.subr.mxu0 %v9871_v3 }
 0x6aa   :  { %4886 = vmatpush1.msra.mxu1 %v4549_v38  ;;  %4663 = vmatpush1.msra.mxu0 %v4516_v58  ;;  %v4513_v19 = vld [vmem:[%s9520_s2 + $0x8] sm:$0xff]  ;;  %v4512_v38 = vld [vmem:[%s9520_s2] sm:$0xff]  ;;  %v4542_v58 = vld [vmem:[%s9520_s2 + $0xf0] sm:$0xff] }
 0x6ab   :  { %4144 = vrot.lane.b32.xlu1 %v3743_v63, %s6247_s11  ;;  %6143 = vmatprep.mubr.msk.f32.mxu1 %vm1094_vm4, %v3743_v63  ;;  %v3666_v63 = vpop.permute.xlu1 %3665 }
 0x6ac   :  { %6144 = vmatmul.mubr.msk.f32.gmra.mxu1 %vm1094_vm4, %v3744_v33  ;;  %4887 = vmatprep.subr.mxu1 %v9871_v3 }
 0x6ad   :  { %4888 = vmatpush1.msra.mxu1 %v4548_v55  ;;  %4664 = vmatprep.subr.mxu0 %v9871_v3  ;;  %v4574_v55 = vld [vmem:[%s9520_s2 + $0x1f0] sm:$0xff] }
 0x6ae   :  { %v6084_v29 = vpop.f32.mrf.mxu0  ;;  %4889 = vmatprep.subr.mxu1 %v9871_v3  ;;  %4665 = vmatpush1.msra.mxu0 %v4515_v18  ;;  %v4541_v18 = vld [vmem:[%s9520_s2 + $0xe8] sm:$0xff] }
 0x6af   :  { %4146 = vrot.lane.b32.xlu1 %v3744_v33, %s6247_s11  ;;  %v3746_v57 = vmul.f32 %v6084_v29, %v3662_v8  ;;  %4890 = vmatpush1.msra.mxu1 %v4547_v34  ;;  %v3670_v8 = vpop.permute.xlu1 %3669  ;;  %v4573_v34 = vld [vmem:[%s9520_s2 + $0x1e8] sm:$0xff] }
 0x6b0   :  { %v3498_v1 = vpop.f32.mrf.mxu0  ;;  %4891 = vmatprep.subr.mxu1 %v9871_v3  ;;  %4666 = vmatprep.subr.mxu0 %v9871_v3 }
 0x6b1   :  { %v3745_v31 = vmul.f32 %v8382_v62, %v3498_v1  ;;  %v4546_v62 = vld [vmem:[%s9520_s2 + $0x110] sm:$0xff]  ;;  %4667 = vmatpush1.msra.mxu0 %v4514_v30  ;;  %v4571_v30 = vld [vmem:[%s9520_s2 + $0x1d8] sm:$0xff] }
 0x6b2   :  { %4892 = vmatpush1.msra.mxu1 %v4546_v62  ;;  %4668 = vmatprep.subr.mxu0 %v9871_v3  ;;  %v4540_v62 = vld [vmem:[%s9520_s2 + $0xe0] sm:$0xff] }
 0x6b3   :  { %4148 = vrot.lane.b32.xlu1 %v3745_v31, %s6247_s11  ;;  %6146 = vmatprep.mubr.msk.f32.mxu1 %vm1094_vm4, %v3745_v31 }
 0x6b4   :  { %6147 = vmatmul.mubr.msk.f32.gmra.mxu1 %vm1094_vm4, %v3746_v57  ;;  %4893 = vmatprep.subr.mxu1 %v9871_v3 }
 0x6b5   :  { %4894 = vmatpush1.msra.mxu1 %v4545_v10  ;;  %4669 = vmatpush1.msra.mxu0 %v4513_v19  ;;  %v4570_v10 = vld [vmem:[%s9520_s2 + $0x1d0] sm:$0xff] }
 0x6b6   :  { %v6087_v13 = vpop.f32.mrf.mxu0  ;;  %4895 = vmatprep.subr.mxu1 %v9871_v3  ;;  %4670 = vmatprep.subr.mxu0 %v9871_v3  ;;  %v4538_v19 = vld [vmem:[%s9520_s2 + $0xd0] sm:$0xff] }
 0x6b7   :  { %4150 = vrot.lane.b32.xlu1 %v3746_v57, %s6247_s11  ;;  %v3748_v35 = vmul.f32 %v6087_v13, %v3666_v63  ;;  %4896 = vmatpush1.msra.mxu1 %v4544_v21  ;;  %v4539_v13 = vld [vmem:[%s9520_s2 + $0xd8] sm:$0xff]  ;;  %v4537_v63 = vld [vmem:[%s9520_s2 + $0xc8] sm:$0xff] }
 0x6b8   :  { %v3508_v17 = vpop.f32.mrf.mxu0  ;;  %4671 = vmatpush1.msra.mxu0 %v4512_v38  ;;  %4897 = vmatprep.subr.mxu1 %v9871_v3  ;;  %v4567_v21 = vld [vmem:[%s9520_s2 + $0x1b8] sm:$0xff] }
 0x6b9   :  { %v3747_v33 = vmul.f32 %v8384_v32, %v3508_v17  ;;  %v4575_v32 = vld [vmem:[%s9520_s2 + $0x1f8] sm:$0xff]  ;;  %4672 = vmatprep.subr.mxu0 %v9871_v3  ;;  %v4569_v17 = vld [vmem:[%s9520_s2 + $0x1c8] sm:$0xff] }
 0x6ba   :  { %4898 = vmatpush2.msra.mxu1 %v4575_v32  ;;  %4673 = vmatpush2.msra.mxu0 %v4543_v5  ;;  %v4535_v38 = vld [vmem:[%s9520_s2 + $0xb8] sm:$0xff]  ;;  %v4566_v32 = vld [vmem:[%s9520_s2 + $0x1b0] sm:$0xff] }
 0x6bb   :  { %4152 = vrot.lane.b32.xlu1 %v3747_v33, %s6247_s11  ;;  %6149 = vmatprep.mubr.msk.f32.mxu1 %vm1094_vm4, %v3747_v33  ;;  %v4568_v33 = vld [vmem:[%s9520_s2 + $0x1c0] sm:$0xff]  ;;  %v4534_v5 = vld [vmem:[%s9520_s2 + $0xb0] sm:$0xff] }
 0x6bc   :  { %6150 = vmatmul.mubr.msk.f32.gmra.mxu1 %vm1094_vm4, %v3748_v35  ;;  %4899 = vmatprep.subr.mxu1 %v9871_v3 }
 0x6bd   :  { %4900 = vmatpush2.msra.mxu1 %v4574_v55  ;;  %4674 = vmatprep.subr.mxu0 %v9871_v3  ;;  %v4533_v55 = vld [vmem:[%s9520_s2 + $0xa8] sm:$0xff] }
 0x6be   :  { %v6090_v29 = vpop.f32.mrf.mxu0  ;;  %4901 = vmatprep.subr.mxu1 %v9871_v3  ;;  %4675 = vmatpush2.msra.mxu0 %v4542_v58  ;;  %v4564_v58 = vld [vmem:[%s9520_s2 + $0x1a0] sm:$0xff] }
 0x6bf   :  { %4154 = vrot.lane.b32.xlu1 %v3748_v35, %s6247_s11  ;;  %v3750_v57 = vmul.f32 %v6090_v29, %v3670_v8  ;;  %4676 = vmatprep.subr.mxu0 %v9871_v3  ;;  %v4536_v35 = vld [vmem:[%s9520_s2 + $0xc0] sm:$0xff]  ;;  %v4565_v29 = vld [vmem:[%s9520_s2 + $0x1a8] sm:$0xff]  ;;  %v4563_v8 = vld [vmem:[%s9520_s2 + $0x198] sm:$0xff] }
 0x6c0   :  { %v3518_v1 = vpop.f32.mrf.mxu0  ;;  %4902 = vmatpush2.msra.mxu1 %v4573_v34  ;;  %4677 = vmatpush2.msra.mxu0 %v4541_v18  ;;  %v4530_v34 = vld [vmem:[%s9520_s2 + $0x90] sm:$0xff]  ;;  %v4561_v18 = vld [vmem:[%s9520_s2 + $0x188] sm:$0xff] }
 0x6c1   :  { %v3749_v31 = vmul.f32 %v8386_v60, %v3518_v1  ;;  %v4572_v60 = vld [vmem:[%s9520_s2 + $0x1e0] sm:$0xff]  ;;  %4903 = vmatprep.subr.mxu1 %v9871_v3  ;;  %4678 = vmatprep.subr.mxu0 %v9871_v3 }
 0x6c2   :  { %4904 = vmatpush2.msra.mxu1 %v4572_v60  ;;  %4679 = vmatpush2.msra.mxu0 %v4540_v62  ;;  %v4532_v1 = vld [vmem:[%s9520_s2 + $0xa0] sm:$0xff]  ;;  %v4529_v60 = vld [vmem:[%s9520_s2 + $0x88] sm:$0xff] }
 0x6c3   :  { %4156 = vrot.lane.b32.xlu1 %v3749_v31, %s6247_s11  ;;  %6152 = vmatprep.mubr.msk.f32.mxu1 %vm1094_vm4, %v3749_v31  ;;  %v4531_v31 = vld [vmem:[%s9520_s2 + $0x98] sm:$0xff]  ;;  %v4560_v62 = vld [vmem:[%s9520_s2 + $0x180] sm:$0xff] }
 0x6c4   :  { %6153 = vmatmul.mubr.msk.f32.gmra.mxu1 %vm1094_vm4, %v3750_v57  ;;  %4905 = vmatprep.subr.mxu1 %v9871_v3 }
 0x6c5   :  { %4906 = vmatpush2.msra.mxu1 %v4571_v30  ;;  %4680 = vmatprep.subr.mxu0 %v9871_v3  ;;  %v4528_v30 = vld [vmem:[%s9520_s2 + $0x80] sm:$0xff] }
 0x6c6   :  { %4907 = vmatprep.subr.mxu1 %v9871_v3  ;;  %4681 = vmatpush2.msra.mxu0 %v4539_v13 }
 0x6c7   :  { %4158 = vrot.lane.b32.xlu1 %v3750_v57, %s6247_s11  ;;  %4908 = vmatpush2.msra.mxu1 %v4570_v10  ;;  %v4562_v57 = vld [vmem:[%s9520_s2 + $0x190] sm:$0xff]  ;;  %v3674_v10 = vpop.permute.xlu1 %3673 }
 0x6c8   :  { %4682 = vmatprep.subr.mxu0 %v9871_v3  ;;  %4909 = vmatprep.subr.mxu1 %v9871_v3 }
 0x6c9   :  { %4683 = vmatpush2.msra.mxu0 %v4538_v19  ;;  %4910 = vmatpush2.msra.mxu1 %v4569_v17  ;;  %v8787_v17 = vld [vmem:[%s9521_s6] ss:$0 sm:$0xff] }
 0x6ca   :  { %4684 = vmatprep.subr.mxu0 %v9871_v3  ;;  %4911 = vmatprep.subr.mxu1 %v9871_v3 }
 0x6cb   :  { %4685 = vmatpush2.msra.mxu0 %v4537_v63  ;;  %4912 = vmatpush2.msra.mxu1 %v4568_v33  ;;  %v6182_v33 = vld [vmem:[%s9516_s0] sm:$0xff] }
 0x6cc   :  { %4686 = vmatprep.subr.mxu0 %v9871_v3  ;;  %4913 = vmatprep.subr.mxu1 %v9871_v3 }
 0x6cd   :  { %4687 = vmatpush2.msra.mxu0 %v4536_v35  ;;  %4914 = vmatpush2.msra.mxu1 %v4567_v21  ;;  %v862_v35 = vmul.f32 %v6182_v33, %v8787_v17 }
 0x6ce   :  { %4688 = vmatprep.subr.mxu0 %v9871_v3  ;;  %4915 = vmatprep.subr.mxu1 %v9871_v3 }
 0x6cf   :  { %4689 = vmatpush2.msra.mxu0 %v4535_v38  ;;  %4916 = vmatpush2.msra.mxu1 %v4566_v32  ;;  %v3678_v38 = vpop.permute.xlu1 %3677 }
 0x6d0   :  { %4690 = vmatprep.subr.mxu0 %v9871_v3  ;;  %4917 = vmatprep.subr.mxu1 %v9871_v3 }
 0x6d1   :  { %4691 = vmatpush2.msra.mxu0 %v4534_v5  ;;  %4918 = vmatpush2.msra.mxu1 %v4565_v29  ;;  %v6183_v29 = vld [vmem:[%s9516_s0 + $0x10] sm:$0xff] }
 0x6d2   :  { %4692 = vmatprep.subr.mxu0 %v9871_v3  ;;  %4919 = vmatprep.subr.mxu1 %v9871_v3 }
 0x6d3   :  { %4693 = vmatpush2.msra.mxu0 %v4533_v55  ;;  %4920 = vmatpush2.msra.mxu1 %v4564_v58  ;;  %v864_v55 = vmul.f32 %v6183_v29, %v8787_v17 }
 0x6d4   :  { %4694 = vmatprep.subr.mxu0 %v9871_v3  ;;  %4921 = vmatprep.subr.mxu1 %v9871_v3 }
 0x6d5   :  { %4695 = vmatpush2.msra.mxu0 %v4532_v1  ;;  %4922 = vmatpush2.msra.mxu1 %v4563_v8  ;;  %v3682_v1 = vpop.permute.xlu1 %3681  ;;  %v900_v8 = vsel %vm61_vm1, %v864_v55, 0.0 }
 0x6d6   :  { %4696 = vmatprep.subr.mxu0 %v9871_v3  ;;  %4923 = vmatprep.subr.mxu1 %v9871_v3 }
 0x6d7   :  { %4697 = vmatpush2.msra.mxu0 %v4531_v31  ;;  %4924 = vmatpush2.msra.mxu1 %v4562_v57 }
 0x6d8   :  { %4698 = vmatprep.subr.mxu0 %v9871_v3  ;;  %4925 = vmatprep.subr.mxu1 %v9871_v3 }
 0x6d9   :  { %4699 = vmatpush2.msra.mxu0 %v4530_v34  ;;  %4926 = vmatpush2.msra.mxu1 %v4561_v18 }
 0x6da   :  { %4700 = vmatprep.subr.mxu0 %v9871_v3  ;;  %4927 = vmatprep.subr.mxu1 %v9871_v3 }
 0x6db   :  { %4701 = vmatpush2.msra.mxu0 %v4529_v60  ;;  %4928 = vmatpush2.msra.mxu1 %v4560_v62  ;;  %v3686_v60 = vpop.permute.xlu1 %3685 }
 0x6dc   :  { %4702 = vmatprep.subr.mxu0 %v9871_v3  ;;  %v894_v3 = vsel %vm61_vm1, %v862_v35, 0.0 }
 0x6dd   :  { %4703 = vmatpush2.msra.mxu0 %v4528_v30  ;;  %895 = vadd.xlane.f32.xlu0 %v894_v3 }
 0x6e1   :  { %901 = vadd.xlane.f32.xlu0 %v900_v8 }
 0x701   :  { %v6093_v13 = vpop.f32.mrf.mxu0 }
 0x702   :  { %v3752_v21 = vmul.f32 %v6093_v13, %v3674_v10  ;;  %v6185_v13 = vld [vmem:[%s9516_s0 + $0x28] sm:$0xff] }
 0x703   :  { %v3528_v19 = vpop.f32.mrf.mxu0  ;;  %v867_v10 = vmul.f32 %v6185_v13, %v8787_v17  ;;  %v4227_v13 = vpop.permute.xlu0 %4226 }
 0x704   :  { %v3751_v63 = vmul.f32 %v8398_v40, %v3528_v19 }
 0x705   :  { %v909_v33 = vsel %vm61_vm1, %v867_v10, 0.0 }
 0x706   :  { %4160 = vrot.lane.b32.xlu1 %v3751_v63, %s6247_s11  ;;  %6155 = vmatprep.mubr.msk.f32.mxu1 %vm1094_vm4, %v3751_v63  ;;  %v3690_v63 = vpop.permute.xlu1 %3689 }
 0x707   :  { %6156 = vmatmul.mubr.msk.f32.gmra.mxu1 %vm1094_vm4, %v3752_v21 }
 0x709   :  { %v6096_v32 = vpop.f32.mrf.mxu0 }
 0x70a   :  { %4162 = vrot.lane.b32.xlu1 %v3752_v21, %s6247_s11  ;;  %v3754_v58 = vmul.f32 %v6096_v32, %v3678_v38  ;;  %v3694_v3 = vpop.permute.xlu1 %3693  ;;  %v6186_v38 = vld [vmem:[%s9516_s0 + $0x38] sm:$0xff] }
 0x70b   :  { %v3538_v40 = vpop.f32.mrf.mxu0  ;;  %v869_v32 = vmul.f32 %v6186_v38, %v8787_v17 }
 0x70c   :  { %v3753_v5 = vmul.f32 %v8406_v2, %v3538_v40  ;;  %v6184_v2 = vld [vmem:[%s9516_s0 + $0x18] sm:$0xff] }
 0x70d   :  { %v865_v31 = vmul.f32 %v6184_v2, %v8787_v17 }
 0x70e   :  { %4164 = vrot.lane.b32.xlu1 %v3753_v5, %s6247_s11  ;;  %6158 = vmatprep.mubr.msk.f32.mxu1 %vm1094_vm4, %v3753_v5  ;;  %v915_v5 = vsel %vm61_vm1, %v869_v32, 0.0  ;;  %v4229_v32 = vpop.permute.xlu0 %4228 }
 0x70f   :  { %6159 = vmatmul.mubr.msk.f32.gmra.mxu1 %vm1094_vm4, %v3754_v58  ;;  %v903_v34 = vsel %vm61_vm1, %v865_v31, 0.0 }
 0x710   :  { %904 = vadd.xlane.f32.xlu0 %v903_v34 }
 0x711   :  { %v6099_v57 = vpop.f32.mrf.mxu0 }
 0x712   :  { %4166 = vrot.lane.b32.xlu1 %v3754_v58, %s6247_s11  ;;  %v3756_v30 = vmul.f32 %v6099_v57, %v3682_v1  ;;  %v3698_v58 = vpop.permute.xlu1 %3697  ;;  %v6187_v1 = vld [vmem:[%s9516_s0 + $0x48] sm:$0xff] }
 0x713   :  { %v3548_v18 = vpop.f32.mrf.mxu0  ;;  %v871_v8 = vmul.f32 %v6187_v1, %v8787_v17 }
 0x714   :  { %v3755_v62 = vmul.f32 %v8412_v26, %v3548_v18  ;;  %910 = vadd.xlane.f32.xlu0 %v909_v33  ;;  %v6189_v33 = vld [vmem:[%s9516_s0 + $0x68] sm:$0xff] }
 0x715   :  { %v921_v31 = vsel %vm61_vm1, %v871_v8, 0.0 }
 0x716   :  { %4168 = vrot.lane.b32.xlu1 %v3755_v62, %s6247_s11  ;;  %6161 = vmatprep.mubr.msk.f32.mxu1 %vm1094_vm4, %v3755_v62  ;;  %v3702_v57 = vpop.permute.xlu1 %3701  ;;  %v6188_v62 = vld [vmem:[%s9516_s0 + $0x58] sm:$0xff] }
 0x717   :  { %6162 = vmatmul.mubr.msk.f32.gmra.mxu1 %vm1094_vm4, %v3756_v30 }
 0x718   :  { %916 = vadd.xlane.f32.xlu0 %v915_v5 }
 0x719   :  { %v6102_v19 = vpop.f32.mrf.mxu0 }
 0x71a   :  { %4170 = vrot.lane.b32.xlu1 %v3756_v30, %s6247_s11  ;;  %v3758_v21 = vmul.f32 %v6102_v19, %v3686_v60  ;;  %v4129_v60 = vpop.permute.xlu1 %4128  ;;  %v873_v30 = vmul.f32 %v6188_v62, %v8787_v17  ;;  %v9915_v62 = vld [vmem:[#allocation8_spill] sm:$0xff] }
 0x71b   :  { %v3558_v26 = vpop.f32.mrf.mxu0 }
 0x71c   :  { %v3757_v35 = vmul.f32 %v8424_v44, %v3558_v26  ;;  %922 = vadd.xlane.f32.xlu0 %v921_v31  ;;  %v875_v26 = vmul.f32 %v6189_v33, %v8787_v17  ;;  %v9918_v33 = vld [vmem:[#allocation6_spill] sm:$0xff] }
 0x71e   :  { %4172 = vrot.lane.b32.xlu1 %v3757_v35, %s6247_s11  ;;  %6164 = vmatprep.mubr.msk.f32.mxu1 %vm1094_vm4, %v3757_v35  ;;  %v4131_v38 = vpop.permute.xlu1 %4130 }
 0x71f   :  { %6165 = vmatmul.mubr.msk.f32.gmra.mxu1 %vm1094_vm4, %v3758_v21 }
 0x721   :  { %v6105_v40 = vpop.f32.mrf.mxu0 }
 0x722   :  { %4174 = vrot.lane.b32.xlu1 %v3758_v21, %s6247_s11  ;;  %v3760_v55 = vmul.f32 %v6105_v40, %v3690_v63  ;;  %v6190_v21 = vld [vmem:[%s9516_s0 + $0x78] sm:$0xff] }
 0x723   :  { %v3568_v44 = vpop.f32.mrf.mxu0 }
 0x724   :  { %v3759_v29 = vmul.f32 %v8436_v7, %v3568_v44 }
 0x726   :  { %4176 = vrot.lane.b32.xlu1 %v3759_v29, %s6247_s11  ;;  %6167 = vmatprep.mubr.msk.f32.mxu1 %vm1094_vm4, %v3759_v29  ;;  %v4133_v29 = vpop.permute.xlu1 %4132 }
 0x727   :  { %6168 = vmatmul.mubr.msk.f32.gmra.mxu1 %vm1094_vm4, %v3760_v55 }
 0x729   :  { %v6108_v2 = vpop.f32.mrf.mxu0 }
 0x72a   :  { %4178 = vrot.lane.b32.xlu1 %v3760_v55, %s6247_s11  ;;  %v3762_v18 = vmul.f32 %v6108_v2, %v3694_v3  ;;  %v877_v3 = vmul.f32 %v6190_v21, %v8787_v17  ;;  %v4135_v8 = vpop.permute.xlu1 %4134 }
 0x72b   :  { %v3578_v7 = vpop.f32.mrf.mxu0 }
 0x72c   :  { %v3761_v34 = vmul.f32 %v8444_v52, %v3578_v7  ;;  %v927_v52 = vsel %vm61_vm1, %v873_v30, 0.0  ;;  %v939_v40 = vsel %vm61_vm1, %v877_v3, 0.0 }
 0x72d   :  { %928 = vadd.xlane.f32.xlu0 %v927_v52 }
 0x72e   :  { %4180 = vrot.lane.b32.xlu1 %v3761_v34, %s6247_s11  ;;  %6170 = vmatprep.mubr.msk.f32.mxu1 %vm1094_vm4, %v3761_v34  ;;  %v8875_v31 = vpop.permute.xlu1 %4136 }
 0x72f   :  { %6171 = vmatmul.mubr.msk.f32.gmra.mxu1 %vm1094_vm4, %v3762_v18 }
 0x731   :  { %v6111_v10 = vpop.f32.mrf.mxu0 }
 0x732   :  { %4182 = vrot.lane.b32.xlu1 %v3762_v18, %s6247_s11  ;;  %v3764_v35 = vmul.f32 %v6111_v10, %v3698_v58  ;;  %v4231_v58 = vpop.permute.xlu0 %4230  ;;  %v8877_v18 = vpop.permute.xlu1 %4138  ;;  %v9916_v10 = vld [vmem:[#allocation5_spill] sm:$0xff] }
 0x733   :  { %v3588_v19 = vpop.f32.mrf.mxu0 }
 0x734   :  { %v3763_v63 = vmul.f32 %v8450_v27, %v3588_v19  ;;  %v933_v27 = vsel %vm61_vm1, %v875_v26, 0.0  ;;  %v9917_v19 = vld [vmem:[#allocation2_spill] sm:$0xff]  ;;  %v4387_v26 = vmul.f32 2.0, %v9918_v33 }
 0x735   :  { %934 = vadd.xlane.f32.xlu0 %v933_v27 }
 0x736   :  { %4184 = vrot.lane.b32.xlu1 %v3763_v63, %s6247_s11  ;;  %6173 = vmatprep.mubr.msk.f32.mxu1 %vm1094_vm4, %v3763_v63  ;;  %v4233_v2 = vpop.permute.xlu0 %4232  ;;  %v4384_v63 = vmul.f32 2.0, %v9917_v19  ;;  %v9923_v19 = vld [vmem:[#allocation7_spill] sm:$0xff] }
 0x737   :  { %6174 = vmatmul.mubr.msk.f32.gmra.mxu1 %vm1094_vm4, %v3764_v35 }
 0x739   :  { %v6114_v5 = vpop.f32.mrf.mxu0  ;;  %940 = vadd.xlane.f32.xlu0 %v939_v40  ;;  %v9919_v40 = vld [vmem:[#allocation4_spill] sm:$0xff] }
 0x73a   :  { %4186 = vrot.lane.b32.xlu1 %v3764_v35, %s6247_s11  ;;  %v3766_v1 = vmul.f32 %v6114_v5, %v3702_v57  ;;  %v4235_v7 = vpop.permute.xlu0 %4234  ;;  %v4386_v5 = vmul.f32 2.0, %v9919_v40  ;;  %v4356_v40 = vsel %vm1094_vm4, %v8266_v47, %v4233_v2  ;;  %v8920_v47 = vld [vmem:[%s9516_s0 + $0x8] sm:$0xff] }
 0x73b   :  { %v3598_v44 = vpop.f32.mrf.mxu0  ;;  %v863_v2 = vmul.f32 %v8920_v47, %v8787_v17 }
 0x73c   :  { %v3765_v55 = vmul.f32 %v8462_v14, %v3598_v44  ;;  %v8890_v44 = vpop.permute.xlu1 %4140 }
 0x73e   :  { %4188 = vrot.lane.b32.xlu1 %v3765_v55, %s6247_s11  ;;  %6176 = vmatprep.mubr.msk.f32.mxu1 %vm1094_vm4, %v3765_v55  ;;  %v8879_v57 = vpop.permute.xlu0 %4236 }
 0x73f   :  { %6177 = vmatmul.mubr.msk.f32.gmra.mxu1 %vm1094_vm4, %v3766_v1 }
 0x740   :  { %4929 = vmatprep.mubr.f32.mxu1 %v8476_v22  ;;  %v4353_v22 = vsel %vm1094_vm4, %v8241_v42, %v4227_v13  ;;  %v9920_v42 = vld [vmem:[#allocation9_spill] sm:$0xff] }
 0x741   :  { %v4451_v3 = vmul.f32 %v4387_v26, %v4353_v22  ;;  %v4389_v13 = vmul.f32 2.0, %v9920_v42  ;;  %v8904_v26 = vpop.permute.xlu1 %4142 }
 0x742   :  { %4190 = vrot.lane.b32.xlu1 %v3766_v1, %s6247_s11  ;;  %v4354_v1 = vsel %vm1094_vm4, %v8252_v12, %v4229_v32  ;;  %v4355_v12 = vsel %vm1094_vm4, %v8255_v23, %v4231_v58  ;;  %v9924_v32 = vld [vmem:[#allocation12_spill] sm:$0xff]  ;;  %v9926_v58 = vld [vmem:[#allocation15_spill] sm:$0xff] }
 0x74c   :  { %v6133_v34 = vpop.f32.mrf.mxu1 }
 0x74d   :  { %v4097_v30 = vmul.f32 %v6133_v34, %v9915_v62  ;;  %v8895_v34 = vpop.permute.xlu0 %4238  ;;  %v9921_v62 = vld [vmem:[#allocation14_spill] sm:$0xff] }
 0x74e   :  { %v3937_v14 = vpop.f32.mrf.mxu1 }
 0x74f   :  { %v4096_v52 = vmul.f32 %v3937_v14, %v9916_v10  ;;  %v4321_v27 = vsel %vm1094_vm4, %v4097_v30, %v4131_v38  ;;  %v9922_v38 = vld [vmem:[#allocation11_spill] sm:$0xff] }
 0x750   :  { %v4450_v14 = vmul.f32 %v4386_v5, %v4321_v27  ;;  %v9925_v5 = vld [vmem:[#allocation10_spill] sm:$0xff] }
 0x751   :  { %v4320_v35 = vsel %vm1094_vm4, %v4096_v52, %v4129_v60  ;;  %v4453_v52 = vmul.f32 %v4389_v13, %v4354_v1  ;;  %v4390_v23 = vmul.f32 2.0, %v9925_v5  ;;  %v9932_v5 = vld [vmem:[#allocation21_spill] sm:$0xff] }
 0x752   :  { %v4448_v21 = vmul.f32 %v4384_v63, %v4320_v35  ;;  %4930 = vmatmul.mubr.f32.vlgmr.msra.gmra.mxu1 %v4320_v35  ;;  %v4388_v63 = vmul.f32 2.0, %v9923_v19 }
 0x753   :  { %4934 = vmatprep.mubr.f32.mxu1 %v4353_v22  ;;  %v4391_v22 = vmul.f32 2.0, %v9924_v32 }
 0x754   :  { %v6136_v55 = vpop.f32.mrf.mxu1  ;;  %4705 = vmatmul.mubr.f32.vlgmr.msra.gmra.mxu0 %v4448_v21  ;;  %v8906_v21 = vpop.permute.xlu0 %4240 }
 0x755   :  { %4709 = vmatprep.mubr.f32.mxu0 %v4451_v3  ;;  %v4099_v10 = vmul.f32 %v6136_v55, %v9921_v62  ;;  %v4455_v3 = vmul.f32 %v4391_v22, %v4355_v12  ;;  %v4393_v55 = vmul.f32 2.0, %v9926_v58  ;;  %v9928_v62 = vld [vmem:[#allocation17_spill] sm:$0xff] }
 0x756   :  { %v3947_v60 = vpop.f32.mrf.mxu1  ;;  %4935 = vmatmul.mubr.f32.gmra.mxu1 %v4321_v27 }
 0x757   :  { %v4098_v30 = vmul.f32 %v3947_v60, %v9922_v38  ;;  %4939 = vmatprep.mubr.f32.mxu1 %v4354_v1  ;;  %v4323_v27 = vsel %vm1094_vm4, %v4099_v10, %v4135_v8  ;;  %v4457_v13 = vmul.f32 %v4393_v55, %v4356_v40  ;;  %v9927_v60 = vld [vmem:[#allocation20_spill] sm:$0xff]  ;;  %v4357_v8 = vsel %vm1094_vm4, %v8269_v25, %v4235_v7  ;;  %v9929_v10 = vld [vmem:[#allocation13_spill] sm:$0xff] }
 0x758   :  { %4710 = vmatmul.mubr.f32.gmra.mxu0 %v4450_v14  ;;  %v4454_v42 = vmul.f32 %v4390_v23, %v4323_v27  ;;  %v4397_v23 = vmul.f32 2.0, %v9932_v5 }
 0x759   :  { %4714 = vmatprep.mubr.f32.mxu0 %v4453_v52  ;;  %v4322_v33 = vsel %vm1094_vm4, %v4098_v30, %v4133_v29  ;;  %v4392_v30 = vmul.f32 2.0, %v9929_v10  ;;  %v9930_v52 = vld [vmem:[#allocation18_spill] sm:$0xff] }
 0x75a   :  { %v4452_v35 = vmul.f32 %v4388_v63, %v4322_v33  ;;  %4940 = vmatmul.mubr.f32.gmra.mxu1 %v4322_v33  ;;  %v4395_v19 = vmul.f32 2.0, %v9930_v52  ;;  %v8926_v63 = vpop.permute.xlu1 %4144  ;;  %v4358_v33 = vsel %vm1094_vm4, %v8280_v9, %v8879_v57 }
 0x75b   :  { %4944 = vmatprep.mubr.f32.mxu1 %v4355_v12  ;;  %v4243_v12 = vpop.permute.xlu0 %4242  ;;  %v4461_v57 = vmul.f32 %v4397_v23, %v4358_v33 }
 0x75c   :  { %v6139_v1 = vpop.f32.mrf.mxu1  ;;  %4715 = vmatmul.mubr.f32.gmra.mxu0 %v4452_v35  ;;  %v4459_v32 = vmul.f32 %v4395_v19, %v4357_v8  ;;  %v897_v35 = vsel %vm61_vm1, %v863_v2, 0.0  ;;  %v9935_v2 = vld [vmem:[#allocation19_spill] sm:$0xff] }
 0x75d   :  { %4719 = vmatprep.mubr.f32.mxu0 %v4455_v3  ;;  %v4101_v14 = vmul.f32 %v6139_v1, %v9927_v60  ;;  %v8939_v3 = vld [vmem:[%s9516_s0 + $0x20] sm:$0xff]  ;;  %v4359_v1 = vsel %vm1094_vm4, %v8283_v39, %v8895_v34  ;;  %v9934_v60 = vld [vmem:[#allocation23_spill] sm:$0xff]  ;;  %v4396_v10 = vmul.f32 2.0, %v9935_v2 }
 0x75e   :  { %v3957_v29 = vpop.f32.mrf.mxu1  ;;  %4945 = vmatmul.mubr.f32.gmra.mxu1 %v4323_v27  ;;  %v9931_v27 = vld [vmem:[#allocation16_spill] sm:$0xff] }
 0x75f   :  { %v4100_v38 = vmul.f32 %v3957_v29, %v9928_v62  ;;  %4949 = vmatprep.mubr.f32.mxu1 %v4356_v40  ;;  %v4325_v22 = vsel %vm1094_vm4, %v4101_v14, %v8877_v18  ;;  %v4394_v40 = vmul.f32 2.0, %v9931_v27  ;;  %v4147_v18 = vpop.permute.xlu1 %4146  ;;  %v4245_v29 = vpop.permute.xlu0 %4244 }
 0x760   :  { %4720 = vmatmul.mubr.f32.gmra.mxu0 %v4454_v42  ;;  %v9933_v42 = vld [vmem:[#allocation26_spill] sm:$0xff] }
 0x761   :  { %4724 = vmatprep.mubr.f32.mxu0 %v4457_v13  ;;  %v4324_v25 = vsel %vm1094_vm4, %v4100_v38, %v8875_v31  ;;  %v866_v31 = vmul.f32 %v8939_v3, %v8787_v17  ;;  %v4458_v9 = vmul.f32 %v4394_v40, %v4325_v22  ;;  %v6193_v38 = vld [vmem:[%s9516_s0 + $0x30] sm:$0xff] }
 0x762   :  { %v4456_v7 = vmul.f32 %v4392_v30, %v4324_v25  ;;  %4950 = vmatmul.mubr.f32.gmra.mxu1 %v4324_v25  ;;  %v9936_v30 = vld [vmem:[#allocation24_spill] sm:$0xff] }
 0x763   :  { %4954 = vmatprep.mubr.f32.mxu1 %v4357_v8  ;;  %v906_v62 = vsel %vm61_vm1, %v866_v31, 0.0  ;;  %v868_v8 = vmul.f32 %v6193_v38, %v8787_v17  ;;  %v4399_v52 = vmul.f32 2.0, %v9936_v30  ;;  %v9938_v31 = vld [vmem:[#allocation27_spill] sm:$0xff]  ;;  %v4149_v40 = vpop.permute.xlu1 %4148  ;;  %v9942_v38 = vld [vmem:[#allocation30_spill] sm:$0xff] }
 0x764   :  { %v6142_v58 = vpop.f32.mrf.mxu1  ;;  %4725 = vmatmul.mubr.f32.gmra.mxu0 %v4456_v7  ;;  %v4360_v7 = vsel %vm1094_vm4, %v8294_v43, %v8906_v21  ;;  %v4401_v27 = vmul.f32 2.0, %v9938_v31  ;;  %v4361_v21 = vsel %vm1094_vm4, %v8297_v49, %v4243_v12  ;;  %v9946_v31 = vld [vmem:[#allocation36_spill] sm:$0xff] }
 0x765   :  { %4729 = vmatprep.mubr.f32.mxu0 %v4459_v32  ;;  %v4103_v13 = vmul.f32 %v6142_v58, %v9933_v42  ;;  %v4463_v19 = vmul.f32 %v4399_v52, %v4359_v1  ;;  %v912_v32 = vsel %vm61_vm1, %v868_v8, 0.0  ;;  %v4403_v8 = vmul.f32 2.0, %v9942_v38 }
 0x766   :  { %v3967_v55 = vpop.f32.mrf.mxu1  ;;  %4955 = vmatmul.mubr.f32.gmra.mxu1 %v4325_v22  ;;  %898 = vadd.xlane.f32.xlu1 %v897_v35  ;;  %v6194_v22 = vld [vmem:[%s9516_s0 + $0x40] sm:$0xff]  ;;  %v4465_v43 = vmul.f32 %v4401_v27, %v4360_v7 }
 0x767   :  { %v4102_v14 = vmul.f32 %v3967_v55, %v9934_v60  ;;  %4959 = vmatprep.mubr.f32.mxu1 %v4358_v33  ;;  %v4327_v25 = vsel %vm1094_vm4, %v4103_v13, %v8904_v26  ;;  %v9937_v33 = vld [vmem:[#allocation22_spill] sm:$0xff]  ;;  %v4247_v26 = vpop.permute.xlu0 %4246  ;;  %v9939_v55 = vld [vmem:[#allocation32_spill] sm:$0xff]  ;;  %v4151_v12 = vpop.permute.xlu1 %4150 }
 0x768   :  { %4730 = vmatmul.mubr.f32.gmra.mxu0 %v4458_v9  ;;  %v4398_v35 = vmul.f32 2.0, %v9937_v33  ;;  %v6195_v13 = vld [vmem:[%s9516_s0 + $0x50] sm:$0xff] }
 0x769   :  { %4734 = vmatprep.mubr.f32.mxu0 %v4461_v57  ;;  %v4326_v39 = vsel %vm1094_vm4, %v4102_v14, %v8890_v44  ;;  %v870_v44 = vmul.f32 %v6194_v22, %v8787_v17  ;;  %v9940_v57 = vld [vmem:[#allocation29_spill] sm:$0xff]  ;;  %v872_v60 = vmul.f32 %v6195_v13, %v8787_v17 }
 0x76a   :  { %v4460_v34 = vmul.f32 %v4396_v10, %v4326_v39  ;;  %4960 = vmatmul.mubr.f32.gmra.mxu1 %v4326_v39  ;;  %907 = vadd.xlane.f32.xlu1 %v906_v62  ;;  %v4462_v58 = vmul.f32 %v4398_v35, %v4327_v25  ;;  %v9941_v14 = vld [vmem:[#allocation25_spill] sm:$0xff]  ;;  %v4467_v10 = vmul.f32 %v4403_v8, %v4361_v21  ;;  %v9949_v8 = vld [vmem:[#allocation35_spill] sm:$0xff] }
 0x76b   :  { %4964 = vmatprep.mubr.f32.mxu1 %v4359_v1  ;;  %v918_v42 = vsel %vm61_vm1, %v870_v44, 0.0  ;;  %v4400_v62 = vmul.f32 2.0, %v9941_v14  ;;  %v4249_v30 = vpop.permute.xlu0 %4248  ;;  %v4362_v39 = vsel %vm1094_vm4, %v8308_v41, %v4245_v29  ;;  %v9945_v41 = vld [vmem:[#allocation40_spill] sm:$0xff] }
 0x76c   :  { %v6145_v5 = vpop.f32.mrf.mxu1  ;;  %4735 = vmatmul.mubr.f32.gmra.mxu0 %v4460_v34  ;;  %v924_v34 = vsel %vm61_vm1, %v872_v60, 0.0 }
 0x76d   :  { %4739 = vmatprep.mubr.f32.mxu0 %v4463_v19  ;;  %v4105_v9 = vmul.f32 %v6145_v5, %v9939_v55  ;;  %v6196_v19 = vld [vmem:[%s9516_s0 + $0x60] sm:$0xff]  ;;  %v4153_v55 = vpop.permute.xlu1 %4152 }
 0x76e   :  { %v3977_v23 = vpop.f32.mrf.mxu1  ;;  %4965 = vmatmul.mubr.f32.gmra.mxu1 %v4327_v25  ;;  %913 = vadd.xlane.f32.xlu1 %v912_v32  ;;  %v9943_v25 = vld [vmem:[#allocation28_spill] sm:$0xff]  ;;  %v9944_v32 = vld [vmem:[#allocation33_spill] sm:$0xff] }
 0x76f   :  { %v4104_v1 = vmul.f32 %v3977_v23, %v9940_v57  ;;  %4969 = vmatprep.mubr.f32.mxu1 %v4360_v7  ;;  %v4329_v52 = vsel %vm1094_vm4, %v4105_v9, %v4147_v18  ;;  %v4402_v7 = vmul.f32 2.0, %v9943_v25  ;;  %v4405_v22 = vmul.f32 2.0, %v9944_v32  ;;  %v6197_v23 = vld [vmem:[%s9516_s0 + $0x70] sm:$0xff]  ;;  %v9948_v57 = vld [vmem:[#allocation37_spill] sm:$0xff]  ;;  %v6198_v32 = vld [vmem:[%s9516_s0 + $0x80] sm:$0xff] }
 0x770   :  { %4740 = vmatmul.mubr.f32.gmra.mxu0 %v4462_v58  ;;  %v876_v58 = vmul.f32 %v6197_v23, %v8787_v17  ;;  %v4363_v9 = vsel %vm1094_vm4, %v8311_v37, %v4247_v26  ;;  %v4364_v37 = vsel %vm1094_vm4, %v8322_v53, %v4249_v30  ;;  %v9950_v26 = vld [vmem:[#allocation41_spill] sm:$0xff]  ;;  %v878_v53 = vmul.f32 %v6198_v32, %v8787_v17  ;;  %v9953_v30 = vld [vmem:[#allocation39_spill] sm:$0xff] }
 0x771   :  { %4744 = vmatprep.mubr.f32.mxu0 %v4465_v43  ;;  %v4328_v49 = vsel %vm1094_vm4, %v4104_v1, %v8926_v63  ;;  %v874_v63 = vmul.f32 %v6196_v19, %v8787_v17  ;;  %v4466_v18 = vmul.f32 %v4402_v7, %v4329_v52  ;;  %v4469_v35 = vmul.f32 %v4405_v22, %v4362_v39  ;;  %v9947_v43 = vld [vmem:[#allocation31_spill] sm:$0xff]  ;;  %v9951_v19 = vld [vmem:[#allocation48_spill] sm:$0xff] }
 0x772   :  { %v4464_v2 = vmul.f32 %v4400_v62, %v4328_v49  ;;  %4970 = vmatmul.mubr.f32.gmra.mxu1 %v4328_v49  ;;  %919 = vadd.xlane.f32.xlu1 %v918_v42  ;;  %v4407_v1 = vmul.f32 2.0, %v9948_v57  ;;  %v4251_v42 = vpop.permute.xlu0 %4250  ;;  %v936_v38 = vsel %vm61_vm1, %v876_v58, 0.0  ;;  %v4406_v49 = vmul.f32 2.0, %v9949_v8  ;;  %v9955_v23 = vld [vmem:[#allocation43_spill] sm:$0xff] }
 0x773   :  { %4974 = vmatprep.mubr.f32.mxu1 %v4361_v21  ;;  %v930_v5 = vsel %vm61_vm1, %v874_v63, 0.0  ;;  %v4404_v21 = vmul.f32 2.0, %v9947_v43  ;;  %v9952_v63 = vld [vmem:[#allocation44_spill] sm:$0xff]  ;;  %v4408_v22 = vmul.f32 2.0, %v9953_v30  ;;  %v4410_v58 = vmul.f32 2.0, %v9955_v23 }
 0x774   :  { %v6148_v44 = vpop.f32.mrf.mxu1  ;;  %4745 = vmatmul.mubr.f32.gmra.mxu0 %v4464_v2  ;;  %v4471_v14 = vmul.f32 %v4407_v1, %v4363_v9  ;;  %v6204_v23 = vld [vmem:[%s9516_s0 + $0xb0] sm:$0xff] }
 0x775   :  { %4749 = vmatprep.mubr.f32.mxu0 %v4467_v10  ;;  %v4107_v29 = vmul.f32 %v6148_v44, %v9945_v41  ;;  %v4409_v10 = vmul.f32 2.0, %v9950_v26  ;;  %v4365_v44 = vsel %vm1094_vm4, %v8325_v46, %v4251_v42  ;;  %v942_v41 = vsel %vm61_vm1, %v878_v53, 0.0  ;;  %v6202_v53 = vld [vmem:[%s9516_s0 + $0xa0] sm:$0xff] }
 0x776   :  { %v3987_v33 = vpop.f32.mrf.mxu1  ;;  %4975 = vmatmul.mubr.f32.gmra.mxu1 %v4329_v52  ;;  %925 = vadd.xlane.f32.xlu1 %v924_v34  ;;  %v4253_v34 = vpop.permute.xlu0 %4252  ;;  %v882_v30 = vmul.f32 %v6202_v53, %v8787_v17 }
 0x777   :  { %v4106_v27 = vmul.f32 %v3987_v33, %v9946_v31  ;;  %4979 = vmatprep.mubr.f32.mxu1 %v4362_v39  ;;  %v4331_v62 = vsel %vm1094_vm4, %v4107_v29, %v4151_v12  ;;  %v4473_v7 = vmul.f32 %v4409_v10, %v4364_v37  ;;  %v9954_v33 = vld [vmem:[#allocation45_spill] sm:$0xff] }
 0x778   :  { %4750 = vmatmul.mubr.f32.gmra.mxu0 %v4466_v18  ;;  %v4470_v39 = vmul.f32 %v4406_v49, %v4331_v62  ;;  %v4411_v18 = vmul.f32 2.0, %v9954_v33 }
 0x779   :  { %4754 = vmatprep.mubr.f32.mxu0 %v4469_v35  ;;  %v4330_v13 = vsel %vm1094_vm4, %v4106_v27, %v4149_v40  ;;  %v4155_v40 = vpop.permute.xlu1 %4154 }
 0x77a   :  { %v4468_v60 = vmul.f32 %v4404_v21, %v4330_v13  ;;  %4980 = vmatmul.mubr.f32.gmra.mxu1 %v4330_v13  ;;  %931 = vadd.xlane.f32.xlu1 %v930_v5  ;;  %v4475_v31 = vmul.f32 %v4411_v18, %v4365_v44  ;;  %v6199_v5 = vld [vmem:[%s9516_s0 + $0x88] sm:$0xff]  ;;  %v4255_v1 = vpop.permute.xlu0 %4254  ;;  %v9962_v18 = vld [vmem:[#allocation57_spill] sm:$0xff] }
 0x77b   :  { %4984 = vmatprep.mubr.f32.mxu1 %v4363_v9  ;;  %v879_v46 = vmul.f32 %v6199_v5, %v8787_v17  ;;  %v9956_v9 = vld [vmem:[#allocation49_spill] sm:$0xff]  ;;  %v4367_v10 = vsel %vm1094_vm4, %v8345_v24, %v4255_v1  ;;  %v6203_v5 = vld [vmem:[%s9516_s0 + $0xa8] sm:$0xff] }
 0x77c   :  { %v6151_v2 = vpop.f32.mrf.mxu1  ;;  %4755 = vmatmul.mubr.f32.gmra.mxu0 %v4468_v60  ;;  %v4413_v57 = vmul.f32 2.0, %v9956_v9  ;;  %v6201_v24 = vld [vmem:[%s9516_s0 + $0x98] sm:$0xff] }
 0x77d   :  { %4759 = vmatprep.mubr.f32.mxu0 %v4471_v14  ;;  %v4109_v12 = vmul.f32 %v6151_v2, %v9951_v19  ;;  %v4157_v43 = vpop.permute.xlu1 %4156  ;;  %v945_v42 = vsel %vm61_vm1, %v879_v46, 0.0  ;;  %v9957_v14 = vld [vmem:[#allocation56_spill] sm:$0xff]  ;;  %v881_v32 = vmul.f32 %v6201_v24, %v8787_v17 }
 0x77e   :  { %v3997_v52 = vpop.f32.mrf.mxu1  ;;  %4985 = vmatmul.mubr.f32.gmra.mxu1 %v4331_v62  ;;  %937 = vadd.xlane.f32.xlu1 %v936_v38  ;;  %v9958_v38 = vld [vmem:[#allocation52_spill] sm:$0xff] }
 0x77f   :  { %v4108_v25 = vmul.f32 %v3997_v52, %v9952_v63  ;;  %4989 = vmatprep.mubr.f32.mxu1 %v4364_v37  ;;  %v4333_v27 = vsel %vm1094_vm4, %v4109_v12, %v4155_v40  ;;  %946 = vadd.xlane.f32.xlu0 %v945_v42  ;;  %v9959_v37 = vld [vmem:[#allocation47_spill] sm:$0xff]  ;;  %v9960_v40 = vld [vmem:[#allocation53_spill] sm:$0xff]  ;;  %v4257_v63 = vpop.permute.xlu0 %4256 }
 0x780   :  { %4760 = vmatmul.mubr.f32.gmra.mxu0 %v4470_v39  ;;  %v4474_v60 = vmul.f32 %v4410_v58, %v4333_v27  ;;  %v4412_v26 = vmul.f32 2.0, %v9959_v37  ;;  %v4415_v52 = vmul.f32 2.0, %v9960_v40  ;;  %v4368_v33 = vsel %vm1094_vm4, %v8389_v36, %v4257_v63 }
 0x781   :  { %4764 = vmatprep.mubr.f32.mxu0 %v4473_v7  ;;  %v4332_v35 = vsel %vm1094_vm4, %v4108_v25, %v4153_v55  ;;  %v4366_v55 = vsel %vm1094_vm4, %v8339_v28, %v4253_v34  ;;  %v6200_v28 = vld [vmem:[%s9516_s0 + $0x90] sm:$0xff]  ;;  %v4159_v19 = vpop.permute.xlu1 %4158  ;;  %v883_v36 = vmul.f32 %v6203_v5, %v8787_v17  ;;  %v884_v58 = vmul.f32 %v6204_v23, %v8787_v17 }
 0x782   :  { %v4472_v29 = vmul.f32 %v4408_v22, %v4332_v35  ;;  %4990 = vmatmul.mubr.f32.gmra.mxu1 %v4332_v35  ;;  %943 = vadd.xlane.f32.xlu1 %v942_v41  ;;  %v4477_v49 = vmul.f32 %v4413_v57, %v4366_v55  ;;  %v880_v2 = vmul.f32 %v6200_v28, %v8787_v17  ;;  %v9961_v22 = vld [vmem:[#allocation51_spill] sm:$0xff]  ;;  %v4417_v35 = vmul.f32 2.0, %v9962_v18  ;;  %v6206_v57 = vld [vmem:[%s9516_s0 + $0xc0] sm:$0xff]  ;;  %v6209_v28 = vld [vmem:[%s9516_s0 + $0xd8] sm:$0xff] }
 0x783   :  { %4994 = vmatprep.mubr.f32.mxu1 %v4365_v44  ;;  %v4479_v25 = vmul.f32 %v4415_v52, %v4367_v10  ;;  %v4414_v44 = vmul.f32 2.0, %v9961_v22  ;;  %v951_v41 = vsel %vm61_vm1, %v881_v32, 0.0  ;;  %v957_v46 = vsel %vm61_vm1, %v883_v36, 0.0  ;;  %v9963_v5 = vld [vmem:[#allocation64_spill] sm:$0xff] }
 0x784   :  { %v6154_v21 = vpop.f32.mrf.mxu1  ;;  %4765 = vmatmul.mubr.f32.gmra.mxu0 %v4472_v29  ;;  %v948_v34 = vsel %vm61_vm1, %v880_v2, 0.0  ;;  %v954_v29 = vsel %vm61_vm1, %v882_v30, 0.0  ;;  %952 = vadd.xlane.f32.xlu0 %v951_v41  ;;  %v886_v1 = vmul.f32 %v6206_v57, %v8787_v17  ;;  %v889_v2 = vmul.f32 %v6209_v28, %v8787_v17  ;;  %v6213_v30 = vld [vmem:[%s9516_s0 + $0xf8] sm:$0xff] }
 0x785   :  { %4769 = vmatprep.mubr.f32.mxu0 %v4475_v31  ;;  %v4111_v62 = vmul.f32 %v6154_v21, %v9957_v14  ;;  %v6205_v21 = vld [vmem:[%s9516_s0 + $0xb8] sm:$0xff]  ;;  %v893_v22 = vmul.f32 %v6213_v30, %v8787_v17 }
 0x786   :  { %v4007_v13 = vpop.f32.mrf.mxu1  ;;  %4995 = vmatmul.mubr.f32.gmra.mxu1 %v4333_v27  ;;  %949 = vadd.xlane.f32.xlu1 %v948_v34  ;;  %v4481_v27 = vmul.f32 %v4417_v35, %v4368_v33  ;;  %v966_v42 = vsel %vm61_vm1, %v886_v1, 0.0  ;;  %v975_v37 = vsel %vm61_vm1, %v889_v2, 0.0  ;;  %v6211_v34 = vld [vmem:[%s9516_s0 + $0xe8] sm:$0xff] }
 0x787   :  { %v4110_v8 = vmul.f32 %v4007_v13, %v9958_v38  ;;  %4999 = vmatprep.mubr.f32.mxu1 %v4366_v55  ;;  %v4335_v7 = vsel %vm1094_vm4, %v4111_v62, %v4159_v19  ;;  %v885_v55 = vmul.f32 %v6205_v21, %v8787_v17  ;;  %v6207_v13 = vld [vmem:[%s9516_s0 + $0xc8] sm:$0xff]  ;;  %v6208_v62 = vld [vmem:[%s9516_s0 + $0xd0] sm:$0xff]  ;;  %v891_v19 = vmul.f32 %v6211_v34, %v8787_v17  ;;  %v9966_v21 = vld [vmem:[#allocation61_spill] sm:$0xff] }
 0x788   :  { %4770 = vmatmul.mubr.f32.gmra.mxu0 %v4474_v60  ;;  %v4478_v31 = vmul.f32 %v4414_v44, %v4335_v7  ;;  %958 = vadd.xlane.f32.xlu0 %v957_v46  ;;  %v887_v60 = vmul.f32 %v6207_v13, %v8787_v17  ;;  %v888_v38 = vmul.f32 %v6208_v62, %v8787_v17  ;;  %v9964_v46 = vld [vmem:[#allocation60_spill] sm:$0xff]  ;;  %v9971_v34 = vld [vmem:[#allocation63_spill] sm:$0xff] }
 0x789   :  { %4774 = vmatprep.mubr.f32.mxu0 %v4477_v49  ;;  %v4334_v39 = vsel %vm1094_vm4, %v4110_v8, %v4157_v43  ;;  %v960_v43 = vsel %vm61_vm1, %v884_v58, 0.0  ;;  %v963_v9 = vsel %vm61_vm1, %v885_v55, 0.0  ;;  %v4161_v49 = vpop.permute.xlu1 %4160  ;;  %v981_v63 = vsel %vm61_vm1, %v891_v19, 0.0  ;;  %v9965_v58 = vld [vmem:[#allocation55_spill] sm:$0xff] }
 0x78a   :  { %v4476_v12 = vmul.f32 %v4412_v26, %v4334_v39  ;;  %5000 = vmatmul.mubr.f32.gmra.mxu1 %v4334_v39  ;;  %955 = vadd.xlane.f32.xlu1 %v954_v29  ;;  %v969_v14 = vsel %vm61_vm1, %v887_v60, 0.0  ;;  %v972_v8 = vsel %vm61_vm1, %v888_v38, 0.0  ;;  %v4259_v26 = vpop.permute.xlu0 %4258  ;;  %v4419_v55 = vmul.f32 2.0, %v9966_v21  ;;  %v9967_v60 = vld [vmem:[#allocation59_spill] sm:$0xff] }
 0x78b   :  { %5004 = vmatprep.mubr.f32.mxu1 %v4367_v10  ;;  %v6210_v10 = vld [vmem:[%s9516_s0 + $0xe0] sm:$0xff]  ;;  %v4420_v19 = vmul.f32 2.0, %v9971_v34  ;;  %v9983_v34 = vld [vmem:[#allocation79_spill] sm:$0xff] }
 0x78c   :  { %4775 = vmatmul.mubr.f32.gmra.mxu0 %v4476_v12  ;;  %964 = vadd.xlane.f32.xlu0 %v963_v9  ;;  %v890_v40 = vmul.f32 %v6210_v10, %v8787_v17 }
 0x78d   :  { %4779 = vmatprep.mubr.f32.mxu0 %v4479_v25  ;;  %v4163_v52 = vpop.permute.xlu1 %4162 }
 0x78e   :  { %5005 = vmatmul.mubr.f32.gmra.mxu1 %v4335_v7  ;;  %961 = vadd.xlane.f32.xlu1 %v960_v43  ;;  %v978_v39 = vsel %vm61_vm1, %v890_v40, 0.0  ;;  %v4261_v12 = vpop.permute.xlu0 %4260  ;;  %v6212_v7 = vld [vmem:[%s9516_s0 + $0xf0] sm:$0xff]  ;;  %v4416_v43 = vmul.f32 2.0, %v9965_v58 }
 0x78f   :  { %5009 = vmatprep.mubr.f32.mxu1 %v4368_v33  ;;  %v892_v24 = vmul.f32 %v6212_v7, %v8787_v17  ;;  %v987_v33 = vsel %vm61_vm1, %v893_v22, 0.0  ;;  %v4369_v17 = vsel %vm1094_vm4, %v8392_v48, %v4259_v26  ;;  %v4370_v48 = vsel %vm1094_vm4, %v8401_v59, %v4261_v12  ;;  %v9969_v26 = vld [vmem:[#allocation72_spill] sm:$0xff]  ;;  %v9972_v59 = vld [vmem:[#allocation69_spill] sm:$0xff] }
 0x790   :  { %4780 = vmatmul.mubr.f32.gmra.mxu0 %v4478_v31  ;;  %970 = vadd.xlane.f32.xlu0 %v969_v14  ;;  %v4418_v14 = vmul.f32 2.0, %v9967_v60  ;;  %v9970_v40 = vld [vmem:[#allocation68_spill] sm:$0xff]  ;;  %v4423_v12 = vmul.f32 2.0, %v9972_v59 }
 0x791   :  { %4784 = vmatprep.mubr.f32.mxu0 %v4481_v27  ;;  %v4165_v25 = vpop.permute.xlu1 %4164  ;;  %v984_v32 = vsel %vm61_vm1, %v892_v24, 0.0 }
 0x792   :  { %967 = vadd.xlane.f32.xlu1 %v966_v42  ;;  %v4263_v53 = vpop.permute.xlu0 %4262  ;;  %v4483_v42 = vmul.f32 %v4419_v55, %v4369_v17 }
 0x794   :  { %976 = vadd.xlane.f32.xlu0 %v975_v37 }
 0x795   :  { %v4167_v44 = vpop.permute.xlu1 %4166 }
 0x796   :  { %973 = vadd.xlane.f32.xlu1 %v972_v8  ;;  %v4265_v18 = vpop.permute.xlu0 %4264  ;;  %v9968_v8 = vld [vmem:[#allocation65_spill] sm:$0xff] }
 0x797   :  { %v4421_v28 = vmul.f32 2.0, %v9968_v8 }
 0x798   :  { %982 = vadd.xlane.f32.xlu0 %v981_v63  ;;  %v4371_v63 = vsel %vm1094_vm4, %v8404_v20, %v4263_v53  ;;  %v9974_v20 = vld [vmem:[#allocation73_spill] sm:$0xff] }
 0x799   :  { %v9116_v35 = vpop.permute.xlu1 %4168  ;;  %v4487_v30 = vmul.f32 %v4423_v12, %v4371_v63  ;;  %v4425_v53 = vmul.f32 2.0, %v9974_v20 }
 0x79a   :  { %979 = vadd.xlane.f32.xlu1 %v978_v39  ;;  %v4267_v41 = vpop.permute.xlu0 %4266  ;;  %v4485_v39 = vmul.f32 %v4421_v28, %v4370_v48 }
 0x79c   :  { %988 = vadd.xlane.f32.xlu0 %v987_v33  ;;  %v9973_v33 = vld [vmem:[#allocation67_spill] sm:$0xff] }
 0x79d   :  { %v9118_v31 = vpop.permute.xlu1 %4170 }
 0x79e   :  { %985 = vadd.xlane.f32.xlu1 %v984_v32  ;;  %v9126_v9 = vpop.permute.xlu0 %4268 }
 0x7a1   :  { %v9131_v62 = vpop.permute.xlu1 %4172 }
 0x7a2   :  { %v4271_v37 = vpop.permute.xlu0 %4270 }
 0x7a5   :  { %v4175_v24 = vpop.permute.xlu1 %4174 }
 0x7c7   :  { %v6157_v29 = vpop.f32.mrf.mxu1 }
 0x7c8   :  { %v4113_v36 = vmul.f32 %v6157_v29, %v9963_v5  ;;  %v4422_v29 = vmul.f32 2.0, %v9973_v33  ;;  %v4372_v5 = vsel %vm1094_vm4, %v8415_v45, %v4265_v18  ;;  %v4373_v45 = vsel %vm1094_vm4, %v8418_v0, %v4267_v41  ;;  %v9978_v18 = vld [vmem:[#allocation77_spill] sm:$0xff] }
 0x7c9   :  { %v4017_v27 = vpop.f32.mrf.mxu1  ;;  %v4489_v21 = vmul.f32 %v4425_v53, %v4372_v5  ;;  %v4374_v0 = vsel %vm1094_vm4, %v8427_v51, %v9126_v9  ;;  %v9980_v41 = vld [vmem:[#allocation81_spill] sm:$0xff] }
 0x7ca   :  { %v4112_v23 = vmul.f32 %v4017_v27, %v9964_v46  ;;  %v4337_v13 = vsel %vm1094_vm4, %v4113_v36, %v4163_v52  ;;  %v4273_v36 = vpop.permute.xlu0 %4272  ;;  %v9984_v51 = vld [vmem:[#allocation85_spill] sm:$0xff] }
 0x7cb   :  { %v4431_v9 = vmul.f32 2.0, %v9984_v51  ;;  %v9997_v51 = vld [vmem:[#allocation99_spill] sm:$0xff] }
 0x7cc   :  { %v4336_v57 = vsel %vm1094_vm4, %v4112_v23, %v4161_v49  ;;  %v4482_v49 = vmul.f32 %v4418_v14, %v4337_v13  ;;  %v9975_v23 = vld [vmem:[#allocation80_spill] sm:$0xff] }
 0x7cd   :  { %v4480_v1 = vmul.f32 %v4416_v43, %v4336_v57  ;;  %5010 = vmatmul.mubr.f32.gmra.mxu1 %v4336_v57  ;;  %v9976_v43 = vld [vmem:[#allocation76_spill] sm:$0xff]  ;;  %v4177_v57 = vpop.permute.xlu1 %4176 }
 0x7ce   :  { %5014 = vmatprep.mubr.f32.mxu1 %v4369_v17  ;;  %v4275_v60 = vpop.permute.xlu0 %4274 }
 0x7cf   :  { %v6160_v38 = vpop.f32.mrf.mxu1  ;;  %4785 = vmatmul.mubr.f32.gmra.mxu0 %v4480_v1  ;;  %v4427_v1 = vmul.f32 2.0, %v9978_v18 }
 0x7d0   :  { %4789 = vmatprep.mubr.f32.mxu0 %v4483_v42  ;;  %v4115_v10 = vmul.f32 %v6160_v38, %v9969_v26 }
 0x7d1   :  { %v4027_v2 = vpop.f32.mrf.mxu1  ;;  %5015 = vmatmul.mubr.f32.gmra.mxu1 %v4337_v13  ;;  %v4491_v14 = vmul.f32 %v4427_v1, %v4373_v45 }
 0x7d2   :  { %v4114_v52 = vmul.f32 %v4027_v2, %v9970_v40  ;;  %5019 = vmatprep.mubr.f32.mxu1 %v4370_v48  ;;  %v4339_v22 = vsel %vm1094_vm4, %v4115_v10, %v4167_v44  ;;  %v9977_v44 = vld [vmem:[#allocation71_spill] sm:$0xff]  ;;  %v4429_v2 = vmul.f32 2.0, %v9980_v41  ;;  %v9981_v10 = vld [vmem:[#allocation88_spill] sm:$0xff]  ;;  %v4277_v59 = vpop.permute.xlu0 %4276 }
 0x7d3   :  { %4790 = vmatmul.mubr.f32.gmra.mxu0 %v4482_v49  ;;  %v4424_v55 = vmul.f32 2.0, %v9977_v44  ;;  %v9979_v48 = vld [vmem:[#allocation75_spill] sm:$0xff]  ;;  %v9994_v41 = vld [vmem:[#allocation100_spill] sm:$0xff] }
 0x7d4   :  { %4794 = vmatprep.mubr.f32.mxu0 %v4485_v39  ;;  %v4338_v7 = vsel %vm1094_vm4, %v4114_v52, %v4165_v25  ;;  %v4486_v25 = vmul.f32 %v4422_v29, %v4339_v22  ;;  %v4426_v8 = vmul.f32 2.0, %v9979_v48  ;;  %v9982_v52 = vld [vmem:[#allocation84_spill] sm:$0xff] }
 0x7d5   :  { %v4484_v32 = vmul.f32 %v4420_v19, %v4338_v7  ;;  %5020 = vmatmul.mubr.f32.gmra.mxu1 %v4338_v7  ;;  %v4428_v19 = vmul.f32 2.0, %v9983_v34 }
 0x7d6   :  { %5024 = vmatprep.mubr.f32.mxu1 %v4371_v63  ;;  %v4375_v63 = vsel %vm1094_vm4, %v8430_v6, %v4271_v37  ;;  %v4376_v6 = vsel %vm1094_vm4, %v8439_v61, %v4273_v36  ;;  %v9986_v37 = vld [vmem:[#allocation89_spill] sm:$0xff] }
 0x7d7   :  { %v6163_v27 = vpop.f32.mrf.mxu1  ;;  %4795 = vmatmul.mubr.f32.gmra.mxu0 %v4484_v32  ;;  %v4495_v32 = vmul.f32 %v4431_v9, %v4375_v63  ;;  %v9990_v61 = vld [vmem:[#allocation93_spill] sm:$0xff]  ;;  %v4438_v9 = vmul.f32 2.0, %v9997_v51 }
 0x7d8   :  { %4799 = vmatprep.mubr.f32.mxu0 %v4487_v30  ;;  %v4117_v58 = vmul.f32 %v6163_v27, %v9975_v23  ;;  %v9988_v23 = vld [vmem:[#allocation92_spill] sm:$0xff]  ;;  %v4435_v36 = vmul.f32 2.0, %v9990_v61 }
 0x7d9   :  { %v4037_v46 = vpop.f32.mrf.mxu1  ;;  %5025 = vmatmul.mubr.f32.gmra.mxu1 %v4339_v22  ;;  %v9985_v22 = vld [vmem:[#allocation83_spill] sm:$0xff] }
 0x7da   :  { %v4116_v17 = vmul.f32 %v4037_v46, %v9976_v43  ;;  %5029 = vmatprep.mubr.f32.mxu1 %v4372_v5  ;;  %v4341_v38 = vsel %vm1094_vm4, %v4117_v58, %v9118_v31  ;;  %v4493_v31 = vmul.f32 %v4429_v2, %v4374_v0  ;;  %v4430_v33 = vmul.f32 2.0, %v9985_v22  ;;  %v9987_v46 = vld [vmem:[#allocation96_spill] sm:$0xff]  ;;  %v9989_v43 = vld [vmem:[#allocation87_spill] sm:$0xff] }
 0x7db   :  { %4800 = vmatmul.mubr.f32.gmra.mxu0 %v4486_v25  ;;  %v4490_v26 = vmul.f32 %v4426_v8, %v4341_v38  ;;  %v4433_v5 = vmul.f32 2.0, %v9986_v37 }
 0x7dc   :  { %4804 = vmatprep.mubr.f32.mxu0 %v4489_v21  ;;  %v4340_v42 = vsel %vm1094_vm4, %v4116_v17, %v9116_v35  ;;  %v4179_v35 = vpop.permute.xlu1 %4178  ;;  %v4432_v17 = vmul.f32 2.0, %v9989_v43  ;;  %v4377_v21 = vsel %vm1094_vm4, %v8442_v54, %v4275_v60  ;;  %v9992_v54 = vld [vmem:[#allocation97_spill] sm:$0xff]  ;;  %v10003_v43 = vld [vmem:[#allocation107_spill] sm:$0xff] }
 0x7dd   :  { %v4488_v13 = vmul.f32 %v4424_v55, %v4340_v42  ;;  %5030 = vmatmul.mubr.f32.gmra.mxu1 %v4340_v42  ;;  %v4499_v18 = vmul.f32 %v4435_v36, %v4377_v21  ;;  %v9991_v42 = vld [vmem:[#allocation91_spill] sm:$0xff]  ;;  %v4437_v60 = vmul.f32 2.0, %v9992_v54  ;;  %v10004_v36 = vld [vmem:[#allocation113_spill] sm:$0xff] }
 0x7de   :  { %5034 = vmatprep.mubr.f32.mxu1 %v4373_v45  ;;  %v10007_v54 = vld [vmem:[#allocation111_spill] sm:$0xff] }
 0x7df   :  { %v6166_v28 = vpop.f32.mrf.mxu1  ;;  %4805 = vmatmul.mubr.f32.gmra.mxu0 %v4488_v13  ;;  %v4434_v13 = vmul.f32 2.0, %v9991_v42 }
 0x7e0   :  { %4809 = vmatprep.mubr.f32.mxu0 %v4491_v14  ;;  %v4119_v40 = vmul.f32 %v6166_v28, %v9981_v10  ;;  %v4181_v29 = vpop.permute.xlu1 %4180  ;;  %v9993_v28 = vld [vmem:[#allocation104_spill] sm:$0xff] }
 0x7e1   :  { %v4047_v49 = vpop.f32.mrf.mxu1  ;;  %5035 = vmatmul.mubr.f32.gmra.mxu1 %v4341_v38  ;;  %v4378_v38 = vsel %vm1094_vm4, %v8453_v56, %v4277_v59 }
 0x7e2   :  { %v4118_v39 = vmul.f32 %v4047_v49, %v9982_v52  ;;  %5039 = vmatprep.mubr.f32.mxu1 %v4374_v0  ;;  %v4343_v30 = vsel %vm1094_vm4, %v4119_v40, %v4175_v24  ;;  %v4497_v24 = vmul.f32 %v4433_v5, %v4376_v6  ;;  %v4501_v49 = vmul.f32 %v4437_v60, %v4378_v38  ;;  %v9996_v40 = vld [vmem:[#allocation101_spill] sm:$0xff]  ;;  %v10001_v5 = vld [vmem:[#allocation103_spill] sm:$0xff] }
 0x7e3   :  { %4810 = vmatmul.mubr.f32.gmra.mxu0 %v4490_v26  ;;  %v4494_v53 = vmul.f32 %v4430_v33, %v4343_v30  ;;  %v4439_v52 = vmul.f32 2.0, %v9996_v40  ;;  %v9999_v33 = vld [vmem:[#allocation112_spill] sm:$0xff]  ;;  %v4444_v60 = vmul.f32 2.0, %v10007_v54 }
 0x7e4   :  { %4814 = vmatprep.mubr.f32.mxu0 %v4493_v31  ;;  %v4342_v12 = vsel %vm1094_vm4, %v4118_v39, %v9131_v62  ;;  %v4279_v62 = vpop.permute.xlu0 %4278  ;;  %v4183_v55 = vpop.permute.xlu1 %4182 }
 0x7e5   :  { %v4492_v7 = vmul.f32 %v4428_v19, %v4342_v12  ;;  %5040 = vmatmul.mubr.f32.gmra.mxu1 %v4342_v12  ;;  %v4379_v56 = vsel %vm1094_vm4, %v8456_v4, %v4279_v62  ;;  %v9998_v4 = vld [vmem:[#allocation105_spill] sm:$0xff] }
 0x7e6   :  { %5044 = vmatprep.mubr.f32.mxu1 %v4375_v63  ;;  %v4503_v19 = vmul.f32 %v4439_v52, %v4379_v56  ;;  %v9224_v52 = vld [vmem:[%s9521_s6] ss:$0 sm:$0xff] }
 0x7e7   :  { %v6169_v27 = vpop.f32.mrf.mxu1  ;;  %4815 = vmatmul.mubr.f32.gmra.mxu0 %v4492_v7  ;;  %v4441_v7 = vmul.f32 2.0, %v9998_v4  ;;  %v9231_v4 = vld [vmem:[%s9522_s7] ss:$0 sm:$0xff] }
 0x7e8   :  { %4819 = vmatprep.mubr.f32.mxu0 %v4495_v32  ;;  %v4121_v25 = vmul.f32 %v6169_v27, %v9987_v46  ;;  %v4281_v48 = vpop.permute.xlu0 %4280  ;;  %v4185_v10 = vpop.permute.xlu1 %4184  ;;  %v10000_v27 = vld [vmem:[#allocation108_spill] sm:$0xff] }
 0x7e9   :  { %v4057_v20 = vpop.f32.mrf.mxu1  ;;  %5045 = vmatmul.mubr.f32.gmra.mxu1 %v4343_v30  ;;  %v4380_v12 = vsel %vm1094_vm4, %v8465_v50, %v4281_v48  ;;  %v10002_v50 = vld [vmem:[#allocation109_spill] sm:$0xff] }
 0x7ea   :  { %v4120_v58 = vmul.f32 %v4057_v20, %v9988_v23  ;;  %5049 = vmatprep.mubr.f32.mxu1 %v4376_v6  ;;  %v4345_v1 = vsel %vm1094_vm4, %v4121_v25, %v4179_v35  ;;  %v9995_v35 = vld [vmem:[#allocation95_spill] sm:$0xff]  ;;  %v4505_v37 = vmul.f32 %v4441_v7, %v4380_v12  ;;  %v4440_v20 = vmul.f32 2.0, %v10001_v5 }
 0x7eb   :  { %4820 = vmatmul.mubr.f32.gmra.mxu0 %v4494_v53  ;;  %v4436_v26 = vmul.f32 2.0, %v9995_v35  ;;  %v4443_v62 = vmul.f32 2.0, %v10002_v50 }
 0x7ec   :  { %4824 = vmatprep.mubr.f32.mxu0 %v4497_v24  ;;  %v4344_v44 = vsel %vm1094_vm4, %v4120_v58, %v4177_v57  ;;  %v4498_v57 = vmul.f32 %v4434_v13, %v4345_v1  ;;  %v4283_v34 = vpop.permute.xlu0 %4282  ;;  %v4187_v32 = vpop.permute.xlu1 %4186  ;;  %v10006_v13 = vld [vmem:[#allocation116_spill] sm:$0xff] }
 0x7ed   :  { %v4496_v45 = vmul.f32 %v4432_v17, %v4344_v44  ;;  %5050 = vmatmul.mubr.f32.gmra.mxu1 %v4344_v44  ;;  %v4381_v53 = vsel %vm1094_vm4, %v8468_v16, %v4283_v34  ;;  %v4442_v17 = vmul.f32 2.0, %v10003_v43  ;;  %v4445_v44 = vmul.f32 2.0, %v10004_v36 }
 0x7ee   :  { %5054 = vmatprep.mubr.f32.mxu1 %v4377_v21  ;;  %v4507_v58 = vmul.f32 %v4443_v62, %v4381_v53 }
 0x7ef   :  { %v6172_v14 = vpop.f32.mrf.mxu1  ;;  %4825 = vmatmul.mubr.f32.gmra.mxu0 %v4496_v45 }
 0x7f0   :  { %4829 = vmatprep.mubr.f32.mxu0 %v4499_v18  ;;  %v4123_v0 = vmul.f32 %v6172_v14, %v9993_v28  ;;  %v4285_v46 = vpop.permute.xlu0 %4284  ;;  %v4189_v21 = vpop.permute.xlu1 %4188 }
 0x7f1   :  { %v4067_v8 = vpop.f32.mrf.mxu1  ;;  %5055 = vmatmul.mubr.f32.gmra.mxu1 %v4345_v1  ;;  %v4382_v16 = vsel %vm1094_vm4, %v8480_v11, %v4285_v46  ;;  %v10005_v1 = vld [vmem:[#allocation117_spill] sm:$0xff]  ;;  %v10008_v11 = vld [vmem:[#allocation118_spill] sm:$0xff] }
 0x7f2   :  { %v4122_v2 = vmul.f32 %v4067_v8, %v9994_v41  ;;  %5059 = vmatprep.mubr.f32.mxu1 %v4378_v38  ;;  %v4347_v63 = vsel %vm1094_vm4, %v4123_v0, %v4183_v55  ;;  %v4509_v38 = vmul.f32 %v4445_v44, %v4382_v16  ;;  %v4447_v8 = vmul.f32 2.0, %v10008_v11 }
 0x7f3   :  { %4830 = vmatmul.mubr.f32.gmra.mxu0 %v4498_v57  ;;  %v4502_v22 = vmul.f32 %v4438_v9, %v4347_v63 }
 0x7f4   :  { %4834 = vmatprep.mubr.f32.mxu0 %v4501_v49  ;;  %v4346_v39 = vsel %vm1094_vm4, %v4122_v2, %v4181_v29  ;;  %v4287_v18 = vpop.permute.xlu0 %4286  ;;  %v4191_v28 = vpop.permute.xlu1 %4190  ;;  %v10009_v49 = vld [vmem:[#allocation115_spill] sm:$0xff] }
 0x7f5   :  { %v4500_v31 = vmul.f32 %v4436_v26, %v4346_v39  ;;  %5060 = vmatmul.mubr.f32.gmra.mxu1 %v4346_v39  ;;  %v4383_v48 = vsel %vm1094_vm4, %v8483_v15, %v4287_v18  ;;  %v4446_v35 = vmul.f32 2.0, %v10009_v49 }
 0x7f6   :  { %5064 = vmatprep.mubr.f32.mxu1 %v4379_v56  ;;  %v4511_v41 = vmul.f32 %v4447_v8, %v4383_v48 }
 0x7f7   :  { %v6175_v59 = vpop.f32.mrf.mxu1  ;;  %4835 = vmatmul.mubr.f32.gmra.mxu0 %v4500_v31 }
 0x7f8   :  { %4839 = vmatprep.mubr.f32.mxu0 %v4503_v19  ;;  %v4125_v29 = vmul.f32 %v6175_v59, %v9999_v33  ;;  %v899_v56 = vpop.xlane.xlu1 %898 }
 0x7f9   :  { %v4077_v30 = vpop.f32.mrf.mxu1  ;;  %5065 = vmatmul.mubr.f32.gmra.mxu1 %v4347_v63  ;;  %v4577_v31 = vmul.f32 2.0, %v899_v56 }
 0x7fa   :  { %v4124_v6 = vmul.f32 %v4077_v30, %v10000_v27  ;;  %5069 = vmatprep.mubr.f32.mxu1 %v4380_v12  ;;  %v4349_v24 = vsel %vm1094_vm4, %v4125_v29, %v4187_v32  ;;  %v6215_v27 = vld [vmem:[%s9516_s0] sm:$0xff] }
 0x7fb   :  { %4840 = vmatmul.mubr.f32.gmra.mxu0 %v4502_v22  ;;  %v4506_v45 = vmul.f32 %v4442_v17, %v4349_v24  ;;  %v4609_v59 = vmul.f32 %v9224_v52, %v4577_v31 }
 0x7fc   :  { %4844 = vmatprep.mubr.f32.mxu0 %v4505_v37  ;;  %v4348_v25 = vsel %vm1094_vm4, %v4124_v6, %v4185_v10  ;;  %v896_v10 = vpop.xlane.xlu0 %895  ;;  %v5160_v6 = vmul.f32 0.5, %v6215_v27 }
 0x7fd   :  { %v4504_v23 = vmul.f32 %v4440_v20, %v4348_v25  ;;  %5070 = vmatmul.mubr.f32.gmra.mxu1 %v4348_v25  ;;  %v4576_v15 = vmul.f32 2.0, %v896_v10 }
 0x7fe   :  { %5074 = vmatprep.mubr.f32.mxu1 %v4381_v53  ;;  %v908_v53 = vpop.xlane.xlu1 %907 }
 0x7ff   :  { %v6178_v61 = vpop.f32.mrf.mxu1  ;;  %4845 = vmatmul.mubr.f32.gmra.mxu0 %v4504_v23  ;;  %v4608_v39 = vmul.f32 %v9224_v52, %v4576_v15  ;;  %v5161_v23 = vmul.f32 0.5, %v8920_v47  ;;  %v6216_v47 = vld [vmem:[%s9516_s0 + $0x10] sm:$0xff] }
 0x800   :  { %4849 = vmatprep.mubr.f32.mxu0 %v4507_v58  ;;  %v4127_v42 = vmul.f32 %v6178_v61, %v10005_v1  ;;  %v902_v40 = vpop.xlane.xlu0 %901  ;;  %v5162_v1 = vmul.f32 0.5, %v6216_v47 }
 0x801   :  { %v4087_v55 = vpop.f32.mrf.mxu1  ;;  %5075 = vmatmul.mubr.f32.gmra.mxu1 %v4349_v24  ;;  %v4578_v9 = vmul.f32 2.0, %v902_v40 }
 0x802   :  { %v4126_v14 = vmul.f32 %v4087_v55, %v10006_v13  ;;  %5079 = vmatprep.mubr.f32.mxu1 %v4382_v16  ;;  %v4351_v2 = vsel %vm1094_vm4, %v4127_v42, %v4191_v28  ;;  %v4580_v16 = vmul.f32 2.0, %v908_v53  ;;  %v914_v11 = vpop.xlane.xlu1 %913 }
 0x803   :  { %4850 = vmatmul.mubr.f32.gmra.mxu0 %v4506_v45  ;;  %v4510_v26 = vmul.f32 %v4446_v35, %v4351_v2  ;;  %v4610_v20 = vmul.f32 %v9224_v52, %v4578_v9  ;;  %v4582_v40 = vmul.f32 2.0, %v914_v11 }
 0x804   :  { %4854 = vmatprep.mubr.f32.mxu0 %v4509_v38  ;;  %v4350_v57 = vsel %vm1094_vm4, %v4126_v14, %v4189_v21  ;;  %v905_v12 = vpop.xlane.xlu0 %904 }
 0x805   :  { %v4508_v0 = vmul.f32 %v4444_v60, %v4350_v57  ;;  %5080 = vmatmul.mubr.f32.gmra.mxu1 %v4350_v57  ;;  %v4579_v29 = vmul.f32 2.0, %v905_v12 }
 0x806   :  { %5084 = vmatprep.mubr.f32.mxu1 %v4383_v48  ;;  %v4612_v48 = vmul.f32 %v9224_v52, %v4580_v16 }
 0x807   :  { %4855 = vmatmul.mubr.f32.gmra.mxu0 %v4508_v0  ;;  %v4611_v43 = vmul.f32 %v9224_v52, %v4579_v29 }
 0x808   :  { %4859 = vmatprep.mubr.f32.mxu0 %v4511_v41  ;;  %v911_v36 = vpop.xlane.xlu0 %910  ;;  %v6217_v41 = vld [vmem:[%s9516_s0 + $0x18] sm:$0xff] }
 0x809   :  { %5085 = vmatmul.mubr.f32.gmra.mxu1 %v4351_v2  ;;  %v4581_v14 = vmul.f32 2.0, %v911_v36  ;;  %v5163_v2 = vmul.f32 0.5, %v6217_v41 }
 0x80b   :  { %4860 = vmatmul.mubr.f32.gmra.mxu0 %v4510_v26  ;;  %v4613_v26 = vmul.f32 %v9224_v52, %v4581_v14 }
 0x812   :  { %v4931_v34 = vpop.f32.mrf.mxu1 }
 0x814   :  { %v4706_v19 = vpop.f32.mrf.mxu0  ;;  %v4933_v63 = vpop.f32.mrf.mxu1 }
 0x815   :  { %v4707_v51 = vadd.f32 %v4706_v19, %v4608_v39  ;;  %v917_v39 = vpop.xlane.xlu0 %916 }
 0x816   :  { %v4708_v7 = vpop.f32.mrf.mxu0  ;;  %v4936_v32 = vpop.f32.mrf.mxu1  ;;  %v4583_v12 = vmul.f32 2.0, %v917_v39 }
 0x817   :  { %v4932_v30 = vadd.f32 %v4931_v34, %v4707_v51  ;;  %v5164_v51 = vmul.f32 0.5, %v8939_v3  ;;  %v6218_v3 = vld [vmem:[%s9516_s0 + $0x28] sm:$0xff] }
 0x818   :  { %v4711_v22 = vpop.f32.mrf.mxu0  ;;  %v4938_v33 = vpop.f32.mrf.mxu1 }
 0x819   :  { %v5096_v37 = vadd.f32 %v9231_v4, %v4932_v30  ;;  %v4712_v5 = vadd.f32 %v4711_v22, %v4609_v59  ;;  %v4614_v22 = vmul.f32 %v9224_v52, %v4582_v40  ;;  %v920_v33 = vpop.xlane.xlu1 %919 }
 0x81a   :  { %v4713_v50 = vpop.f32.mrf.mxu0  ;;  %v4941_v62 = vpop.f32.mrf.mxu1 }
 0x81b   :  { %v5128_v46 = vmul.f32 0.5, %v5096_v37  ;;  %v4937_v25 = vadd.f32 %v4936_v32, %v4712_v5  ;;  %v5165_v5 = vmul.f32 0.5, %v6218_v3  ;;  %v4615_v50 = vmul.f32 %v9224_v52, %v4583_v12 }
 0x81c   :  { %v4716_v58 = vpop.f32.mrf.mxu0  ;;  %v4943_v24 = vpop.f32.mrf.mxu1 }
 0x81d   :  { %v5192_v17 = vadd.f32 %v5160_v6, %v5128_v46  ;;  %v5097_v21 = vadd.f32 %v9231_v4, %v4937_v25  ;;  %v4717_v61 = vadd.f32 %v4716_v58, %v4610_v20  ;;  %v923_v58 = vpop.xlane.xlu0 %922 }
 0x81e   :  { %v4718_v44 = vpop.f32.mrf.mxu0  ;;  %v4946_v55 = vpop.f32.mrf.mxu1 }
 0x81f   :  { %5224 = vst.msk [vmem:[%s9523_s8] sm:$0xff] %vm61_vm1, %v5192_v17  ;;  %v5129_v45 = vmul.f32 0.5, %v5097_v21  ;;  %v4942_v18 = vadd.f32 %v4941_v62, %v4717_v61  ;;  %v6219_v61 = vld [vmem:[%s9516_s0 + $0x30] sm:$0xff] }
 0x820   :  { %v4721_v42 = vpop.f32.mrf.mxu0  ;;  %v4948_v13 = vpop.f32.mrf.mxu1  ;;  %v5166_v16 = vmul.f32 0.5, %v6219_v61 }
 0x821   :  { %v5193_v38 = vadd.f32 %v5161_v23, %v5129_v45  ;;  %v5098_v54 = vadd.f32 %v9231_v4, %v4942_v18  ;;  %v4722_v60 = vadd.f32 %v4721_v42, %v4611_v43  ;;  %v4584_v23 = vmul.f32 2.0, %v920_v33  ;;  %v926_v42 = vpop.xlane.xlu1 %925 }
 0x822   :  { %v4723_v8 = vpop.f32.mrf.mxu0  ;;  %v4951_v57 = vpop.f32.mrf.mxu1 }
 0x823   :  { %5225 = vst.msk [vmem:[%s9523_s8 + $0x8] sm:$0xff] %vm61_vm1, %v5193_v38  ;;  %v5130_v28 = vmul.f32 0.5, %v5098_v54  ;;  %v4947_v0 = vadd.f32 %v4946_v55, %v4722_v60  ;;  %v4585_v55 = vmul.f32 2.0, %v923_v58  ;;  %v6220_v60 = vld [vmem:[%s9516_s0 + $0x38] sm:$0xff] }
 0x824   :  { %v4726_v49 = vpop.f32.mrf.mxu0  ;;  %v4953_v35 = vpop.f32.mrf.mxu1 }
 0x825   :  { %v5194_v10 = vadd.f32 %v5162_v1, %v5130_v28  ;;  %v5099_v15 = vadd.f32 %v9231_v4, %v4947_v0  ;;  %v4727_v56 = vadd.f32 %v4726_v49, %v4612_v48  ;;  %v4616_v1 = vmul.f32 %v9224_v52, %v4584_v23  ;;  %v929_v49 = vpop.xlane.xlu0 %928  ;;  %v6223_v23 = vld [vmem:[%s9516_s0 + $0x50] sm:$0xff] }
 0x826   :  { %v4728_v31 = vpop.f32.mrf.mxu0  ;;  %v4956_v34 = vpop.f32.mrf.mxu1  ;;  %v5167_v48 = vmul.f32 0.5, %v6220_v60  ;;  %v5170_v58 = vmul.f32 0.5, %v6223_v23 }
 0x827   :  { %5226 = vst.msk [vmem:[%s9523_s8 + $0x10] sm:$0xff] %vm61_vm1, %v5194_v10  ;;  %v5131_v19 = vmul.f32 0.5, %v5099_v15  ;;  %v4952_v63 = vadd.f32 %v4951_v57, %v4727_v56  ;;  %v4617_v57 = vmul.f32 %v9224_v52, %v4585_v55  ;;  %v6221_v56 = vld [vmem:[%s9516_s0 + $0x40] sm:$0xff] }
 0x828   :  { %v4731_v9 = vpop.f32.mrf.mxu0  ;;  %v4958_v59 = vpop.f32.mrf.mxu1  ;;  %v5168_v40 = vmul.f32 0.5, %v6221_v56 }
 0x829   :  { %v5195_v7 = vadd.f32 %v5163_v2, %v5131_v19  ;;  %v5100_v32 = vadd.f32 %v9231_v4, %v4952_v63  ;;  %v4732_v30 = vadd.f32 %v4731_v9, %v4613_v26  ;;  %v4586_v2 = vmul.f32 2.0, %v926_v42  ;;  %v932_v59 = vpop.xlane.xlu1 %931 }
 0x82a   :  { %v4733_v29 = vpop.f32.mrf.mxu0  ;;  %v4961_v27 = vpop.f32.mrf.mxu1 }
 0x82b   :  { %5227 = vst.msk [vmem:[%s9523_s8 + $0x18] sm:$0xff] %vm61_vm1, %v5195_v7  ;;  %v5132_v6 = vmul.f32 0.5, %v5100_v32  ;;  %v4957_v37 = vadd.f32 %v4956_v34, %v4732_v30  ;;  %v4587_v34 = vmul.f32 2.0, %v929_v49  ;;  %v4618_v9 = vmul.f32 %v9224_v52, %v4586_v2  ;;  %v6225_v2 = vld [vmem:[%s9516_s0 + $0x60] sm:$0xff] }
 0x82c   :  { %v4736_v20 = vpop.f32.mrf.mxu0  ;;  %v4963_v53 = vpop.f32.mrf.mxu1  ;;  %v5172_v49 = vmul.f32 0.5, %v6225_v2 }
 0x82d   :  { %v5196_v62 = vadd.f32 %v5164_v51, %v5132_v6  ;;  %v5101_v46 = vadd.f32 %v9231_v4, %v4957_v37  ;;  %v4737_v25 = vadd.f32 %v4736_v20, %v4614_v22  ;;  %v6222_v22 = vld [vmem:[%s9516_s0 + $0x48] sm:$0xff]  ;;  %v4619_v6 = vmul.f32 %v9224_v52, %v4587_v34  ;;  %v935_v53 = vpop.xlane.xlu0 %934 }
 0x82e   :  { %v4738_v24 = vpop.f32.mrf.mxu0  ;;  %v4966_v43 = vpop.f32.mrf.mxu1  ;;  %v5169_v33 = vmul.f32 0.5, %v6222_v22  ;;  %v4588_v20 = vmul.f32 2.0, %v932_v59 }
 0x82f   :  { %5228 = vst.msk [vmem:[%s9523_s8 + $0x20] sm:$0xff] %vm61_vm1, %v5196_v62  ;;  %v5133_v17 = vmul.f32 0.5, %v5101_v46  ;;  %v4962_v21 = vadd.f32 %v4961_v27, %v4737_v25 }
 0x830   :  { %v4741_v36 = vpop.f32.mrf.mxu0  ;;  %v4968_v44 = vpop.f32.mrf.mxu1 }
 0x831   :  { %v5197_v45 = vadd.f32 %v5165_v5, %v5133_v17  ;;  %v5102_v18 = vadd.f32 %v9231_v4, %v4962_v21  ;;  %v4742_v47 = vadd.f32 %v4741_v36, %v4615_v50  ;;  %v4589_v17 = vmul.f32 2.0, %v935_v53  ;;  %v938_v44 = vpop.xlane.xlu1 %937 }
 0x832   :  { %v4743_v13 = vpop.f32.mrf.mxu0  ;;  %v4971_v14 = vpop.f32.mrf.mxu1  ;;  %v4620_v36 = vmul.f32 %v9224_v52, %v4588_v20 }
 0x833   :  { %5229 = vst.msk [vmem:[%s9523_s8 + $0x28] sm:$0xff] %vm61_vm1, %v5197_v45  ;;  %v5134_v38 = vmul.f32 0.5, %v5102_v18  ;;  %v4967_v54 = vadd.f32 %v4966_v43, %v4742_v47 }
 0x834   :  { %v4746_v11 = vpop.f32.mrf.mxu0  ;;  %v4973_v8 = vpop.f32.mrf.mxu1 }
 0x835   :  { %v5198_v28 = vadd.f32 %v5166_v16, %v5134_v38  ;;  %v5103_v0 = vadd.f32 %v9231_v4, %v4967_v54  ;;  %v4747_v41 = vadd.f32 %v4746_v11, %v4616_v1  ;;  %v6224_v1 = vld [vmem:[%s9516_s0 + $0x58] sm:$0xff]  ;;  %v4621_v38 = vmul.f32 %v9224_v52, %v4589_v17  ;;  %v941_v8 = vpop.xlane.xlu0 %940 }
 0x836   :  { %v4748_v35 = vpop.f32.mrf.mxu0  ;;  %v4976_v26 = vpop.f32.mrf.mxu1  ;;  %v5171_v42 = vmul.f32 0.5, %v6224_v1  ;;  %v4590_v11 = vmul.f32 2.0, %v938_v44 }
 0x837   :  { %5230 = vst.msk [vmem:[%s9523_s8 + $0x30] sm:$0xff] %vm61_vm1, %v5198_v28  ;;  %v5135_v10 = vmul.f32 0.5, %v5103_v0  ;;  %v4972_v15 = vadd.f32 %v4971_v14, %v4747_v41 }
 0x838   :  { %v4751_v39 = vpop.f32.mrf.mxu0  ;;  %v4978_v31 = vpop.f32.mrf.mxu1 }
 0x839   :  { %v5199_v19 = vadd.f32 %v5167_v48, %v5135_v10  ;;  %v5104_v63 = vadd.f32 %v9231_v4, %v4972_v15  ;;  %v4752_v51 = vadd.f32 %v4751_v39, %v4617_v57  ;;  %v4591_v10 = vmul.f32 2.0, %v941_v8  ;;  %v947_v44 = vpop.xlane.xlu0 %946  ;;  %v6229_v8 = vld [vmem:[%s9516_s0 + $0x80] sm:$0xff] }
 0x83a   :  { %v4753_v12 = vpop.f32.mrf.mxu0  ;;  %v4981_v7 = vpop.f32.mrf.mxu1  ;;  %v4622_v39 = vmul.f32 %v9224_v52, %v4590_v11 }
 0x83b   :  { %5231 = vst.msk [vmem:[%s9523_s8 + $0x38] sm:$0xff] %vm61_vm1, %v5199_v19  ;;  %v5136_v32 = vmul.f32 0.5, %v5104_v63  ;;  %v4977_v30 = vadd.f32 %v4976_v26, %v4752_v51  ;;  %v6226_v51 = vld [vmem:[%s9516_s0 + $0x68] sm:$0xff]  ;;  %v4623_v22 = vmul.f32 %v9224_v52, %v4591_v10 }
 0x83c   :  { %v4756_v29 = vpop.f32.mrf.mxu0  ;;  %v4983_v27 = vpop.f32.mrf.mxu1 }
 0x83d   :  { %v5200_v37 = vadd.f32 %v5168_v40, %v5136_v32  ;;  %v5105_v3 = vadd.f32 %v9231_v4, %v4977_v30  ;;  %v4757_v5 = vadd.f32 %v4756_v29, %v4618_v9  ;;  %v5173_v9 = vmul.f32 0.5, %v6226_v51 }
 0x83e   :  { %v4758_v50 = vpop.f32.mrf.mxu0  ;;  %v4986_v62 = vpop.f32.mrf.mxu1 }
 0x83f   :  { %5232 = vst.msk [vmem:[%s9523_s8 + $0x40] sm:$0xff] %vm61_vm1, %v5200_v37  ;;  %v5137_v46 = vmul.f32 0.5, %v5105_v3  ;;  %v4982_v25 = vadd.f32 %v4981_v7, %v4757_v5  ;;  %v6227_v5 = vld [vmem:[%s9516_s0 + $0x70] sm:$0xff] }
 0x840   :  { %v4761_v24 = vpop.f32.mrf.mxu0  ;;  %v4988_v43 = vpop.f32.mrf.mxu1  ;;  %v5174_v20 = vmul.f32 0.5, %v6227_v5 }
 0x841   :  { %v5201_v21 = vadd.f32 %v5169_v33, %v5137_v46  ;;  %v5106_v61 = vadd.f32 %v9231_v4, %v4982_v25  ;;  %v4762_v16 = vadd.f32 %v4761_v24, %v4619_v6 }
 0x842   :  { %v4763_v55 = vpop.f32.mrf.mxu0  ;;  %v4991_v45 = vpop.f32.mrf.mxu1 }
 0x843   :  { %5233 = vst.msk [vmem:[%s9523_s8 + $0x48] sm:$0xff] %vm61_vm1, %v5201_v21  ;;  %v5138_v18 = vmul.f32 0.5, %v5106_v61  ;;  %v4987_v47 = vadd.f32 %v4986_v62, %v4762_v16  ;;  %v944_v16 = vpop.xlane.xlu1 %943  ;;  %v4593_v55 = vmul.f32 2.0, %v947_v44 }
 0x844   :  { %v4766_v13 = vpop.f32.mrf.mxu0  ;;  %v4993_v14 = vpop.f32.mrf.mxu1 }
 0x845   :  { %v5202_v54 = vadd.f32 %v5170_v58, %v5138_v18  ;;  %v5107_v60 = vadd.f32 %v9231_v4, %v4987_v47  ;;  %v4767_v48 = vadd.f32 %v4766_v13, %v4620_v36  ;;  %v6228_v58 = vld [vmem:[%s9516_s0 + $0x78] sm:$0xff]  ;;  %v4592_v36 = vmul.f32 2.0, %v944_v16 }
 0x846   :  { %v4768_v57 = vpop.f32.mrf.mxu0  ;;  %v4996_v28 = vpop.f32.mrf.mxu1  ;;  %v5175_v24 = vmul.f32 0.5, %v6228_v58  ;;  %v4625_v14 = vmul.f32 %v9224_v52, %v4593_v55 }
 0x847   :  { %5234 = vst.msk [vmem:[%s9523_s8 + $0x50] sm:$0xff] %vm61_vm1, %v5202_v54  ;;  %v5139_v0 = vmul.f32 0.5, %v5107_v60  ;;  %v4992_v41 = vadd.f32 %v4991_v45, %v4767_v48  ;;  %v4624_v45 = vmul.f32 %v9224_v52, %v4592_v36  ;;  %v950_v47 = vpop.xlane.xlu1 %949  ;;  %v953_v54 = vpop.xlane.xlu0 %952  ;;  %v5176_v57 = vmul.f32 0.5, %v6229_v8 }
 0x848   :  { %v4771_v35 = vpop.f32.mrf.mxu0  ;;  %v4998_v26 = vpop.f32.mrf.mxu1 }
 0x849   :  { %v5203_v15 = vadd.f32 %v5171_v42, %v5139_v0  ;;  %v5108_v56 = vadd.f32 %v9231_v4, %v4992_v41  ;;  %v4772_v40 = vadd.f32 %v4771_v35, %v4621_v38  ;;  %v4594_v38 = vmul.f32 2.0, %v950_v47 }
 0x84a   :  { %v4773_v31 = vpop.f32.mrf.mxu0  ;;  %v5001_v34 = vpop.f32.mrf.mxu1 }
 0x84b   :  { %5235 = vst.msk [vmem:[%s9523_s8 + $0x58] sm:$0xff] %vm61_vm1, %v5203_v15  ;;  %v5140_v19 = vmul.f32 0.5, %v5108_v56  ;;  %v4997_v63 = vadd.f32 %v4996_v28, %v4772_v40  ;;  %v4626_v35 = vmul.f32 %v9224_v52, %v4594_v38  ;;  %v956_v26 = vpop.xlane.xlu1 %955 }
 0x84c   :  { %v4776_v59 = vpop.f32.mrf.mxu0  ;;  %v5003_v12 = vpop.f32.mrf.mxu1 }
 0x84d   :  { %v5204_v7 = vadd.f32 %v5172_v49, %v5140_v19  ;;  %v5109_v32 = vadd.f32 %v9231_v4, %v4997_v63  ;;  %v4777_v30 = vadd.f32 %v4776_v59, %v4622_v39  ;;  %v4595_v49 = vmul.f32 2.0, %v953_v54  ;;  %v6230_v39 = vld [vmem:[%s9516_s0 + $0x88] sm:$0xff] }
 0x84e   :  { %v4778_v33 = vpop.f32.mrf.mxu0  ;;  %v5006_v29 = vpop.f32.mrf.mxu1  ;;  %v5177_v31 = vmul.f32 0.5, %v6230_v39  ;;  %v4596_v63 = vmul.f32 2.0, %v956_v26 }
 0x84f   :  { %5236 = vst.msk [vmem:[%s9523_s8 + $0x60] sm:$0xff] %vm61_vm1, %v5204_v7  ;;  %v5141_v27 = vmul.f32 0.5, %v5109_v32  ;;  %v5002_v6 = vadd.f32 %v5001_v34, %v4777_v30  ;;  %v4627_v12 = vmul.f32 %v9224_v52, %v4595_v49  ;;  %v959_v7 = vpop.xlane.xlu0 %958 }
 0x850   :  { %v4781_v37 = vpop.f32.mrf.mxu0  ;;  %v5008_v3 = vpop.f32.mrf.mxu1 }
 0x851   :  { %v5205_v53 = vadd.f32 %v5173_v9, %v5141_v27  ;;  %v5110_v50 = vadd.f32 %v9231_v4, %v5002_v6  ;;  %v4782_v62 = vadd.f32 %v4781_v37, %v4623_v22  ;;  %v4628_v3 = vmul.f32 %v9224_v52, %v4596_v63 }
 0x852   :  { %v4783_v46 = vpop.f32.mrf.mxu0 }
 0x853   :  { %5237 = vst.msk [vmem:[%s9523_s8 + $0x68] sm:$0xff] %vm61_vm1, %v5205_v53  ;;  %v5142_v25 = vmul.f32 0.5, %v5110_v50  ;;  %v5007_v23 = vadd.f32 %v5006_v29, %v4782_v62  ;;  %v6231_v29 = vld [vmem:[%s9516_s0 + $0x90] sm:$0xff]  ;;  %v4597_v50 = vmul.f32 2.0, %v959_v7  ;;  %v962_v62 = vpop.xlane.xlu1 %961 }
 0x854   :  { %v5178_v27 = vmul.f32 0.5, %v6231_v29 }
 0x855   :  { %v5206_v43 = vadd.f32 %v5174_v20, %v5142_v25  ;;  %v5111_v17 = vadd.f32 %v9231_v4, %v5007_v23  ;;  %v4629_v55 = vmul.f32 %v9224_v52, %v4597_v50  ;;  %v6236_v50 = vld [vmem:[%s9516_s0 + $0xb8] sm:$0xff] }
 0x857   :  { %5238 = vst.msk [vmem:[%s9523_s8 + $0x70] sm:$0xff] %vm61_vm1, %v5206_v43  ;;  %v5143_v21 = vmul.f32 0.5, %v5111_v17 }
 0x859   :  { %v5207_v61 = vadd.f32 %v5175_v24, %v5143_v21  ;;  %v6232_v24 = vld [vmem:[%s9516_s0 + $0x98] sm:$0xff] }
 0x85a   :  { %v5179_v43 = vmul.f32 0.5, %v6232_v24 }
 0x85b   :  { %5239 = vst.msk [vmem:[%s9523_s8 + $0x78] sm:$0xff] %vm61_vm1, %v5207_v61  ;;  %v4598_v61 = vmul.f32 2.0, %v962_v62  ;;  %v5183_v62 = vmul.f32 0.5, %v6236_v50 }
 0x88d   :  { %v5011_v18 = vpop.f32.mrf.mxu1 }
 0x88f   :  { %v4786_v1 = vpop.f32.mrf.mxu0  ;;  %v5013_v42 = vpop.f32.mrf.mxu1 }
 0x890   :  { %v4787_v13 = vadd.f32 %v4786_v1, %v4624_v45  ;;  %v965_v45 = vpop.xlane.xlu0 %964 }
 0x891   :  { %v4788_v60 = vpop.f32.mrf.mxu0  ;;  %v5016_v48 = vpop.f32.mrf.mxu1 }
 0x892   :  { %v5012_v11 = vadd.f32 %v5011_v18, %v4787_v13  ;;  %v6233_v13 = vld [vmem:[%s9516_s0 + $0xa0] sm:$0xff]  ;;  %v4630_v60 = vmul.f32 %v9224_v52, %v4598_v61 }
 0x893   :  { %v4791_v28 = vpop.f32.mrf.mxu0  ;;  %v5018_v0 = vpop.f32.mrf.mxu1 }
 0x894   :  { %v5112_v41 = vadd.f32 %v9231_v4, %v5012_v11  ;;  %v4792_v2 = vadd.f32 %v4791_v28, %v4625_v14  ;;  %v5180_v14 = vmul.f32 0.5, %v6233_v13  ;;  %v968_v28 = vpop.xlane.xlu1 %967 }
 0x895   :  { %v4793_v10 = vpop.f32.mrf.mxu0  ;;  %v5021_v15 = vpop.f32.mrf.mxu1 }
 0x896   :  { %v5144_v56 = vmul.f32 0.5, %v5112_v41  ;;  %v5017_v40 = vadd.f32 %v5016_v48, %v4792_v2 }
 0x897   :  { %v4796_v34 = vpop.f32.mrf.mxu0  ;;  %v5023_v19 = vpop.f32.mrf.mxu1 }
 0x898   :  { %v5208_v51 = vadd.f32 %v5176_v57, %v5144_v56  ;;  %v5113_v9 = vadd.f32 %v9231_v4, %v5017_v40  ;;  %v4797_v59 = vadd.f32 %v4796_v34, %v4626_v35  ;;  %v4599_v57 = vmul.f32 2.0, %v965_v45  ;;  %v6234_v35 = vld [vmem:[%s9516_s0 + $0xa8] sm:$0xff]  ;;  %v971_v19 = vpop.xlane.xlu0 %970 }
 0x899   :  { %v4798_v32 = vpop.f32.mrf.mxu0  ;;  %v5026_v30 = vpop.f32.mrf.mxu1  ;;  %v5181_v26 = vmul.f32 0.5, %v6234_v35  ;;  %v4600_v56 = vmul.f32 2.0, %v968_v28 }
 0x89a   :  { %5240 = vst.msk [vmem:[%s9523_s8 + $0x80] sm:$0xff] %vm61_vm1, %v5208_v51  ;;  %v5145_v22 = vmul.f32 0.5, %v5113_v9  ;;  %v5022_v33 = vadd.f32 %v5021_v15, %v4797_v59  ;;  %v4631_v34 = vmul.f32 %v9224_v52, %v4599_v57  ;;  %v6238_v57 = vld [vmem:[%s9516_s0 + $0xc8] sm:$0xff] }
 0x89b   :  { %v4801_v6 = vpop.f32.mrf.mxu0  ;;  %v5028_v37 = vpop.f32.mrf.mxu1  ;;  %v5185_v28 = vmul.f32 0.5, %v6238_v57 }
 0x89c   :  { %v5209_v5 = vadd.f32 %v5177_v31, %v5145_v22  ;;  %v5114_v20 = vadd.f32 %v9231_v4, %v5022_v33  ;;  %v4802_v53 = vadd.f32 %v4801_v6, %v4627_v12  ;;  %v6235_v12 = vld [vmem:[%s9516_s0 + $0xb0] sm:$0xff]  ;;  %v4632_v22 = vmul.f32 %v9224_v52, %v4600_v56  ;;  %v974_v37 = vpop.xlane.xlu1 %973 }
 0x89d   :  { %v4803_v46 = vpop.f32.mrf.mxu0  ;;  %v5031_v25 = vpop.f32.mrf.mxu1  ;;  %v5182_v7 = vmul.f32 0.5, %v6235_v12  ;;  %v4601_v6 = vmul.f32 2.0, %v971_v19 }
 0x89e   :  { %5241 = vst.msk [vmem:[%s9523_s8 + $0x88] sm:$0xff] %vm61_vm1, %v5209_v5  ;;  %v5146_v23 = vmul.f32 0.5, %v5114_v20  ;;  %v5027_v58 = vadd.f32 %v5026_v30, %v4802_v53 }
 0x89f   :  { %v4806_v17 = vpop.f32.mrf.mxu0  ;;  %v5033_v21 = vpop.f32.mrf.mxu1 }
 0x8a0   :  { %v5210_v16 = vadd.f32 %v5178_v27, %v5146_v23  ;;  %v5115_v36 = vadd.f32 %v9231_v4, %v5027_v58  ;;  %v4807_v44 = vadd.f32 %v4806_v17, %v4628_v3  ;;  %v4602_v23 = vmul.f32 2.0, %v974_v37  ;;  %v977_v21 = vpop.xlane.xlu0 %976 }
 0x8a1   :  { %v4808_v18 = vpop.f32.mrf.mxu0  ;;  %v5036_v47 = vpop.f32.mrf.mxu1  ;;  %v4633_v17 = vmul.f32 %v9224_v52, %v4601_v6  ;;  %v6240_v6 = vld [vmem:[%s9516_s0 + $0xd8] sm:$0xff] }
 0x8a2   :  { %5242 = vst.msk [vmem:[%s9523_s8 + $0x90] sm:$0xff] %vm61_vm1, %v5210_v16  ;;  %v5147_v1 = vmul.f32 0.5, %v5115_v36  ;;  %v5032_v42 = vadd.f32 %v5031_v25, %v4807_v44  ;;  %v5187_v37 = vmul.f32 0.5, %v6240_v6 }
 0x8a3   :  { %v4811_v38 = vpop.f32.mrf.mxu0  ;;  %v5038_v54 = vpop.f32.mrf.mxu1 }
 0x8a4   :  { %v5211_v48 = vadd.f32 %v5179_v43, %v5147_v1  ;;  %v5116_v11 = vadd.f32 %v9231_v4, %v5032_v42  ;;  %v4812_v8 = vadd.f32 %v4811_v38, %v4629_v55  ;;  %v6237_v55 = vld [vmem:[%s9516_s0 + $0xc0] sm:$0xff]  ;;  %v4634_v1 = vmul.f32 %v9224_v52, %v4602_v23  ;;  %v980_v54 = vpop.xlane.xlu1 %979 }
 0x8a5   :  { %v4813_v0 = vpop.f32.mrf.mxu0  ;;  %v5041_v41 = vpop.f32.mrf.mxu1  ;;  %v5184_v45 = vmul.f32 0.5, %v6237_v55  ;;  %v4603_v38 = vmul.f32 2.0, %v977_v21 }
 0x8a6   :  { %5243 = vst.msk [vmem:[%s9523_s8 + $0x98] sm:$0xff] %vm61_vm1, %v5211_v48  ;;  %v5148_v2 = vmul.f32 0.5, %v5116_v11  ;;  %v5037_v49 = vadd.f32 %v5036_v47, %v4812_v8 }
 0x8a7   :  { %v4816_v10 = vpop.f32.mrf.mxu0  ;;  %v5043_v15 = vpop.f32.mrf.mxu1 }
 0x8a8   :  { %v5212_v40 = vadd.f32 %v5180_v14, %v5148_v2  ;;  %v5117_v39 = vadd.f32 %v9231_v4, %v5037_v49  ;;  %v4817_v31 = vadd.f32 %v4816_v10, %v4630_v60  ;;  %v4604_v2 = vmul.f32 2.0, %v980_v54  ;;  %v983_v15 = vpop.xlane.xlu0 %982 }
 0x8a9   :  { %v4818_v63 = vpop.f32.mrf.mxu0  ;;  %v5046_v51 = vpop.f32.mrf.mxu1  ;;  %v4635_v10 = vmul.f32 %v9224_v52, %v4603_v38 }
 0x8aa   :  { %5244 = vst.msk [vmem:[%s9523_s8 + $0xa0] sm:$0xff] %vm61_vm1, %v5212_v40  ;;  %v5149_v9 = vmul.f32 0.5, %v5117_v39  ;;  %v5042_v59 = vadd.f32 %v5041_v41, %v4817_v31 }
 0x8ab   :  { %v4821_v32 = vpop.f32.mrf.mxu0  ;;  %v5048_v30 = vpop.f32.mrf.mxu1 }
 0x8ac   :  { %v5213_v33 = vadd.f32 %v5181_v26, %v5149_v9  ;;  %v5118_v29 = vadd.f32 %v9231_v4, %v5042_v59  ;;  %v4822_v27 = vadd.f32 %v4821_v32, %v4631_v34  ;;  %v6239_v34 = vld [vmem:[%s9516_s0 + $0xd0] sm:$0xff]  ;;  %v4636_v9 = vmul.f32 %v9224_v52, %v4604_v2  ;;  %v986_v30 = vpop.xlane.xlu1 %985 }
 0x8ad   :  { %v4823_v3 = vpop.f32.mrf.mxu0  ;;  %v5051_v5 = vpop.f32.mrf.mxu1  ;;  %v5186_v19 = vmul.f32 0.5, %v6239_v34  ;;  %v4605_v32 = vmul.f32 2.0, %v983_v15  ;;  %v6244_v34 = vld [vmem:[%s9516_s0 + $0xf8] sm:$0xff] }
 0x8ae   :  { %5245 = vst.msk [vmem:[%s9523_s8 + $0xa8] sm:$0xff] %vm61_vm1, %v5213_v33  ;;  %v5150_v20 = vmul.f32 0.5, %v5118_v29  ;;  %v5047_v53 = vadd.f32 %v5046_v51, %v4822_v27 }
 0x8af   :  { %v4826_v46 = vpop.f32.mrf.mxu0  ;;  %v5053_v25 = vpop.f32.mrf.mxu1 }
 0x8b0   :  { %v5214_v58 = vadd.f32 %v5182_v7, %v5150_v20  ;;  %v5119_v24 = vadd.f32 %v9231_v4, %v5047_v53  ;;  %v4827_v43 = vadd.f32 %v4826_v46, %v4632_v22  ;;  %v4606_v20 = vmul.f32 2.0, %v986_v30  ;;  %v989_v25 = vpop.xlane.xlu0 %988 }
 0x8b1   :  { %v4828_v61 = vpop.f32.mrf.mxu0  ;;  %v5056_v16 = vpop.f32.mrf.mxu1  ;;  %v4637_v46 = vmul.f32 %v9224_v52, %v4605_v32 }
 0x8b2   :  { %5246 = vst.msk [vmem:[%s9523_s8 + $0xb0] sm:$0xff] %vm61_vm1, %v5214_v58  ;;  %v5151_v36 = vmul.f32 0.5, %v5119_v24  ;;  %v5052_v44 = vadd.f32 %v5051_v5, %v4827_v43 }
 0x8b3   :  { %v4831_v18 = vpop.f32.mrf.mxu0  ;;  %v5058_v47 = vpop.f32.mrf.mxu1 }
 0x8b4   :  { %v5215_v42 = vadd.f32 %v5183_v62, %v5151_v36  ;;  %v5120_v13 = vadd.f32 %v9231_v4, %v5052_v44  ;;  %v4832_v14 = vadd.f32 %v4831_v18, %v4633_v17  ;;  %v6241_v17 = vld [vmem:[%s9516_s0 + $0xe0] sm:$0xff]  ;;  %v4607_v18 = vmul.f32 2.0, %v989_v25 }
 0x8b5   :  { %v4833_v60 = vpop.f32.mrf.mxu0  ;;  %v5061_v48 = vpop.f32.mrf.mxu1  ;;  %v5188_v21 = vmul.f32 0.5, %v6241_v17 }
 0x8b6   :  { %5247 = vst.msk [vmem:[%s9523_s8 + $0xb8] sm:$0xff] %vm61_vm1, %v5215_v42  ;;  %v5152_v11 = vmul.f32 0.5, %v5120_v13  ;;  %v5057_v8 = vadd.f32 %v5056_v16, %v4832_v14  ;;  %v4638_v16 = vmul.f32 %v9224_v52, %v4606_v20  ;;  %v6242_v14 = vld [vmem:[%s9516_s0 + $0xe8] sm:$0xff] }
 0x8b7   :  { %v4836_v0 = vpop.f32.mrf.mxu0  ;;  %v5063_v41 = vpop.f32.mrf.mxu1  ;;  %v5189_v38 = vmul.f32 0.5, %v6242_v14 }
 0x8b8   :  { %v5216_v49 = vadd.f32 %v5184_v45, %v5152_v11  ;;  %v5121_v35 = vadd.f32 %v9231_v4, %v5057_v8  ;;  %v4837_v26 = vadd.f32 %v4836_v0, %v4634_v1  ;;  %v4639_v8 = vmul.f32 %v9224_v52, %v4607_v18 }
 0x8b9   :  { %v4838_v56 = vpop.f32.mrf.mxu0  ;;  %v5066_v40 = vpop.f32.mrf.mxu1 }
 0x8ba   :  { %5248 = vst.msk [vmem:[%s9523_s8 + $0xc0] sm:$0xff] %vm61_vm1, %v5216_v49  ;;  %v5153_v39 = vmul.f32 0.5, %v5121_v35  ;;  %v5062_v31 = vadd.f32 %v5061_v48, %v4837_v26  ;;  %v6243_v26 = vld [vmem:[%s9516_s0 + $0xf0] sm:$0xff] }
 0x8bb   :  { %v4841_v63 = vpop.f32.mrf.mxu0  ;;  %v5068_v51 = vpop.f32.mrf.mxu1 }
 0x8bc   :  { %v5217_v59 = vadd.f32 %v5185_v28, %v5153_v39  ;;  %v5122_v12 = vadd.f32 %v9231_v4, %v5062_v31  ;;  %v4842_v7 = vadd.f32 %v4841_v63, %v4635_v10  ;;  %v5190_v10 = vmul.f32 0.5, %v6243_v26 }
 0x8bd   :  { %v4843_v22 = vpop.f32.mrf.mxu0  ;;  %v5071_v33 = vpop.f32.mrf.mxu1 }
 0x8be   :  { %5249 = vst.msk [vmem:[%s9523_s8 + $0xc8] sm:$0xff] %vm61_vm1, %v5217_v59  ;;  %v5154_v29 = vmul.f32 0.5, %v5122_v12  ;;  %v5067_v27 = vadd.f32 %v5066_v40, %v4842_v7 }
 0x8bf   :  { %v4846_v3 = vpop.f32.mrf.mxu0  ;;  %v5073_v5 = vpop.f32.mrf.mxu1 }
 0x8c0   :  { %v5218_v53 = vadd.f32 %v5186_v19, %v5154_v29  ;;  %v5123_v50 = vadd.f32 %v9231_v4, %v5067_v27  ;;  %v4847_v62 = vadd.f32 %v4846_v3, %v4636_v9  ;;  %v5191_v19 = vmul.f32 0.5, %v6244_v34 }
 0x8c1   :  { %v4848_v23 = vpop.f32.mrf.mxu0  ;;  %v5076_v58 = vpop.f32.mrf.mxu1 }
 0x8c2   :  { %5250 = vst.msk [vmem:[%s9523_s8 + $0xd0] sm:$0xff] %vm61_vm1, %v5218_v53  ;;  %v5155_v24 = vmul.f32 0.5, %v5123_v50  ;;  %v5072_v43 = vadd.f32 %v5071_v33, %v4847_v62 }
 0x8c3   :  { %v4851_v61 = vpop.f32.mrf.mxu0  ;;  %v5078_v36 = vpop.f32.mrf.mxu1 }
 0x8c4   :  { %v5219_v44 = vadd.f32 %v5187_v37, %v5155_v24  ;;  %v5124_v55 = vadd.f32 %v9231_v4, %v5072_v43  ;;  %v4852_v45 = vadd.f32 %v4851_v61, %v4637_v46 }
 0x8c5   :  { %v4853_v47 = vpop.f32.mrf.mxu0  ;;  %v5081_v1 = vpop.f32.mrf.mxu1 }
 0x8c6   :  { %5251 = vst.msk [vmem:[%s9523_s8 + $0xd8] sm:$0xff] %vm61_vm1, %v5219_v44  ;;  %v5156_v42 = vmul.f32 0.5, %v5124_v55  ;;  %v5077_v13 = vadd.f32 %v5076_v58, %v4852_v45 }
 0x8c7   :  { %v4856_v54 = vpop.f32.mrf.mxu0  ;;  %v5083_v60 = vpop.f32.mrf.mxu1 }
 0x8c8   :  { %v5220_v48 = vadd.f32 %v5188_v21, %v5156_v42  ;;  %v5125_v11 = vadd.f32 %v9231_v4, %v5077_v13  ;;  %v4857_v57 = vadd.f32 %v4856_v54, %v4638_v16 }
 0x8c9   :  { %v4858_v28 = vpop.f32.mrf.mxu0  ;;  %v5086_v0 = vpop.f32.mrf.mxu1 }
 0x8ca   :  { %5252 = vst.msk [vmem:[%s9523_s8 + $0xe0] sm:$0xff] %vm61_vm1, %v5220_v48  ;;  %v5157_v41 = vmul.f32 0.5, %v5125_v11  ;;  %v5082_v2 = vadd.f32 %v5081_v1, %v4857_v57 }
 0x8cb   :  { %v4861_v49 = vpop.f32.mrf.mxu0  ;;  %v5088_v35 = vpop.f32.mrf.mxu1 }
 0x8cc   :  { %v5221_v15 = vadd.f32 %v5189_v38, %v5157_v41  ;;  %v5126_v52 = vadd.f32 %v9231_v4, %v5082_v2  ;;  %v4862_v56 = vadd.f32 %v4861_v49, %v4639_v8 }
 0x8cd   :  { %v4863_v40 = vpop.f32.mrf.mxu0 }
 0x8ce   :  { %5253 = vst.msk [vmem:[%s9523_s8 + $0xe8] sm:$0xff] %vm61_vm1, %v5221_v15  ;;  %v5158_v39 = vmul.f32 0.5, %v5126_v52  ;;  %v5087_v31 = vadd.f32 %v5086_v0, %v4862_v56 }
 0x8d0   :  { %v5222_v63 = vadd.f32 %v5190_v10, %v5158_v39  ;;  %v5127_v51 = vadd.f32 %v9231_v4, %v5087_v31 }
 0x8d2   :  { %5254 = vst.msk [vmem:[%s9523_s8 + $0xf0] sm:$0xff] %vm61_vm1, %v5222_v63  ;;  %v5159_v9 = vmul.f32 0.5, %v5127_v51 }
 0x8d4   :  { %v5223_v59 = vadd.f32 %v5191_v19, %v5159_v9 }
 0x8d6   :  { %5255 = vst.msk [vmem:[%s9523_s8 + $0xf8] sm:$0xff] %vm61_vm1, %v5223_v59 }

</bundles_post_ra>
